<compile_context>
chip_gen: v7x
topology: tpu7x:2x2x1
jax: 0.10.0
libtpu: 0.0.40
codegen_flags: <defaults>
</compile_context>

<pallas_src>
from functools import partial

import jax
import jax.numpy as jnp
from jax.experimental import pallas as pl
from jax.experimental.pallas import tpu as pltpu

EPS = 1e-5        # nn.BatchNorm2d default eps
SLOPE = 0.1       # nn.LeakyReLU(0.1)


# ------------------------------ small helpers ------------------------------ #

def _round_up(v, m):
    return (v + m - 1) // m * m


def _pick_row_tile(m, target):
    """Largest multiple-of-8 divisor of m that is <= target (fallback: m)."""
    cand = (min(target, m) // 8) * 8
    while cand >= 8:
        if m % cand == 0:
            return cand
        cand -= 8
    return m


def _pick_h_tile(h, target):
    """Largest divisor of h that is <= target."""
    cand = min(target, h)
    while cand > 1:
        if h % cand == 0:
            return cand
        cand -= 1
    return 1


def _vmem_limit_bytes():
    """~3/4 of the chip's VMEM, capped at 100 MiB (v5e/v6e: ~96-100 MiB, v7x: 48 MiB)."""
    cap = None
    try:
        cap = getattr(pltpu.get_tpu_info(), "vmem_capacity_bytes", None)
    except Exception:
        cap = None
    if not cap:
        return 48 * 1024 * 1024
    return int(min(max(cap * 3 // 4, 32 * 1024 * 1024), 100 * 1024 * 1024))


def _bn_scale_shift(stats, gamma, beta, m):
    """Fold batch statistics + gamma/beta into per-channel scale & shift (tiny, plain JAX)."""
    mean = stats[0:1, :] / m
    # clamp guards the E[z^2] - mean^2 cancellation from going negative
    var = jnp.maximum(stats[1:2, :] / m - mean * mean, 0.0)
    inv = jax.lax.rsqrt(var + EPS)
    scale = gamma * inv                     # padded gamma is 0 -> padded lanes stay 0
    shift = beta - mean * scale
    return scale, shift


# ------------------------- 1x1 conv (matmul) kernels ------------------------ #

def _mm_stats_kernel(x_ref, w_ref, stat_ref):
    """Pass 1: z = x @ w; per-channel sum / sumsq accumulated per 'parallel' slice."""
    z = jnp.dot(x_ref[...], w_ref[...], preferred_element_type=jnp.float32)

    @pl.when(pl.program_id(1) == 0)
    def _init():
        stat_ref[...] = jnp.zeros_like(stat_ref)

    stat_ref[0:1, :] += jnp.sum(z, axis=0, keepdims=True)
    stat_ref[1:2, :] += jnp.sum(z * z, axis=0, keepdims=True)


def _mm_apply_kernel(x_ref, w_ref, scale_ref, shift_ref, o_ref):
    """Pass 2: recompute z = x @ w, apply folded BN (scale/shift) + LeakyReLU."""
    z = jnp.dot(x_ref[...], w_ref[...], preferred_element_type=jnp.float32)
    y = z * scale_ref[...] + shift_ref[...]
    o_ref[...] = jnp.where(y > 0, y, SLOPE * y).astype(o_ref.dtype)


# --------------------- 3x3/pad=1 conv (K-packed) kernels -------------------- #

def _make_conv3_kernels(TH, W, Cmp, Cp, R, dtype):
    """Build the 3x3-conv stats / apply / apply+residual kernels for fixed tile sizes."""
    BUF_ROWS = TH + 2          # one slot = TH rows + top/bottom halo rows
    K3 = 3 * Cmp

    # ---- double-buffered halo fetch (3 static-shape DMAs per row-tile) ---- #
    def start_fetch(h1_ref, buf_ref, sem_ref, n, r, slot):
        row0 = r * TH
        base = slot * BUF_ROWS
        pltpu.make_async_copy(h1_ref.at[n, pl.ds(row0, TH), :, :],
                              buf_ref.at[pl.ds(base + 1, TH), :, :],
                              sem_ref.at[slot, 0]).start()

        @pl.when(r > 0)
        def _top():
            pltpu.make_async_copy(h1_ref.at[n, pl.ds(row0 - 1, 1), :, :],
                                  buf_ref.at[pl.ds(base, 1), :, :],
                                  sem_ref.at[slot, 1]).start()

        @pl.when(r < R - 1)
        def _bot():
            pltpu.make_async_copy(h1_ref.at[n, pl.ds(row0 + TH, 1), :, :],
                                  buf_ref.at[pl.ds(base + TH + 1, 1), :, :],
                                  sem_ref.at[slot, 2]).start()

    def wait_fetch(h1_ref, buf_ref, sem_ref, n, r, slot):
        pltpu.make_async_copy(h1_ref.at[n, pl.ds(0, TH), :, :],
                              buf_ref.at[pl.ds(1, TH), :, :],
                              sem_ref.at[slot, 0]).wait()

        @pl.when(r > 0)
        def _top():
            pltpu.make_async_copy(h1_ref.at[n, pl.ds(0, 1), :, :],
                                  buf_ref.at[pl.ds(0, 1), :, :],
                                  sem_ref.at[slot, 1]).wait()

        @pl.when(r < R - 1)
        def _bot():
            pltpu.make_async_copy(h1_ref.at[n, pl.ds(0, 1), :, :],
                                  buf_ref.at[pl.ds(TH + 1, 1), :, :],
                                  sem_ref.at[slot, 2]).wait()

    def conv_tile(h1_ref, w_ref, buf_ref, sem_ref):
        n = pl.program_id(0)
        r = pl.program_id(1)
        slot = jax.lax.rem(r, 2)

        # prime the per-image pipeline (r is the inner, sequential grid axis)
        @pl.when(r == 0)
        def _prime():
            start_fetch(h1_ref, buf_ref, sem_ref, n, r, slot)

        wait_fetch(h1_ref, buf_ref, sem_ref, n, r, slot)

        # zero the halo rows at the image top/bottom (the slot is static there)
        @pl.when(r == 0)
        def _zero_top():
            buf_ref[pl.ds(0, 1), :, :] = jnp.zeros((1, W, Cmp), dtype)

        @pl.when(r == R - 1)
        def _zero_bot():
            off = ((R - 1) % 2) * BUF_ROWS + TH + 1
            buf_ref[pl.ds(off, 1), :, :] = jnp.zeros((1, W, Cmp), dtype)

        # prefetch the next row-tile of this image while we compute the current one
        @pl.when(r + 1 < R)
        def _prefetch():
            start_fetch(h1_ref, buf_ref, sem_ref, n, r + 1, jax.lax.rem(r + 1, 2))

        tile = buf_ref[pl.ds(slot * BUF_ROWS, BUF_ROWS), :, :]    # (TH+2, W, Cmp)
        zcol = jnp.zeros((TH + 2, 1, Cmp), dtype)
        tp = jnp.concatenate([zcol, tile, zcol], axis=1)          # (TH+2, W+2, Cmp)

        # K-packed 3x3 conv: 3 matmuls with K = 3*Cmp (dx folded into the contraction).
        acc = jnp.zeros((TH * W, Cp), jnp.float32)
        for dy in range(3):
            lhs = jnp.concatenate(
                [tp[dy:dy + TH, 0:W, :],
                 tp[dy:dy + TH, 1:W + 1, :],
                 tp[dy:dy + TH, 2:W + 2, :]], axis=-1).reshape(TH * W, K3)
            acc = acc + jnp.dot(lhs, w_ref[dy], preferred_element_type=jnp.float32)
        return acc

    def stats_kernel(h1_ref, w_ref, stat_ref, buf_ref, sem_ref):
        z = conv_tile(h1_ref, w_ref, buf_ref, sem_ref)

        @pl.when(pl.program_id(1) == 0)
        def _init():
            stat_ref[...] = jnp.zeros_like(stat_ref)

        stat_ref[0:1, :] += jnp.sum(z, axis=0, keepdims=True)
        stat_ref[1:2, :] += jnp.sum(z * z, axis=0, keepdims=True)

    def apply_kernel(h1_ref, w_ref, scale_ref, shift_ref, o_ref, buf_ref, sem_ref):
        z = conv_tile(h1_ref, w_ref, buf_ref, sem_ref)
        y = z * scale_ref[...] + shift_ref[...]
        y = jnp.where(y > 0, y, SLOPE * y)
        o_ref[...] = y.reshape(TH, W, Cp).astype(o_ref.dtype)

    def apply_res_kernel(h1_ref, w_ref, scale_ref, shift_ref, res_ref, o_ref,
                         buf_ref, sem_ref):
        z = conv_tile(h1_ref, w_ref, buf_ref, sem_ref)
        y = z * scale_ref[...] + shift_ref[...]
        y = jnp.where(y > 0, y, SLOPE * y)
        y = y.reshape(TH, W, Cp) + res_ref[...].astype(jnp.float32)
        o_ref[...] = y.astype(o_ref.dtype)

    return stats_kernel, apply_kernel, apply_res_kernel


# ----------------------------- parameter packing ---------------------------- #

def prepare_params(params, compute_dtype=jnp.bfloat16):
    """Pad / transpose / K-pack the weights once (hoisted out of the jitted forward)."""
    prepped = []
    for layer in params:
        Cmid, C = layer["w1"].shape[0], layer["w1"].shape[1]
        Cp, Cmp = _round_up(C, 128), _round_up(Cmid, 128)

        w1 = jnp.zeros((Cp, Cmp), compute_dtype).at[:C, :Cmid].set(
            jnp.transpose(layer["w1"][:, :, 0, 0], (1, 0)).astype(compute_dtype))
        g1 = jnp.zeros((1, Cmp), jnp.float32).at[0, :Cmid].set(layer["g1"])
        b1 = jnp.zeros((1, Cmp), jnp.float32).at[0, :Cmid].set(layer["b1"])

        # (O, I, 3, 3) -> (ky, kx, I, O), zero-padded, K-packed to (3, 3*Cmp, Cp)
        w2 = jnp.zeros((3, 3, Cmp, Cp), compute_dtype).at[:, :, :Cmid, :C].set(
            jnp.transpose(layer["w2"], (2, 3, 1, 0)).astype(compute_dtype))
        w2 = w2.reshape(3, 3 * Cmp, Cp)
        g2 = jnp.zeros((1, Cp), jnp.float32).at[0, :C].set(layer["g2"])
        b2 = jnp.zeros((1, Cp), jnp.float32).at[0, :C].set(layer["b2"])

        prepped.append(dict(w1=w1, g1=g1, b1=b1, w2=w2, g2=g2, b2=b2))
    return prepped


# ------------------------------ public wrapper ------------------------------ #

@partial(jax.jit, static_argnames=("use_residual", "compute_dtype", "row_tile", "h_tile"))
def residual_block_forward(x_nchw, prepped, use_residual=True,
                           compute_dtype=jnp.bfloat16, row_tile=1024, h_tile=16):
    """Forward pass of ResidualBlock. x_nchw: (N, C, H, W) float32 -> (N, C, H, W) float32."""
    N, C, H, W = x_nchw.shape
    Cp, Cmp = prepped[0]["w1"].shape            # padded channel counts
    M = N * H * W
    TM = _pick_row_tile(M, row_tile)
    TH = _pick_h_tile(H, h_tile)
    R = H // TH
    MSTEPS = M // TM
    NSPLIT = 2 if MSTEPS % 2 == 0 else 1        # megacore split of the 1x1 stats pass
    KSTEPS = MSTEPS // NSPLIT
    vlim = _vmem_limit_bytes()

    # NCHW f32 -> NHWC compute_dtype, channels zero-padded (lane-dense).
    x = jnp.transpose(x_nchw, (0, 2, 3, 1)).astype(compute_dtype)
    x = jnp.pad(x, ((0, 0), (0, 0), (0, 0), (0, Cp - C)))

    cp_mm_stats = pltpu.CompilerParams(dimension_semantics=("parallel", "arbitrary"),
                                       vmem_limit_bytes=vlim)
    cp_mm_apply = pltpu.CompilerParams(dimension_semantics=("parallel",),
                                       vmem_limit_bytes=vlim)
    cp_conv = pltpu.CompilerParams(dimension_semantics=("parallel", "arbitrary"),
                                   vmem_limit_bytes=vlim)

    stats_k, apply_k, apply_res_k = _make_conv3_kernels(TH, W, Cmp, Cp, R, compute_dtype)

    for layer in prepped:
        w1, g1, b1 = layer["w1"], layer["g1"], layer["b1"]
        w2, g2, b2 = layer["w2"], layer["g2"], layer["b2"]

        # ---------- CNNBlock #1: 1x1 conv -> BN -> LeakyReLU ---------- #
        x2d = x.reshape(M, Cp)

        stats1 = pl.pallas_call(
            _mm_stats_kernel,
            grid=(NSPLIT, KSTEPS),
            in_specs=[pl.BlockSpec((TM, Cp), lambda c, k: (c * KSTEPS + k, 0)),
                      pl.BlockSpec((Cp, Cmp), lambda c, k: (0, 0))],
            out_specs=pl.BlockSpec((None, 2, Cmp), lambda c, k: (c, 0, 0)),
            out_shape=jax.ShapeDtypeStruct((NSPLIT, 2, Cmp), jnp.float32),
            compiler_params=cp_mm_stats,
        )(x2d, w1)
        scale1, shift1 = _bn_scale_shift(jnp.sum(stats1, axis=0), g1, b1, M)

        h1 = pl.pallas_call(
            _mm_apply_kernel,
            grid=(MSTEPS,),
            in_specs=[pl.BlockSpec((TM, Cp), lambda i: (i, 0)),
                      pl.BlockSpec((Cp, Cmp), lambda i: (0, 0)),
                      pl.BlockSpec((1, Cmp), lambda i: (0, 0)),
                      pl.BlockSpec((1, Cmp), lambda i: (0, 0))],
            out_specs=pl.BlockSpec((TM, Cmp), lambda i: (i, 0)),
            out_shape=jax.ShapeDtypeStruct((M, Cmp), compute_dtype),
            compiler_params=cp_mm_apply,
        )(x2d, w1, scale1, shift1)

        # ---- CNNBlock #2: 3x3/pad=1 conv -> BN -> LeakyReLU (+ residual) ---- #
        h1n = h1.reshape(N, H, W, Cmp)          # unpadded; halo handled in-kernel

        conv_scratch = [pltpu.VMEM((2 * (TH + 2), W, Cmp), compute_dtype),  # 2 halo slots
                        pltpu.SemaphoreType.DMA((2, 3))]
        w2_spec = pl.BlockSpec((3, 3 * Cmp, Cp), lambda n, r: (0, 0, 0))
        vec_spec = pl.BlockSpec((1, Cp), lambda n, r: (0, 0))
        tile_spec = pl.BlockSpec((None, TH, W, Cp), lambda n, r: (n, r, 0, 0))

        stats2 = pl.pallas_call(
            stats_k,
            grid=(N, R),
            in_specs=[pl.BlockSpec(memory_space=pl.ANY), w2_spec],
            out_specs=pl.BlockSpec((None, 2, Cp), lambda n, r: (n, 0, 0)),
            out_shape=jax.ShapeDtypeStruct((N, 2, Cp), jnp.float32),
            scratch_shapes=conv_scratch,
            compiler_params=cp_conv,
        )(h1n, w2)
        scale2, shift2 = _bn_scale_shift(jnp.sum(stats2, axis=0), g2, b2, M)

        common = dict(grid=(N, R),
                      out_specs=tile_spec,
                      out_shape=jax.ShapeDtypeStruct((N, H, W, Cp), compute_dtype),
                      scratch_shapes=conv_scratch,
                      compiler_params=cp_conv)
        if use_residual:
            x = pl.pallas_call(
                apply_res_k,
                in_specs=[pl.BlockSpec(memory_space=pl.ANY), w2_spec,
                          vec_spec, vec_spec, tile_spec],
                input_output_aliases={4: 0},     # residual buffer reused as output buffer
                **common,
            )(h1n, w2, scale2, shift2, x)
        else:
            x = pl.pallas_call(
                apply_k,
                in_specs=[pl.BlockSpec(memory_space=pl.ANY), w2_spec,
                          vec_spec, vec_spec],
                **common,
            )(h1n, w2, scale2, shift2)

    # drop channel padding, NHWC -> NCHW, back to f32
    return jnp.transpose(x[..., :C].astype(jnp.float32), (0, 3, 1, 2))


# ------------------------------- parameters -------------------------------- #

def init_params(key, channels, num_repeats):
    """Deterministic synthetic parameters with the same shapes as the PyTorch module."""
    params = []
    cmid = channels // 2
    for _ in range(num_repeats):
        key, k1, k2 = jax.random.split(key, 3)
        params.append(dict(
            w1=jax.random.normal(k1, (cmid, channels, 1, 1), jnp.float32) * 0.1,
            g1=jnp.ones((cmid,), jnp.float32),      # BatchNorm2d weight default
            b1=jnp.zeros((cmid,), jnp.float32),     # BatchNorm2d bias default
            w2=jax.random.normal(k2, (channels, cmid, 3, 3), jnp.float32) * 0.1,
            g2=jnp.ones((channels,), jnp.float32),
            b2=jnp.zeros((channels,), jnp.float32),
        ))
    return params


# ------------------------- pure-JAX reference check ------------------------ #

def _ref_forward(x, params, use_residual=True, compute_dtype=jnp.float32):
    """Reference mirroring the kernel's storage precision (compute_dtype activations)."""
    dn = ("NCHW", "OIHW", "NCHW")

    def cast(v):
        return v.astype(compute_dtype).astype(jnp.float32)

    def conv(inp, w, padding):
        return jax.lax.conv_general_dilated(
            inp.astype(compute_dtype), w.astype(compute_dtype), (1, 1), padding,
            dimension_numbers=dn, preferred_element_type=jnp.float32)

    def bn_leaky(z, g, b):
        mean = z.mean(axis=(0, 2, 3), keepdims=True)
        var = ((z - mean) ** 2).mean(axis=(0, 2, 3), keepdims=True)
        y = (z - mean) * jax.lax.rsqrt(var + EPS)
        y = y * g.reshape(1, -1, 1, 1) + b.reshape(1, -1, 1, 1)
        return jnp.where(y > 0, y, SLOPE * y)

    x = cast(x)                          # kernel stores activations in compute_dtype
    for layer in params:
        h = bn_leaky(conv(x, layer["w1"], "VALID"), layer["g1"], layer["b1"])
        h = cast(h)
        h = bn_leaky(conv(h, layer["w2"], ((1, 1), (1, 1))), layer["g2"], layer["b2"])
        x = cast(x + h) if use_residual else cast(h)
    return x


# ----------------------------------- main ----------------------------------- #

if __name__ == "__main__":
    key = jax.random.PRNGKey(0)
    kx, kp = jax.random.split(key)

    N, C, H, W = 2, 4, 16, 16
    num_repeats = 2

    x = jax.random.normal(kx, (N, C, H, W), jnp.float32)
    params = init_params(kp, C, num_repeats)

    # f32 compute path (exact module semantics); small tiles -> multi-step grids,
    # exercises the double-buffered halo pipeline (R = 2) and the 2-way stats split.
    pf32 = prepare_params(params, compute_dtype=jnp.float32)
    ref_f32 = _ref_forward(x, params, use_residual=True, compute_dtype=jnp.float32)

    out_f32 = jax.block_until_ready(residual_block_forward(
        x, pf32, use_residual=True, compute_dtype=jnp.float32, row_tile=128, h_tile=8))
    assert out_f32.shape == (N, C, H, W)
    assert jnp.allclose(out_f32, ref_f32, atol=1e-3, rtol=1e-3), "f32 path mismatch"

    # f32 path with a single row-tile per image (exercises the R == 1 boundary handling).
    out_f32b = jax.block_until_ready(residual_block_forward(
        x, pf32, use_residual=True, compute_dtype=jnp.float32, row_tile=512, h_tile=16))
    assert jnp.allclose(out_f32b, ref_f32, atol=1e-3, rtol=1e-3), "f32 single-tile mismatch"

    # bf16 MXU path (activations stored bf16 between layers; reference mirrors this).
    pbf16 = prepare_params(params, compute_dtype=jnp.bfloat16)
    out_bf16 = jax.block_until_ready(residual_block_forward(
        x, pbf16, use_residual=True, compute_dtype=jnp.bfloat16, row_tile=128, h_tile=8))
    ref_bf16 = _ref_forward(x, params, use_residual=True, compute_dtype=jnp.bfloat16)
    assert jnp.allclose(out_bf16, ref_bf16, atol=3e-2, rtol=3e-2), "bf16 path mismatch"

    # non-residual variant ('S' blocks of YOLOv3 use use_residual=False)
    out_nr = jax.block_until_ready(residual_block_forward(
        x, pf32, use_residual=False, compute_dtype=jnp.float32, row_tile=128, h_tile=8))
    ref_nr = _ref_forward(x, params, use_residual=False, compute_dtype=jnp.float32)
    assert jnp.allclose(out_nr, ref_nr, atol=1e-3, rtol=1e-3), "non-residual path mismatch"

    print("KERNEL_OK")
</pallas_src>

<mosaic_0001>
module attributes {stable_mosaic.version = 11 : i64} {
  func.func @_mm_stats_kernel(%arg0: i32, %arg1: i32, %arg2: memref<128x128xf32, #tpu.memory_space<vmem>>, %arg3: memref<128x128xf32, #tpu.memory_space<vmem>>, %arg4: memref<1x2x128xf32, #tpu.memory_space<vmem>>) attributes {dimension_semantics = [#tpu.dimension_semantics<parallel>, #tpu.dimension_semantics<arbitrary>], iteration_bounds = array<i64: 2, 2>, scalar_prefetch = 0 : i64, scratch_operands = 0 : i64, tpu.core_type = #tpu.core_type<tc>, window_params = [{transform_indices = @transform_0, window_bounds = array<i64: 128, 128>}, {pipeline_mode = #tpu.pipeline_mode<synchronous>, transform_indices = @transform_1, window_bounds = array<i64: 128, 128>}, {transform_indices = @transform_2, window_bounds = array<i64: 1, 2, 128>}]} {
    %c0 = arith.constant 0 : index
    %c0_0 = arith.constant 0 : index
    %0 = vector.load %arg2[%c0, %c0_0] : memref<128x128xf32, #tpu.memory_space<vmem>>, vector<128x128xf32>
    %c0_1 = arith.constant 0 : index
    %c0_2 = arith.constant 0 : index
    %1 = vector.load %arg3[%c0_1, %c0_2] : memref<128x128xf32, #tpu.memory_space<vmem>>, vector<128x128xf32>
    %cst = arith.constant dense<0.000000e+00> : vector<128x128xf32>
    %2 = tpu.matmul %0, %1, %cst {dimension_numbers = #tpu.dot_dimension_numbers<[1], [0], [0], [1], [0, 0, 1, 1], [], []>} : vector<128x128xf32>, vector<128x128xf32>, vector<128x128xf32> -> vector<128x128xf32>
    %c0_i32 = arith.constant 0 : i32
    %3 = arith.cmpi eq, %arg1, %c0_i32 : i32
    %4 = arith.extui %3 : i1 to i32
    %c0_i32_3 = arith.constant 0 : i32
    %5 = arith.cmpi ne, %4, %c0_i32_3 : i32
    scf.if %5 {
      %cst_17 = arith.constant 0.000000e+00 : f32
      %23 = vector.broadcast %cst_17 : f32 to vector<2x128xf32>
      %c0_18 = arith.constant 0 : index
      %c0_19 = arith.constant 0 : index
      %c0_20 = arith.constant 0 : index
      %24 = vector.load %arg4[%c0_18, %c0_19, %c0_20] : memref<1x2x128xf32, #tpu.memory_space<vmem>>, vector<1x2x128xf32>
      %25 = vector.shape_cast %24 : vector<1x2x128xf32> to vector<2x128xf32>
      %26 = vector.shape_cast %23 : vector<2x128xf32> to vector<1x2x128xf32>
      tpu.vector_store %arg4[%c0_18, %c0_19, %c0_20], %26 {strides = array<i32>} : memref<1x2x128xf32, #tpu.memory_space<vmem>>, vector<1x2x128xf32>,
    } else {
    }
    %c0_4 = arith.constant 0 : index
    %c0_5 = arith.constant 0 : index
    %c0_6 = arith.constant 0 : index
    %6 = vector.load %arg4[%c0_4, %c0_5, %c0_6] : memref<1x2x128xf32, #tpu.memory_space<vmem>>, vector<1x1x128xf32>
    %7 = vector.shape_cast %6 : vector<1x1x128xf32> to vector<1x128xf32>
    %cst_7 = arith.constant dense<0.000000e+00> : vector<128xf32>
    %8 = vector.multi_reduction <add>, %2, %cst_7 [0] : vector<128x128xf32> to vector<128xf32>
    %9 = vector.shape_cast %8 : vector<128xf32> to vector<1x128xf32>
    %10 = arith.addf %7, %9 : vector<1x128xf32>
    %c0_8 = arith.constant 0 : index
    %c0_9 = arith.constant 0 : index
    %c0_10 = arith.constant 0 : index
    %11 = vector.load %arg4[%c0_8, %c0_9, %c0_10] : memref<1x2x128xf32, #tpu.memory_space<vmem>>, vector<1x1x128xf32>
    %12 = vector.shape_cast %11 : vector<1x1x128xf32> to vector<1x128xf32>
    %13 = vector.shape_cast %10 : vector<1x128xf32> to vector<1x1x128xf32>
    tpu.vector_store %arg4[%c0_8, %c0_9, %c0_10], %13 {strides = array<i32>} : memref<1x2x128xf32, #tpu.memory_space<vmem>>, vector<1x1x128xf32>,
    %c0_11 = arith.constant 0 : index
    %c1 = arith.constant 1 : index
    %c0_12 = arith.constant 0 : index
    %14 = vector.load %arg4[%c0_11, %c1, %c0_12] : memref<1x2x128xf32, #tpu.memory_space<vmem>>, vector<1x1x128xf32>
    %15 = vector.shape_cast %14 : vector<1x1x128xf32> to vector<1x128xf32>
    %16 = arith.mulf %2, %2 : vector<128x128xf32>
    %cst_13 = arith.constant dense<0.000000e+00> : vector<128xf32>
    %17 = vector.multi_reduction <add>, %16, %cst_13 [0] : vector<128x128xf32> to vector<128xf32>
    %18 = vector.shape_cast %17 : vector<128xf32> to vector<1x128xf32>
    %19 = arith.addf %15, %18 : vector<1x128xf32>
    %c0_14 = arith.constant 0 : index
    %c1_15 = arith.constant 1 : index
    %c0_16 = arith.constant 0 : index
    %20 = vector.load %arg4[%c0_14, %c1_15, %c0_16] : memref<1x2x128xf32, #tpu.memory_space<vmem>>, vector<1x1x128xf32>
    %21 = vector.shape_cast %20 : vector<1x1x128xf32> to vector<1x128xf32>
    %22 = vector.shape_cast %19 : vector<1x128xf32> to vector<1x1x128xf32>
    tpu.vector_store %arg4[%c0_14, %c1_15, %c0_16], %22 {strides = array<i32>} : memref<1x2x128xf32, #tpu.memory_space<vmem>>, vector<1x1x128xf32>,
    return
  }
  func.func @transform_0(%arg0: i32, %arg1: i32) -> (i32, i32) {
    %c2_i32 = arith.constant 2 : i32
    %0 = arith.muli %arg0, %c2_i32 : i32
    %1 = arith.addi %0, %arg1 : i32
    %c0_i32 = arith.constant 0 : i32
    %c0_i32_0 = arith.constant 0 : i32
    return %1, %c0_i32 : i32, i32
  }
  func.func @transform_1(%arg0: i32, %arg1: i32) -> (i32, i32) {
    %c0_i32 = arith.constant 0 : i32
    %c0_i32_0 = arith.constant 0 : i32
    %c0_i32_1 = arith.constant 0 : i32
    return %c0_i32, %c0_i32_0 : i32, i32
  }
  func.func @transform_2(%arg0: i32, %arg1: i32) -> (i32, i32, i32) {
    %c0_i32 = arith.constant 0 : i32
    %c0_i32_0 = arith.constant 0 : i32
    %c0_i32_1 = arith.constant 0 : i32
    return %arg0, %c0_i32, %c0_i32_0 : i32, i32, i32
  }
}

module attributes {stable_mosaic.version = 11 : i64} {
  func.func @_mm_apply_kernel(%arg0: i32, %arg1: memref<128x128xf32, #tpu.memory_space<vmem>>, %arg2: memref<128x128xf32, #tpu.memory_space<vmem>>, %arg3: memref<1x128xf32, #tpu.memory_space<vmem>>, %arg4: memref<1x128xf32, #tpu.memory_space<vmem>>, %arg5: memref<128x128xf32, #tpu.memory_space<vmem>>) attributes {dimension_semantics = [#tpu.dimension_semantics<parallel>], iteration_bounds = array<i64: 4>, scalar_prefetch = 0 : i64, scratch_operands = 0 : i64, tpu.core_type = #tpu.core_type<tc>, window_params = [{transform_indices = @transform_0, window_bounds = array<i64: 128, 128>}, {pipeline_mode = #tpu.pipeline_mode<synchronous>, transform_indices = @transform_1, window_bounds = array<i64: 128, 128>}, {pipeline_mode = #tpu.pipeline_mode<synchronous>, transform_indices = @transform_2, window_bounds = array<i64: 1, 128>}, {pipeline_mode = #tpu.pipeline_mode<synchronous>, transform_indices = @transform_3, window_bounds = array<i64: 1, 128>}, {transform_indices = @transform_4, window_bounds = array<i64: 128, 128>}]} {
    %c0 = arith.constant 0 : index
    %c0_0 = arith.constant 0 : index
    %0 = vector.load %arg1[%c0, %c0_0] : memref<128x128xf32, #tpu.memory_space<vmem>>, vector<128x128xf32>
    %c0_1 = arith.constant 0 : index
    %c0_2 = arith.constant 0 : index
    %1 = vector.load %arg2[%c0_1, %c0_2] : memref<128x128xf32, #tpu.memory_space<vmem>>, vector<128x128xf32>
    %cst = arith.constant dense<0.000000e+00> : vector<128x128xf32>
    %2 = tpu.matmul %0, %1, %cst {dimension_numbers = #tpu.dot_dimension_numbers<[1], [0], [0], [1], [0, 0, 1, 1], [], []>} : vector<128x128xf32>, vector<128x128xf32>, vector<128x128xf32> -> vector<128x128xf32>
    %c0_3 = arith.constant 0 : index
    %c0_4 = arith.constant 0 : index
    %3 = vector.load %arg3[%c0_3, %c0_4] : memref<1x128xf32, #tpu.memory_space<vmem>>, vector<1x128xf32>
    %4 = vector.broadcast %3 : vector<1x128xf32> to vector<128x128xf32>
    %5 = arith.mulf %2, %4 : vector<128x128xf32>
    %c0_5 = arith.constant 0 : index
    %c0_6 = arith.constant 0 : index
    %6 = vector.load %arg4[%c0_5, %c0_6] : memref<1x128xf32, #tpu.memory_space<vmem>>, vector<1x128xf32>
    %7 = vector.broadcast %6 : vector<1x128xf32> to vector<128x128xf32>
    %8 = arith.addf %5, %7 : vector<128x128xf32>
    %cst_7 = arith.constant 0.000000e+00 : f32
    %9 = vector.broadcast %cst_7 : f32 to vector<128x128xf32>
    %10 = arith.cmpf ogt, %8, %9 : vector<128x128xf32>
    %cst_8 = arith.constant 1.000000e-01 : f32
    %11 = vector.broadcast %cst_8 : f32 to vector<128x128xf32>
    %12 = arith.mulf %11, %8 : vector<128x128xf32>
    %13 = arith.select %10, %8, %12 : vector<128x128xi1>, vector<128x128xf32>
    %c0_9 = arith.constant 0 : index
    %c0_10 = arith.constant 0 : index
    %14 = vector.load %arg5[%c0_9, %c0_10] : memref<128x128xf32, #tpu.memory_space<vmem>>, vector<128x128xf32>
    tpu.vector_store %arg5[%c0_9, %c0_10], %13 {strides = array<i32>} : memref<128x128xf32, #tpu.memory_space<vmem>>, vector<128x128xf32>,
    return
  }
  func.func @transform_0(%arg0: i32) -> (i32, i32) {
    %c0_i32 = arith.constant 0 : i32
    %c0_i32_0 = arith.constant 0 : i32
    return %arg0, %c0_i32 : i32, i32
  }
  func.func @transform_1(%arg0: i32) -> (i32, i32) {
    %c0_i32 = arith.constant 0 : i32
    %c0_i32_0 = arith.constant 0 : i32
    %c0_i32_1 = arith.constant 0 : i32
    return %c0_i32, %c0_i32_0 : i32, i32
  }
  func.func @transform_2(%arg0: i32) -> (i32, i32) {
    %c0_i32 = arith.constant 0 : i32
    %c0_i32_0 = arith.constant 0 : i32
    %c0_i32_1 = arith.constant 0 : i32
    return %c0_i32, %c0_i32_0 : i32, i32
  }
  func.func @transform_3(%arg0: i32) -> (i32, i32) {
    %c0_i32 = arith.constant 0 : i32
    %c0_i32_0 = arith.constant 0 : i32
    %c0_i32_1 = arith.constant 0 : i32
    return %c0_i32, %c0_i32_0 : i32, i32
  }
  func.func @transform_4(%arg0: i32) -> (i32, i32) {
    %c0_i32 = arith.constant 0 : i32
    %c0_i32_0 = arith.constant 0 : i32
    return %arg0, %c0_i32 : i32, i32
  }
}

module attributes {stable_mosaic.version = 11 : i64} {
  func.func @stats_kernel(%arg0: i32, %arg1: i32, %arg2: memref<2x16x16x128xf32, #tpu.memory_space<any>>, %arg3: memref<3x384x128xf32, #tpu.memory_space<vmem>>, %arg4: memref<1x2x128xf32, #tpu.memory_space<vmem>>, %arg5: memref<20x16x128xf32, #tpu.memory_space<vmem>>, %arg6: memref<2x3x!tpu.dma_semaphore, #tpu.memory_space<semaphore_mem>>) attributes {dimension_semantics = [#tpu.dimension_semantics<parallel>, #tpu.dimension_semantics<arbitrary>], iteration_bounds = array<i64: 2, 2>, scalar_prefetch = 0 : i64, scratch_operands = 2 : i64, tpu.core_type = #tpu.core_type<tc>, window_params = [{}, {pipeline_mode = #tpu.pipeline_mode<synchronous>, transform_indices = @transform_1, window_bounds = array<i64: 3, 384, 128>}, {transform_indices = @transform_2, window_bounds = array<i64: 1, 2, 128>}]} {
    %c2_i32 = arith.constant 2 : i32
    %0 = arith.remsi %arg1, %c2_i32 : i32
    %c0_i32 = arith.constant 0 : i32
    %1 = arith.cmpi eq, %arg1, %c0_i32 : i32
    %2 = arith.extui %1 : i1 to i32
    %c0_i32_0 = arith.constant 0 : i32
    %3 = arith.cmpi ne, %2, %c0_i32_0 : i32
    scf.if %3 {
      %c8_i32 = arith.constant 8 : i32
      %78 = arith.muli %arg1, %c8_i32 : i32
      %c10_i32_46 = arith.constant 10 : i32
      %79 = arith.muli %0, %c10_i32_46 : i32
      %c1_i32_47 = arith.constant 1 : i32
      %80 = arith.addi %79, %c1_i32_47 : i32
      %c0_i32_48 = arith.constant 0 : i32
      %c0_i32_49 = arith.constant 0 : i32
      %c0_i32_50 = arith.constant 0 : i32
      %81 = tpu.memref_slice %arg2[%arg0, %78, %c0_i32_49, %c0_i32_50] : memref<2x16x16x128xf32, #tpu.memory_space<any>> -> memref<1x8x16x128xf32, #tpu.memory_space<any>>
      %82 = tpu.memref_squeeze %81 : memref<1x8x16x128xf32, #tpu.memory_space<any>> -> memref<8x16x128xf32, #tpu.memory_space<any>>
      %c0_i32_51 = arith.constant 0 : i32
      %c0_i32_52 = arith.constant 0 : i32
      %83 = tpu.memref_slice %arg5[%80, %c0_i32_51, %c0_i32_52] : memref<20x16x128xf32, #tpu.memory_space<vmem>> -> memref<8x16x128xf32, #tpu.memory_space<vmem>>
      %84 = tpu.memref_slice %arg6[%0, %c0_i32_48] : memref<2x3x!tpu.dma_semaphore, #tpu.memory_space<semaphore_mem>> -> memref<1x1x!tpu.dma_semaphore, #tpu.memory_space<semaphore_mem>>
      %85 = tpu.memref_squeeze %84 : memref<1x1x!tpu.dma_semaphore, #tpu.memory_space<semaphore_mem>> -> memref<!tpu.dma_semaphore, #tpu.memory_space<semaphore_mem>>
      tpu.enqueue_dma source(%82 : memref<8x16x128xf32, #tpu.memory_space<any>>) target(%83 : memref<8x16x128xf32, #tpu.memory_space<vmem>>) target_semaphore(%85 : memref<!tpu.dma_semaphore, #tpu.memory_space<semaphore_mem>>)
      %c0_i32_53 = arith.constant 0 : i32
      %86 = arith.cmpi sgt, %arg1, %c0_i32_53 : i32
      %87 = arith.extui %86 : i1 to i32
      %c0_i32_54 = arith.constant 0 : i32
      %88 = arith.cmpi ne, %87, %c0_i32_54 : i32
      scf.if %88 {
        %c1_i32_57 = arith.constant 1 : i32
        %92 = arith.subi %78, %c1_i32_57 : i32
        %c1_i32_58 = arith.constant 1 : i32
        %c0_i32_59 = arith.constant 0 : i32
        %c0_i32_60 = arith.constant 0 : i32
        %93 = tpu.memref_slice %arg2[%arg0, %92, %c0_i32_59, %c0_i32_60] : memref<2x16x16x128xf32, #tpu.memory_space<any>> -> memref<1x1x16x128xf32, #tpu.memory_space<any>>
        %94 = tpu.memref_squeeze %93 : memref<1x1x16x128xf32, #tpu.memory_space<any>> -> memref<1x16x128xf32, #tpu.memory_space<any>>
        %c0_i32_61 = arith.constant 0 : i32
        %c0_i32_62 = arith.constant 0 : i32
        %95 = tpu.memref_slice %arg5[%79, %c0_i32_61, %c0_i32_62] : memref<20x16x128xf32, #tpu.memory_space<vmem>> -> memref<1x16x128xf32, #tpu.memory_space<vmem>>
        %96 = tpu.memref_slice %arg6[%0, %c1_i32_58] : memref<2x3x!tpu.dma_semaphore, #tpu.memory_space<semaphore_mem>> -> memref<1x1x!tpu.dma_semaphore, #tpu.memory_space<semaphore_mem>>
        %97 = tpu.memref_squeeze %96 : memref<1x1x!tpu.dma_semaphore, #tpu.memory_space<semaphore_mem>> -> memref<!tpu.dma_semaphore, #tpu.memory_space<semaphore_mem>>
        tpu.enqueue_dma source(%94 : memref<1x16x128xf32, #tpu.memory_space<any>>) target(%95 : memref<1x16x128xf32, #tpu.memory_space<vmem>>) target_semaphore(%97 : memref<!tpu.dma_semaphore, #tpu.memory_space<semaphore_mem>>)
      } else {
      }
      %c1_i32_55 = arith.constant 1 : i32
      %89 = arith.cmpi slt, %arg1, %c1_i32_55 : i32
      %90 = arith.extui %89 : i1 to i32
      %c0_i32_56 = arith.constant 0 : i32
      %91 = arith.cmpi ne, %90, %c0_i32_56 : i32
      scf.if %91 {
        %c8_i32_57 = arith.constant 8 : i32
        %92 = arith.addi %78, %c8_i32_57 : i32
        %c8_i32_58 = arith.constant 8 : i32
        %93 = arith.addi %79, %c8_i32_58 : i32
        %c1_i32_59 = arith.constant 1 : i32
        %94 = arith.addi %93, %c1_i32_59 : i32
        %c2_i32_60 = arith.constant 2 : i32
        %c0_i32_61 = arith.constant 0 : i32
        %c0_i32_62 = arith.constant 0 : i32
        %95 = tpu.memref_slice %arg2[%arg0, %92, %c0_i32_61, %c0_i32_62] : memref<2x16x16x128xf32, #tpu.memory_space<any>> -> memref<1x1x16x128xf32, #tpu.memory_space<any>>
        %96 = tpu.memref_squeeze %95 : memref<1x1x16x128xf32, #tpu.memory_space<any>> -> memref<1x16x128xf32, #tpu.memory_space<any>>
        %c0_i32_63 = arith.constant 0 : i32
        %c0_i32_64 = arith.constant 0 : i32
        %97 = tpu.memref_slice %arg5[%94, %c0_i32_63, %c0_i32_64] : memref<20x16x128xf32, #tpu.memory_space<vmem>> -> memref<1x16x128xf32, #tpu.memory_space<vmem>>
        %98 = tpu.memref_slice %arg6[%0, %c2_i32_60] : memref<2x3x!tpu.dma_semaphore, #tpu.memory_space<semaphore_mem>> -> memref<1x1x!tpu.dma_semaphore, #tpu.memory_space<semaphore_mem>>
        %99 = tpu.memref_squeeze %98 : memref<1x1x!tpu.dma_semaphore, #tpu.memory_space<semaphore_mem>> -> memref<!tpu.dma_semaphore, #tpu.memory_space<semaphore_mem>>
        tpu.enqueue_dma source(%96 : memref<1x16x128xf32, #tpu.memory_space<any>>) target(%97 : memref<1x16x128xf32, #tpu.memory_space<vmem>>) target_semaphore(%99 : memref<!tpu.dma_semaphore, #tpu.memory_space<semaphore_mem>>)
      } else {
      }
    } else {
    }
    %c0_i32_1 = arith.constant 0 : i32
    %c0_i32_2 = arith.constant 0 : i32
    %c0_i32_3 = arith.constant 0 : i32
    %c0_i32_4 = arith.constant 0 : i32
    %4 = tpu.memref_slice %arg2[%arg0, %c0_i32_2, %c0_i32_3, %c0_i32_4] : memref<2x16x16x128xf32, #tpu.memory_space<any>> -> memref<1x8x16x128xf32, #tpu.memory_space<any>>
    %5 = tpu.memref_squeeze %4 : memref<1x8x16x128xf32, #tpu.memory_space<any>> -> memref<8x16x128xf32, #tpu.memory_space<any>>
    %c1_i32 = arith.constant 1 : i32
    %c0_i32_5 = arith.constant 0 : i32
    %c0_i32_6 = arith.constant 0 : i32
    %6 = tpu.memref_slice %arg5[%c1_i32, %c0_i32_5, %c0_i32_6] : memref<20x16x128xf32, #tpu.memory_space<vmem>> -> memref<8x16x128xf32, #tpu.memory_space<vmem>>
    %7 = tpu.memref_slice %arg6[%0, %c0_i32_1] : memref<2x3x!tpu.dma_semaphore, #tpu.memory_space<semaphore_mem>> -> memref<1x1x!tpu.dma_semaphore, #tpu.memory_space<semaphore_mem>>
    %8 = tpu.memref_squeeze %7 : memref<1x1x!tpu.dma_semaphore, #tpu.memory_space<semaphore_mem>> -> memref<!tpu.dma_semaphore, #tpu.memory_space<semaphore_mem>>
    tpu.wait_dma2 semaphore(%8 : memref<!tpu.dma_semaphore, #tpu.memory_space<semaphore_mem>>) src(%5 : memref<8x16x128xf32, #tpu.memory_space<any>>) dst(%6 : memref<8x16x128xf32, #tpu.memory_space<vmem>>)
    %c0_i32_7 = arith.constant 0 : i32
    %9 = arith.cmpi sgt, %arg1, %c0_i32_7 : i32
    %10 = arith.extui %9 : i1 to i32
    %c0_i32_8 = arith.constant 0 : i32
    %11 = arith.cmpi ne, %10, %c0_i32_8 : i32
    scf.if %11 {
      %c1_i32_46 = arith.constant 1 : i32
      %c0_i32_47 = arith.constant 0 : i32
      %c0_i32_48 = arith.constant 0 : i32
      %c0_i32_49 = arith.constant 0 : i32
      %78 = tpu.memref_slice %arg2[%arg0, %c0_i32_47, %c0_i32_48, %c0_i32_49] : memref<2x16x16x128xf32, #tpu.memory_space<any>> -> memref<1x1x16x128xf32, #tpu.memory_space<any>>
      %79 = tpu.memref_squeeze %78 : memref<1x1x16x128xf32, #tpu.memory_space<any>> -> memref<1x16x128xf32, #tpu.memory_space<any>>
      %c0_i32_50 = arith.constant 0 : i32
      %c0_i32_51 = arith.constant 0 : i32
      %c0_i32_52 = arith.constant 0 : i32
      %80 = tpu.memref_slice %arg5[%c0_i32_50, %c0_i32_51, %c0_i32_52] : memref<20x16x128xf32, #tpu.memory_space<vmem>> -> memref<1x16x128xf32, #tpu.memory_space<vmem>>
      %81 = tpu.memref_slice %arg6[%0, %c1_i32_46] : memref<2x3x!tpu.dma_semaphore, #tpu.memory_space<semaphore_mem>> -> memref<1x1x!tpu.dma_semaphore, #tpu.memory_space<semaphore_mem>>
      %82 = tpu.memref_squeeze %81 : memref<1x1x!tpu.dma_semaphore, #tpu.memory_space<semaphore_mem>> -> memref<!tpu.dma_semaphore, #tpu.memory_space<semaphore_mem>>
      tpu.wait_dma2 semaphore(%82 : memref<!tpu.dma_semaphore, #tpu.memory_space<semaphore_mem>>) src(%79 : memref<1x16x128xf32, #tpu.memory_space<any>>) dst(%80 : memref<1x16x128xf32, #tpu.memory_space<vmem>>)
    } else {
    }
    %c1_i32_9 = arith.constant 1 : i32
    %12 = arith.cmpi slt, %arg1, %c1_i32_9 : i32
    %13 = arith.extui %12 : i1 to i32
    %c0_i32_10 = arith.constant 0 : i32
    %14 = arith.cmpi ne, %13, %c0_i32_10 : i32
    scf.if %14 {
      %c2_i32_46 = arith.constant 2 : i32
      %c0_i32_47 = arith.constant 0 : i32
      %c0_i32_48 = arith.constant 0 : i32
      %c0_i32_49 = arith.constant 0 : i32
      %78 = tpu.memref_slice %arg2[%arg0, %c0_i32_47, %c0_i32_48, %c0_i32_49] : memref<2x16x16x128xf32, #tpu.memory_space<any>> -> memref<1x1x16x128xf32, #tpu.memory_space<any>>
      %79 = tpu.memref_squeeze %78 : memref<1x1x16x128xf32, #tpu.memory_space<any>> -> memref<1x16x128xf32, #tpu.memory_space<any>>
      %c9_i32 = arith.constant 9 : i32
      %c0_i32_50 = arith.constant 0 : i32
      %c0_i32_51 = arith.constant 0 : i32
      %80 = tpu.memref_slice %arg5[%c9_i32, %c0_i32_50, %c0_i32_51] : memref<20x16x128xf32, #tpu.memory_space<vmem>> -> memref<1x16x128xf32, #tpu.memory_space<vmem>>
      %81 = tpu.memref_slice %arg6[%0, %c2_i32_46] : memref<2x3x!tpu.dma_semaphore, #tpu.memory_space<semaphore_mem>> -> memref<1x1x!tpu.dma_semaphore, #tpu.memory_space<semaphore_mem>>
      %82 = tpu.memref_squeeze %81 : memref<1x1x!tpu.dma_semaphore, #tpu.memory_space<semaphore_mem>> -> memref<!tpu.dma_semaphore, #tpu.memory_space<semaphore_mem>>
      tpu.wait_dma2 semaphore(%82 : memref<!tpu.dma_semaphore, #tpu.memory_space<semaphore_mem>>) src(%79 : memref<1x16x128xf32, #tpu.memory_space<any>>) dst(%80 : memref<1x16x128xf32, #tpu.memory_space<vmem>>)
    } else {
    }
    %c0_i32_11 = arith.constant 0 : i32
    %15 = arith.cmpi eq, %arg1, %c0_i32_11 : i32
    %16 = arith.extui %15 : i1 to i32
    %c0_i32_12 = arith.constant 0 : i32
    %17 = arith.cmpi ne, %16, %c0_i32_12 : i32
    scf.if %17 {
      %cst_46 = arith.constant 0.000000e+00 : f32
      %78 = vector.broadcast %cst_46 : f32 to vector<1x16x128xf32>
      %c0_47 = arith.constant 0 : index
      %c0_48 = arith.constant 0 : index
      %c0_49 = arith.constant 0 : index
      %79 = vector.load %arg5[%c0_47, %c0_48, %c0_49] : memref<20x16x128xf32, #tpu.memory_space<vmem>>, vector<1x16x128xf32>
      tpu.vector_store %arg5[%c0_47, %c0_48, %c0_49], %78 {strides = array<i32>} : memref<20x16x128xf32, #tpu.memory_space<vmem>>, vector<1x16x128xf32>,
    } else {
    }
    %c1_i32_13 = arith.constant 1 : i32
    %18 = arith.cmpi eq, %arg1, %c1_i32_13 : i32
    %19 = arith.extui %18 : i1 to i32
    %c0_i32_14 = arith.constant 0 : i32
    %20 = arith.cmpi ne, %19, %c0_i32_14 : i32
    scf.if %20 {
      %cst_46 = arith.constant 0.000000e+00 : f32
      %78 = vector.broadcast %cst_46 : f32 to vector<1x16x128xf32>
      %c19 = arith.constant 19 : index
      %c0_47 = arith.constant 0 : index
      %c0_48 = arith.constant 0 : index
      %79 = vector.load %arg5[%c19, %c0_47, %c0_48] : memref<20x16x128xf32, #tpu.memory_space<vmem>>, vector<1x16x128xf32>
      tpu.vector_store %arg5[%c19, %c0_47, %c0_48], %78 {strides = array<i32>} : memref<20x16x128xf32, #tpu.memory_space<vmem>>, vector<1x16x128xf32>,
    } else {
    }
    %c1_i32_15 = arith.constant 1 : i32
    %21 = arith.addi %arg1, %c1_i32_15 : i32
    %c2_i32_16 = arith.constant 2 : i32
    %22 = arith.cmpi slt, %21, %c2_i32_16 : i32
    %23 = arith.extui %22 : i1 to i32
    %c0_i32_17 = arith.constant 0 : i32
    %24 = arith.cmpi ne, %23, %c0_i32_17 : i32
    scf.if %24 {
      %c1_i32_46 = arith.constant 1 : i32
      %78 = arith.addi %arg1, %c1_i32_46 : i32
      %c1_i32_47 = arith.constant 1 : i32
      %79 = arith.addi %arg1, %c1_i32_47 : i32
      %c2_i32_48 = arith.constant 2 : i32
      %80 = arith.remsi %79, %c2_i32_48 : i32
      %c8_i32 = arith.constant 8 : i32
      %81 = arith.muli %78, %c8_i32 : i32
      %c10_i32_49 = arith.constant 10 : i32
      %82 = arith.muli %80, %c10_i32_49 : i32
      %c1_i32_50 = arith.constant 1 : i32
      %83 = arith.addi %82, %c1_i32_50 : i32
      %c0_i32_51 = arith.constant 0 : i32
      %c0_i32_52 = arith.constant 0 : i32
      %c0_i32_53 = arith.constant 0 : i32
      %84 = tpu.memref_slice %arg2[%arg0, %81, %c0_i32_52, %c0_i32_53] : memref<2x16x16x128xf32, #tpu.memory_space<any>> -> memref<1x8x16x128xf32, #tpu.memory_space<any>>
      %85 = tpu.memref_squeeze %84 : memref<1x8x16x128xf32, #tpu.memory_space<any>> -> memref<8x16x128xf32, #tpu.memory_space<any>>
      %c0_i32_54 = arith.constant 0 : i32
      %c0_i32_55 = arith.constant 0 : i32
      %86 = tpu.memref_slice %arg5[%83, %c0_i32_54, %c0_i32_55] : memref<20x16x128xf32, #tpu.memory_space<vmem>> -> memref<8x16x128xf32, #tpu.memory_space<vmem>>
      %87 = tpu.memref_slice %arg6[%80, %c0_i32_51] : memref<2x3x!tpu.dma_semaphore, #tpu.memory_space<semaphore_mem>> -> memref<1x1x!tpu.dma_semaphore, #tpu.memory_space<semaphore_mem>>
      %88 = tpu.memref_squeeze %87 : memref<1x1x!tpu.dma_semaphore, #tpu.memory_space<semaphore_mem>> -> memref<!tpu.dma_semaphore, #tpu.memory_space<semaphore_mem>>
      tpu.enqueue_dma source(%85 : memref<8x16x128xf32, #tpu.memory_space<any>>) target(%86 : memref<8x16x128xf32, #tpu.memory_space<vmem>>) target_semaphore(%88 : memref<!tpu.dma_semaphore, #tpu.memory_space<semaphore_mem>>)
      %c0_i32_56 = arith.constant 0 : i32
      %89 = arith.cmpi sgt, %78, %c0_i32_56 : i32
      %90 = arith.extui %89 : i1 to i32
      %c0_i32_57 = arith.constant 0 : i32
      %91 = arith.cmpi ne, %90, %c0_i32_57 : i32
      scf.if %91 {
        %c1_i32_60 = arith.constant 1 : i32
        %95 = arith.subi %81, %c1_i32_60 : i32
        %c1_i32_61 = arith.constant 1 : i32
        %c0_i32_62 = arith.constant 0 : i32
        %c0_i32_63 = arith.constant 0 : i32
        %96 = tpu.memref_slice %arg2[%arg0, %95, %c0_i32_62, %c0_i32_63] : memref<2x16x16x128xf32, #tpu.memory_space<any>> -> memref<1x1x16x128xf32, #tpu.memory_space<any>>
        %97 = tpu.memref_squeeze %96 : memref<1x1x16x128xf32, #tpu.memory_space<any>> -> memref<1x16x128xf32, #tpu.memory_space<any>>
        %c0_i32_64 = arith.constant 0 : i32
        %c0_i32_65 = arith.constant 0 : i32
        %98 = tpu.memref_slice %arg5[%82, %c0_i32_64, %c0_i32_65] : memref<20x16x128xf32, #tpu.memory_space<vmem>> -> memref<1x16x128xf32, #tpu.memory_space<vmem>>
        %99 = tpu.memref_slice %arg6[%80, %c1_i32_61] : memref<2x3x!tpu.dma_semaphore, #tpu.memory_space<semaphore_mem>> -> memref<1x1x!tpu.dma_semaphore, #tpu.memory_space<semaphore_mem>>
        %100 = tpu.memref_squeeze %99 : memref<1x1x!tpu.dma_semaphore, #tpu.memory_space<semaphore_mem>> -> memref<!tpu.dma_semaphore, #tpu.memory_space<semaphore_mem>>
        tpu.enqueue_dma source(%97 : memref<1x16x128xf32, #tpu.memory_space<any>>) target(%98 : memref<1x16x128xf32, #tpu.memory_space<vmem>>) target_semaphore(%100 : memref<!tpu.dma_semaphore, #tpu.memory_space<semaphore_mem>>)
      } else {
      }
      %c1_i32_58 = arith.constant 1 : i32
      %92 = arith.cmpi slt, %78, %c1_i32_58 : i32
      %93 = arith.extui %92 : i1 to i32
      %c0_i32_59 = arith.constant 0 : i32
      %94 = arith.cmpi ne, %93, %c0_i32_59 : i32
      scf.if %94 {
        %c8_i32_60 = arith.constant 8 : i32
        %95 = arith.addi %81, %c8_i32_60 : i32
        %c8_i32_61 = arith.constant 8 : i32
        %96 = arith.addi %82, %c8_i32_61 : i32
        %c1_i32_62 = arith.constant 1 : i32
        %97 = arith.addi %96, %c1_i32_62 : i32
        %c2_i32_63 = arith.constant 2 : i32
        %c0_i32_64 = arith.constant 0 : i32
        %c0_i32_65 = arith.constant 0 : i32
        %98 = tpu.memref_slice %arg2[%arg0, %95, %c0_i32_64, %c0_i32_65] : memref<2x16x16x128xf32, #tpu.memory_space<any>> -> memref<1x1x16x128xf32, #tpu.memory_space<any>>
        %99 = tpu.memref_squeeze %98 : memref<1x1x16x128xf32, #tpu.memory_space<any>> -> memref<1x16x128xf32, #tpu.memory_space<any>>
        %c0_i32_66 = arith.constant 0 : i32
        %c0_i32_67 = arith.constant 0 : i32
        %100 = tpu.memref_slice %arg5[%97, %c0_i32_66, %c0_i32_67] : memref<20x16x128xf32, #tpu.memory_space<vmem>> -> memref<1x16x128xf32, #tpu.memory_space<vmem>>
        %101 = tpu.memref_slice %arg6[%80, %c2_i32_63] : memref<2x3x!tpu.dma_semaphore, #tpu.memory_space<semaphore_mem>> -> memref<1x1x!tpu.dma_semaphore, #tpu.memory_space<semaphore_mem>>
        %102 = tpu.memref_squeeze %101 : memref<1x1x!tpu.dma_semaphore, #tpu.memory_space<semaphore_mem>> -> memref<!tpu.dma_semaphore, #tpu.memory_space<semaphore_mem>>
        tpu.enqueue_dma source(%99 : memref<1x16x128xf32, #tpu.memory_space<any>>) target(%100 : memref<1x16x128xf32, #tpu.memory_space<vmem>>) target_semaphore(%102 : memref<!tpu.dma_semaphore, #tpu.memory_space<semaphore_mem>>)
      } else {
      }
    } else {
    }
    %c10_i32 = arith.constant 10 : i32
    %25 = arith.muli %0, %c10_i32 : i32
    %26 = arith.index_cast %25 : i32 to index
    %c0 = arith.constant 0 : index
    %c0_18 = arith.constant 0 : index
    %27 = vector.load %arg5[%26, %c0, %c0_18] : memref<20x16x128xf32, #tpu.memory_space<vmem>>, vector<10x16x128xf32>
    %cst = arith.constant 0.000000e+00 : f32
    %28 = vector.broadcast %cst : f32 to vector<10x1x128xf32>
    %29 = tpu.concatenate %28, %27, %28 in 1 : vector<10x1x128xf32>, vector<10x16x128xf32>, vector<10x1x128xf32> -> vector<10x18x128xf32>
    %cst_19 = arith.constant 0.000000e+00 : f32
    %30 = vector.broadcast %cst_19 : f32 to vector<128x128xf32>
    %31 = vector.extract_strided_slice %29 {offsets = [0, 0, 0], sizes = [8, 16, 128], strides = [1, 1, 1]} : vector<10x18x128xf32> to vector<8x16x128xf32>
    %32 = vector.extract_strided_slice %29 {offsets = [0, 1, 0], sizes = [8, 16, 128], strides = [1, 1, 1]} : vector<10x18x128xf32> to vector<8x16x128xf32>
    %33 = vector.extract_strided_slice %29 {offsets = [0, 2, 0], sizes = [8, 16, 128], strides = [1, 1, 1]} : vector<10x18x128xf32> to vector<8x16x128xf32>
    %34 = tpu.concatenate %31, %32, %33 in 2 : vector<8x16x128xf32>, vector<8x16x128xf32>, vector<8x16x128xf32> -> vector<8x16x384xf32>
    %35 = vector.shape_cast %34 : vector<8x16x384xf32> to vector<128x384xf32>
    %c0_20 = arith.constant 0 : index
    %c0_21 = arith.constant 0 : index
    %c0_22 = arith.constant 0 : index
    %36 = vector.load %arg3[%c0_20, %c0_21, %c0_22] : memref<3x384x128xf32, #tpu.memory_space<vmem>>, vector<1x384x128xf32>
    %37 = vector.shape_cast %36 : vector<1x384x128xf32> to vector<384x128xf32>
    %cst_23 = arith.constant dense<0.000000e+00> : vector<128x128xf32>
    %38 = tpu.matmul %35, %37, %cst_23 {dimension_numbers = #tpu.dot_dimension_numbers<[1], [0], [0], [1], [0, 0, 1, 1], [], []>} : vector<128x384xf32>, vector<384x128xf32>, vector<128x128xf32> -> vector<128x128xf32>
    %39 = arith.addf %30, %38 : vector<128x128xf32>
    %40 = vector.extract_strided_slice %29 {offsets = [1, 0, 0], sizes = [8, 16, 128], strides = [1, 1, 1]} : vector<10x18x128xf32> to vector<8x16x128xf32>
    %41 = vector.extract_strided_slice %29 {offsets = [1, 1, 0], sizes = [8, 16, 128], strides = [1, 1, 1]} : vector<10x18x128xf32> to vector<8x16x128xf32>
    %42 = vector.extract_strided_slice %29 {offsets = [1, 2, 0], sizes = [8, 16, 128], strides = [1, 1, 1]} : vector<10x18x128xf32> to vector<8x16x128xf32>
    %43 = tpu.concatenate %40, %41, %42 in 2 : vector<8x16x128xf32>, vector<8x16x128xf32>, vector<8x16x128xf32> -> vector<8x16x384xf32>
    %44 = vector.shape_cast %43 : vector<8x16x384xf32> to vector<128x384xf32>
    %c1 = arith.constant 1 : index
    %c0_24 = arith.constant 0 : index
    %c0_25 = arith.constant 0 : index
    %45 = vector.load %arg3[%c1, %c0_24, %c0_25] : memref<3x384x128xf32, #tpu.memory_space<vmem>>, vector<1x384x128xf32>
    %46 = vector.shape_cast %45 : vector<1x384x128xf32> to vector<384x128xf32>
    %cst_26 = arith.constant dense<0.000000e+00> : vector<128x128xf32>
    %47 = tpu.matmul %44, %46, %cst_26 {dimension_numbers = #tpu.dot_dimension_numbers<[1], [0], [0], [1], [0, 0, 1, 1], [], []>} : vector<128x384xf32>, vector<384x128xf32>, vector<128x128xf32> -> vector<128x128xf32>
    %48 = arith.addf %39, %47 : vector<128x128xf32>
    %49 = vector.extract_strided_slice %29 {offsets = [2, 0, 0], sizes = [8, 16, 128], strides = [1, 1, 1]} : vector<10x18x128xf32> to vector<8x16x128xf32>
    %50 = vector.extract_strided_slice %29 {offsets = [2, 1, 0], sizes = [8, 16, 128], strides = [1, 1, 1]} : vector<10x18x128xf32> to vector<8x16x128xf32>
    %51 = vector.extract_strided_slice %29 {offsets = [2, 2, 0], sizes = [8, 16, 128], strides = [1, 1, 1]} : vector<10x18x128xf32> to vector<8x16x128xf32>
    %52 = tpu.concatenate %49, %50, %51 in 2 : vector<8x16x128xf32>, vector<8x16x128xf32>, vector<8x16x128xf32> -> vector<8x16x384xf32>
    %53 = vector.shape_cast %52 : vector<8x16x384xf32> to vector<128x384xf32>
    %c2 = arith.constant 2 : index
    %c0_27 = arith.constant 0 : index
    %c0_28 = arith.constant 0 : index
    %54 = vector.load %arg3[%c2, %c0_27, %c0_28] : memref<3x384x128xf32, #tpu.memory_space<vmem>>, vector<1x384x128xf32>
    %55 = vector.shape_cast %54 : vector<1x384x128xf32> to vector<384x128xf32>
    %cst_29 = arith.constant dense<0.000000e+00> : vector<128x128xf32>
    %56 = tpu.matmul %53, %55, %cst_29 {dimension_numbers = #tpu.dot_dimension_numbers<[1], [0], [0], [1], [0, 0, 1, 1], [], []>} : vector<128x384xf32>, vector<384x128xf32>, vector<128x128xf32> -> vector<128x128xf32>
    %57 = arith.addf %48, %56 : vector<128x128xf32>
    %c0_i32_30 = arith.constant 0 : i32
    %58 = arith.cmpi eq, %arg1, %c0_i32_30 : i32
    %59 = arith.extui %58 : i1 to i32
    %c0_i32_31 = arith.constant 0 : i32
    %60 = arith.cmpi ne, %59, %c0_i32_31 : i32
    scf.if %60 {
      %cst_46 = arith.constant 0.000000e+00 : f32
      %78 = vector.broadcast %cst_46 : f32 to vector<2x128xf32>
      %c0_47 = arith.constant 0 : index
      %c0_48 = arith.constant 0 : index
      %c0_49 = arith.constant 0 : index
      %79 = vector.load %arg4[%c0_47, %c0_48, %c0_49] : memref<1x2x128xf32, #tpu.memory_space<vmem>>, vector<1x2x128xf32>
      %80 = vector.shape_cast %79 : vector<1x2x128xf32> to vector<2x128xf32>
      %81 = vector.shape_cast %78 : vector<2x128xf32> to vector<1x2x128xf32>
      tpu.vector_store %arg4[%c0_47, %c0_48, %c0_49], %81 {strides = array<i32>} : memref<1x2x128xf32, #tpu.memory_space<vmem>>, vector<1x2x128xf32>,
    } else {
    }
    %c0_32 = arith.constant 0 : index
    %c0_33 = arith.constant 0 : index
    %c0_34 = arith.constant 0 : index
    %61 = vector.load %arg4[%c0_32, %c0_33, %c0_34] : memref<1x2x128xf32, #tpu.memory_space<vmem>>, vector<1x1x128xf32>
    %62 = vector.shape_cast %61 : vector<1x1x128xf32> to vector<1x128xf32>
    %cst_35 = arith.constant dense<0.000000e+00> : vector<128xf32>
    %63 = vector.multi_reduction <add>, %57, %cst_35 [0] : vector<128x128xf32> to vector<128xf32>
    %64 = vector.shape_cast %63 : vector<128xf32> to vector<1x128xf32>
    %65 = arith.addf %62, %64 : vector<1x128xf32>
    %c0_36 = arith.constant 0 : index
    %c0_37 = arith.constant 0 : index
    %c0_38 = arith.constant 0 : index
    %66 = vector.load %arg4[%c0_36, %c0_37, %c0_38] : memref<1x2x128xf32, #tpu.memory_space<vmem>>, vector<1x1x128xf32>
    %67 = vector.shape_cast %66 : vector<1x1x128xf32> to vector<1x128xf32>
    %68 = vector.shape_cast %65 : vector<1x128xf32> to vector<1x1x128xf32>
    tpu.vector_store %arg4[%c0_36, %c0_37, %c0_38], %68 {strides = array<i32>} : memref<1x2x128xf32, #tpu.memory_space<vmem>>, vector<1x1x128xf32>,
    %c0_39 = arith.constant 0 : index
    %c1_40 = arith.constant 1 : index
    %c0_41 = arith.constant 0 : index
    %69 = vector.load %arg4[%c0_39, %c1_40, %c0_41] : memref<1x2x128xf32, #tpu.memory_space<vmem>>, vector<1x1x128xf32>
    %70 = vector.shape_cast %69 : vector<1x1x128xf32> to vector<1x128xf32>
    %71 = arith.mulf %57, %57 : vector<128x128xf32>
    %cst_42 = arith.constant dense<0.000000e+00> : vector<128xf32>
    %72 = vector.multi_reduction <add>, %71, %cst_42 [0] : vector<128x128xf32> to vector<128xf32>
    %73 = vector.shape_cast %72 : vector<128xf32> to vector<1x128xf32>
    %74 = arith.addf %70, %73 : vector<1x128xf32>
    %c0_43 = arith.constant 0 : index
    %c1_44 = arith.constant 1 : index
    %c0_45 = arith.constant 0 : index
    %75 = vector.load %arg4[%c0_43, %c1_44, %c0_45] : memref<1x2x128xf32, #tpu.memory_space<vmem>>, vector<1x1x128xf32>
    %76 = vector.shape_cast %75 : vector<1x1x128xf32> to vector<1x128xf32>
    %77 = vector.shape_cast %74 : vector<1x128xf32> to vector<1x1x128xf32>
    tpu.vector_store %arg4[%c0_43, %c1_44, %c0_45], %77 {strides = array<i32>} : memref<1x2x128xf32, #tpu.memory_space<vmem>>, vector<1x1x128xf32>,
    return
  }
  func.func @transform_1(%arg0: i32, %arg1: i32) -> (i32, i32, i32) {
    %c0_i32 = arith.constant 0 : i32
    %c0_i32_0 = arith.constant 0 : i32
    %c0_i32_1 = arith.constant 0 : i32
    %c0_i32_2 = arith.constant 0 : i32
    return %c0_i32, %c0_i32_0, %c0_i32_1 : i32, i32, i32
  }
  func.func @transform_2(%arg0: i32, %arg1: i32) -> (i32, i32, i32) {
    %c0_i32 = arith.constant 0 : i32
    %c0_i32_0 = arith.constant 0 : i32
    %c0_i32_1 = arith.constant 0 : i32
    return %arg0, %c0_i32, %c0_i32_0 : i32, i32, i32
  }
}

module attributes {stable_mosaic.version = 11 : i64} {
  func.func @apply_res_kernel(%arg0: i32, %arg1: i32, %arg2: memref<2x16x16x128xf32, #tpu.memory_space<any>>, %arg3: memref<3x384x128xf32, #tpu.memory_space<vmem>>, %arg4: memref<1x128xf32, #tpu.memory_space<vmem>>, %arg5: memref<1x128xf32, #tpu.memory_space<vmem>>, %arg6: memref<1x8x16x128xf32, #tpu.memory_space<vmem>>, %arg7: memref<1x8x16x128xf32, #tpu.memory_space<vmem>>, %arg8: memref<20x16x128xf32, #tpu.memory_space<vmem>>, %arg9: memref<2x3x!tpu.dma_semaphore, #tpu.memory_space<semaphore_mem>>) attributes {dimension_semantics = [#tpu.dimension_semantics<parallel>, #tpu.dimension_semantics<arbitrary>], iteration_bounds = array<i64: 2, 2>, scalar_prefetch = 0 : i64, scratch_operands = 2 : i64, tpu.core_type = #tpu.core_type<tc>, window_params = [{}, {pipeline_mode = #tpu.pipeline_mode<synchronous>, transform_indices = @transform_1, window_bounds = array<i64: 3, 384, 128>}, {pipeline_mode = #tpu.pipeline_mode<synchronous>, transform_indices = @transform_2, window_bounds = array<i64: 1, 128>}, {pipeline_mode = #tpu.pipeline_mode<synchronous>, transform_indices = @transform_3, window_bounds = array<i64: 1, 128>}, {transform_indices = @transform_4, window_bounds = array<i64: 1, 8, 16, 128>}, {transform_indices = @transform_5, window_bounds = array<i64: 1, 8, 16, 128>}]} {
    %c2_i32 = arith.constant 2 : i32
    %0 = arith.remsi %arg1, %c2_i32 : i32
    %c0_i32 = arith.constant 0 : i32
    %1 = arith.cmpi eq, %arg1, %c0_i32 : i32
    %2 = arith.extui %1 : i1 to i32
    %c0_i32_0 = arith.constant 0 : i32
    %3 = arith.cmpi ne, %2, %c0_i32_0 : i32
    scf.if %3 {
      %c8_i32 = arith.constant 8 : i32
      %76 = arith.muli %arg1, %c8_i32 : i32
      %c10_i32_44 = arith.constant 10 : i32
      %77 = arith.muli %0, %c10_i32_44 : i32
      %c1_i32_45 = arith.constant 1 : i32
      %78 = arith.addi %77, %c1_i32_45 : i32
      %c0_i32_46 = arith.constant 0 : i32
      %c0_i32_47 = arith.constant 0 : i32
      %c0_i32_48 = arith.constant 0 : i32
      %79 = tpu.memref_slice %arg2[%arg0, %76, %c0_i32_47, %c0_i32_48] : memref<2x16x16x128xf32, #tpu.memory_space<any>> -> memref<1x8x16x128xf32, #tpu.memory_space<any>>
      %80 = tpu.memref_squeeze %79 : memref<1x8x16x128xf32, #tpu.memory_space<any>> -> memref<8x16x128xf32, #tpu.memory_space<any>>
      %c0_i32_49 = arith.constant 0 : i32
      %c0_i32_50 = arith.constant 0 : i32
      %81 = tpu.memref_slice %arg8[%78, %c0_i32_49, %c0_i32_50] : memref<20x16x128xf32, #tpu.memory_space<vmem>> -> memref<8x16x128xf32, #tpu.memory_space<vmem>>
      %82 = tpu.memref_slice %arg9[%0, %c0_i32_46] : memref<2x3x!tpu.dma_semaphore, #tpu.memory_space<semaphore_mem>> -> memref<1x1x!tpu.dma_semaphore, #tpu.memory_space<semaphore_mem>>
      %83 = tpu.memref_squeeze %82 : memref<1x1x!tpu.dma_semaphore, #tpu.memory_space<semaphore_mem>> -> memref<!tpu.dma_semaphore, #tpu.memory_space<semaphore_mem>>
      tpu.enqueue_dma source(%80 : memref<8x16x128xf32, #tpu.memory_space<any>>) target(%81 : memref<8x16x128xf32, #tpu.memory_space<vmem>>) target_semaphore(%83 : memref<!tpu.dma_semaphore, #tpu.memory_space<semaphore_mem>>)
      %c0_i32_51 = arith.constant 0 : i32
      %84 = arith.cmpi sgt, %arg1, %c0_i32_51 : i32
      %85 = arith.extui %84 : i1 to i32
      %c0_i32_52 = arith.constant 0 : i32
      %86 = arith.cmpi ne, %85, %c0_i32_52 : i32
      scf.if %86 {
        %c1_i32_55 = arith.constant 1 : i32
        %90 = arith.subi %76, %c1_i32_55 : i32
        %c1_i32_56 = arith.constant 1 : i32
        %c0_i32_57 = arith.constant 0 : i32
        %c0_i32_58 = arith.constant 0 : i32
        %91 = tpu.memref_slice %arg2[%arg0, %90, %c0_i32_57, %c0_i32_58] : memref<2x16x16x128xf32, #tpu.memory_space<any>> -> memref<1x1x16x128xf32, #tpu.memory_space<any>>
        %92 = tpu.memref_squeeze %91 : memref<1x1x16x128xf32, #tpu.memory_space<any>> -> memref<1x16x128xf32, #tpu.memory_space<any>>
        %c0_i32_59 = arith.constant 0 : i32
        %c0_i32_60 = arith.constant 0 : i32
        %93 = tpu.memref_slice %arg8[%77, %c0_i32_59, %c0_i32_60] : memref<20x16x128xf32, #tpu.memory_space<vmem>> -> memref<1x16x128xf32, #tpu.memory_space<vmem>>
        %94 = tpu.memref_slice %arg9[%0, %c1_i32_56] : memref<2x3x!tpu.dma_semaphore, #tpu.memory_space<semaphore_mem>> -> memref<1x1x!tpu.dma_semaphore, #tpu.memory_space<semaphore_mem>>
        %95 = tpu.memref_squeeze %94 : memref<1x1x!tpu.dma_semaphore, #tpu.memory_space<semaphore_mem>> -> memref<!tpu.dma_semaphore, #tpu.memory_space<semaphore_mem>>
        tpu.enqueue_dma source(%92 : memref<1x16x128xf32, #tpu.memory_space<any>>) target(%93 : memref<1x16x128xf32, #tpu.memory_space<vmem>>) target_semaphore(%95 : memref<!tpu.dma_semaphore, #tpu.memory_space<semaphore_mem>>)
      } else {
      }
      %c1_i32_53 = arith.constant 1 : i32
      %87 = arith.cmpi slt, %arg1, %c1_i32_53 : i32
      %88 = arith.extui %87 : i1 to i32
      %c0_i32_54 = arith.constant 0 : i32
      %89 = arith.cmpi ne, %88, %c0_i32_54 : i32
      scf.if %89 {
        %c8_i32_55 = arith.constant 8 : i32
        %90 = arith.addi %76, %c8_i32_55 : i32
        %c8_i32_56 = arith.constant 8 : i32
        %91 = arith.addi %77, %c8_i32_56 : i32
        %c1_i32_57 = arith.constant 1 : i32
        %92 = arith.addi %91, %c1_i32_57 : i32
        %c2_i32_58 = arith.constant 2 : i32
        %c0_i32_59 = arith.constant 0 : i32
        %c0_i32_60 = arith.constant 0 : i32
        %93 = tpu.memref_slice %arg2[%arg0, %90, %c0_i32_59, %c0_i32_60] : memref<2x16x16x128xf32, #tpu.memory_space<any>> -> memref<1x1x16x128xf32, #tpu.memory_space<any>>
        %94 = tpu.memref_squeeze %93 : memref<1x1x16x128xf32, #tpu.memory_space<any>> -> memref<1x16x128xf32, #tpu.memory_space<any>>
        %c0_i32_61 = arith.constant 0 : i32
        %c0_i32_62 = arith.constant 0 : i32
        %95 = tpu.memref_slice %arg8[%92, %c0_i32_61, %c0_i32_62] : memref<20x16x128xf32, #tpu.memory_space<vmem>> -> memref<1x16x128xf32, #tpu.memory_space<vmem>>
        %96 = tpu.memref_slice %arg9[%0, %c2_i32_58] : memref<2x3x!tpu.dma_semaphore, #tpu.memory_space<semaphore_mem>> -> memref<1x1x!tpu.dma_semaphore, #tpu.memory_space<semaphore_mem>>
        %97 = tpu.memref_squeeze %96 : memref<1x1x!tpu.dma_semaphore, #tpu.memory_space<semaphore_mem>> -> memref<!tpu.dma_semaphore, #tpu.memory_space<semaphore_mem>>
        tpu.enqueue_dma source(%94 : memref<1x16x128xf32, #tpu.memory_space<any>>) target(%95 : memref<1x16x128xf32, #tpu.memory_space<vmem>>) target_semaphore(%97 : memref<!tpu.dma_semaphore, #tpu.memory_space<semaphore_mem>>)
      } else {
      }
    } else {
    }
    %c0_i32_1 = arith.constant 0 : i32
    %c0_i32_2 = arith.constant 0 : i32
    %c0_i32_3 = arith.constant 0 : i32
    %c0_i32_4 = arith.constant 0 : i32
    %4 = tpu.memref_slice %arg2[%arg0, %c0_i32_2, %c0_i32_3, %c0_i32_4] : memref<2x16x16x128xf32, #tpu.memory_space<any>> -> memref<1x8x16x128xf32, #tpu.memory_space<any>>
    %5 = tpu.memref_squeeze %4 : memref<1x8x16x128xf32, #tpu.memory_space<any>> -> memref<8x16x128xf32, #tpu.memory_space<any>>
    %c1_i32 = arith.constant 1 : i32
    %c0_i32_5 = arith.constant 0 : i32
    %c0_i32_6 = arith.constant 0 : i32
    %6 = tpu.memref_slice %arg8[%c1_i32, %c0_i32_5, %c0_i32_6] : memref<20x16x128xf32, #tpu.memory_space<vmem>> -> memref<8x16x128xf32, #tpu.memory_space<vmem>>
    %7 = tpu.memref_slice %arg9[%0, %c0_i32_1] : memref<2x3x!tpu.dma_semaphore, #tpu.memory_space<semaphore_mem>> -> memref<1x1x!tpu.dma_semaphore, #tpu.memory_space<semaphore_mem>>
    %8 = tpu.memref_squeeze %7 : memref<1x1x!tpu.dma_semaphore, #tpu.memory_space<semaphore_mem>> -> memref<!tpu.dma_semaphore, #tpu.memory_space<semaphore_mem>>
    tpu.wait_dma2 semaphore(%8 : memref<!tpu.dma_semaphore, #tpu.memory_space<semaphore_mem>>) src(%5 : memref<8x16x128xf32, #tpu.memory_space<any>>) dst(%6 : memref<8x16x128xf32, #tpu.memory_space<vmem>>)
    %c0_i32_7 = arith.constant 0 : i32
    %9 = arith.cmpi sgt, %arg1, %c0_i32_7 : i32
    %10 = arith.extui %9 : i1 to i32
    %c0_i32_8 = arith.constant 0 : i32
    %11 = arith.cmpi ne, %10, %c0_i32_8 : i32
    scf.if %11 {
      %c1_i32_44 = arith.constant 1 : i32
      %c0_i32_45 = arith.constant 0 : i32
      %c0_i32_46 = arith.constant 0 : i32
      %c0_i32_47 = arith.constant 0 : i32
      %76 = tpu.memref_slice %arg2[%arg0, %c0_i32_45, %c0_i32_46, %c0_i32_47] : memref<2x16x16x128xf32, #tpu.memory_space<any>> -> memref<1x1x16x128xf32, #tpu.memory_space<any>>
      %77 = tpu.memref_squeeze %76 : memref<1x1x16x128xf32, #tpu.memory_space<any>> -> memref<1x16x128xf32, #tpu.memory_space<any>>
      %c0_i32_48 = arith.constant 0 : i32
      %c0_i32_49 = arith.constant 0 : i32
      %c0_i32_50 = arith.constant 0 : i32
      %78 = tpu.memref_slice %arg8[%c0_i32_48, %c0_i32_49, %c0_i32_50] : memref<20x16x128xf32, #tpu.memory_space<vmem>> -> memref<1x16x128xf32, #tpu.memory_space<vmem>>
      %79 = tpu.memref_slice %arg9[%0, %c1_i32_44] : memref<2x3x!tpu.dma_semaphore, #tpu.memory_space<semaphore_mem>> -> memref<1x1x!tpu.dma_semaphore, #tpu.memory_space<semaphore_mem>>
      %80 = tpu.memref_squeeze %79 : memref<1x1x!tpu.dma_semaphore, #tpu.memory_space<semaphore_mem>> -> memref<!tpu.dma_semaphore, #tpu.memory_space<semaphore_mem>>
      tpu.wait_dma2 semaphore(%80 : memref<!tpu.dma_semaphore, #tpu.memory_space<semaphore_mem>>) src(%77 : memref<1x16x128xf32, #tpu.memory_space<any>>) dst(%78 : memref<1x16x128xf32, #tpu.memory_space<vmem>>)
    } else {
    }
    %c1_i32_9 = arith.constant 1 : i32
    %12 = arith.cmpi slt, %arg1, %c1_i32_9 : i32
    %13 = arith.extui %12 : i1 to i32
    %c0_i32_10 = arith.constant 0 : i32
    %14 = arith.cmpi ne, %13, %c0_i32_10 : i32
    scf.if %14 {
      %c2_i32_44 = arith.constant 2 : i32
      %c0_i32_45 = arith.constant 0 : i32
      %c0_i32_46 = arith.constant 0 : i32
      %c0_i32_47 = arith.constant 0 : i32
      %76 = tpu.memref_slice %arg2[%arg0, %c0_i32_45, %c0_i32_46, %c0_i32_47] : memref<2x16x16x128xf32, #tpu.memory_space<any>> -> memref<1x1x16x128xf32, #tpu.memory_space<any>>
      %77 = tpu.memref_squeeze %76 : memref<1x1x16x128xf32, #tpu.memory_space<any>> -> memref<1x16x128xf32, #tpu.memory_space<any>>
      %c9_i32 = arith.constant 9 : i32
      %c0_i32_48 = arith.constant 0 : i32
      %c0_i32_49 = arith.constant 0 : i32
      %78 = tpu.memref_slice %arg8[%c9_i32, %c0_i32_48, %c0_i32_49] : memref<20x16x128xf32, #tpu.memory_space<vmem>> -> memref<1x16x128xf32, #tpu.memory_space<vmem>>
      %79 = tpu.memref_slice %arg9[%0, %c2_i32_44] : memref<2x3x!tpu.dma_semaphore, #tpu.memory_space<semaphore_mem>> -> memref<1x1x!tpu.dma_semaphore, #tpu.memory_space<semaphore_mem>>
      %80 = tpu.memref_squeeze %79 : memref<1x1x!tpu.dma_semaphore, #tpu.memory_space<semaphore_mem>> -> memref<!tpu.dma_semaphore, #tpu.memory_space<semaphore_mem>>
      tpu.wait_dma2 semaphore(%80 : memref<!tpu.dma_semaphore, #tpu.memory_space<semaphore_mem>>) src(%77 : memref<1x16x128xf32, #tpu.memory_space<any>>) dst(%78 : memref<1x16x128xf32, #tpu.memory_space<vmem>>)
    } else {
    }
    %c0_i32_11 = arith.constant 0 : i32
    %15 = arith.cmpi eq, %arg1, %c0_i32_11 : i32
    %16 = arith.extui %15 : i1 to i32
    %c0_i32_12 = arith.constant 0 : i32
    %17 = arith.cmpi ne, %16, %c0_i32_12 : i32
    scf.if %17 {
      %cst_44 = arith.constant 0.000000e+00 : f32
      %76 = vector.broadcast %cst_44 : f32 to vector<1x16x128xf32>
      %c0_45 = arith.constant 0 : index
      %c0_46 = arith.constant 0 : index
      %c0_47 = arith.constant 0 : index
      %77 = vector.load %arg8[%c0_45, %c0_46, %c0_47] : memref<20x16x128xf32, #tpu.memory_space<vmem>>, vector<1x16x128xf32>
      tpu.vector_store %arg8[%c0_45, %c0_46, %c0_47], %76 {strides = array<i32>} : memref<20x16x128xf32, #tpu.memory_space<vmem>>, vector<1x16x128xf32>,
    } else {
    }
    %c1_i32_13 = arith.constant 1 : i32
    %18 = arith.cmpi eq, %arg1, %c1_i32_13 : i32
    %19 = arith.extui %18 : i1 to i32
    %c0_i32_14 = arith.constant 0 : i32
    %20 = arith.cmpi ne, %19, %c0_i32_14 : i32
    scf.if %20 {
      %cst_44 = arith.constant 0.000000e+00 : f32
      %76 = vector.broadcast %cst_44 : f32 to vector<1x16x128xf32>
      %c19 = arith.constant 19 : index
      %c0_45 = arith.constant 0 : index
      %c0_46 = arith.constant 0 : index
      %77 = vector.load %arg8[%c19, %c0_45, %c0_46] : memref<20x16x128xf32, #tpu.memory_space<vmem>>, vector<1x16x128xf32>
      tpu.vector_store %arg8[%c19, %c0_45, %c0_46], %76 {strides = array<i32>} : memref<20x16x128xf32, #tpu.memory_space<vmem>>, vector<1x16x128xf32>,
    } else {
    }
    %c1_i32_15 = arith.constant 1 : i32
    %21 = arith.addi %arg1, %c1_i32_15 : i32
    %c2_i32_16 = arith.constant 2 : i32
    %22 = arith.cmpi slt, %21, %c2_i32_16 : i32
    %23 = arith.extui %22 : i1 to i32
    %c0_i32_17 = arith.constant 0 : i32
    %24 = arith.cmpi ne, %23, %c0_i32_17 : i32
    scf.if %24 {
      %c1_i32_44 = arith.constant 1 : i32
      %76 = arith.addi %arg1, %c1_i32_44 : i32
      %c1_i32_45 = arith.constant 1 : i32
      %77 = arith.addi %arg1, %c1_i32_45 : i32
      %c2_i32_46 = arith.constant 2 : i32
      %78 = arith.remsi %77, %c2_i32_46 : i32
      %c8_i32 = arith.constant 8 : i32
      %79 = arith.muli %76, %c8_i32 : i32
      %c10_i32_47 = arith.constant 10 : i32
      %80 = arith.muli %78, %c10_i32_47 : i32
      %c1_i32_48 = arith.constant 1 : i32
      %81 = arith.addi %80, %c1_i32_48 : i32
      %c0_i32_49 = arith.constant 0 : i32
      %c0_i32_50 = arith.constant 0 : i32
      %c0_i32_51 = arith.constant 0 : i32
      %82 = tpu.memref_slice %arg2[%arg0, %79, %c0_i32_50, %c0_i32_51] : memref<2x16x16x128xf32, #tpu.memory_space<any>> -> memref<1x8x16x128xf32, #tpu.memory_space<any>>
      %83 = tpu.memref_squeeze %82 : memref<1x8x16x128xf32, #tpu.memory_space<any>> -> memref<8x16x128xf32, #tpu.memory_space<any>>
      %c0_i32_52 = arith.constant 0 : i32
      %c0_i32_53 = arith.constant 0 : i32
      %84 = tpu.memref_slice %arg8[%81, %c0_i32_52, %c0_i32_53] : memref<20x16x128xf32, #tpu.memory_space<vmem>> -> memref<8x16x128xf32, #tpu.memory_space<vmem>>
      %85 = tpu.memref_slice %arg9[%78, %c0_i32_49] : memref<2x3x!tpu.dma_semaphore, #tpu.memory_space<semaphore_mem>> -> memref<1x1x!tpu.dma_semaphore, #tpu.memory_space<semaphore_mem>>
      %86 = tpu.memref_squeeze %85 : memref<1x1x!tpu.dma_semaphore, #tpu.memory_space<semaphore_mem>> -> memref<!tpu.dma_semaphore, #tpu.memory_space<semaphore_mem>>
      tpu.enqueue_dma source(%83 : memref<8x16x128xf32, #tpu.memory_space<any>>) target(%84 : memref<8x16x128xf32, #tpu.memory_space<vmem>>) target_semaphore(%86 : memref<!tpu.dma_semaphore, #tpu.memory_space<semaphore_mem>>)
      %c0_i32_54 = arith.constant 0 : i32
      %87 = arith.cmpi sgt, %76, %c0_i32_54 : i32
      %88 = arith.extui %87 : i1 to i32
      %c0_i32_55 = arith.constant 0 : i32
      %89 = arith.cmpi ne, %88, %c0_i32_55 : i32
      scf.if %89 {
        %c1_i32_58 = arith.constant 1 : i32
        %93 = arith.subi %79, %c1_i32_58 : i32
        %c1_i32_59 = arith.constant 1 : i32
        %c0_i32_60 = arith.constant 0 : i32
        %c0_i32_61 = arith.constant 0 : i32
        %94 = tpu.memref_slice %arg2[%arg0, %93, %c0_i32_60, %c0_i32_61] : memref<2x16x16x128xf32, #tpu.memory_space<any>> -> memref<1x1x16x128xf32, #tpu.memory_space<any>>
        %95 = tpu.memref_squeeze %94 : memref<1x1x16x128xf32, #tpu.memory_space<any>> -> memref<1x16x128xf32, #tpu.memory_space<any>>
        %c0_i32_62 = arith.constant 0 : i32
        %c0_i32_63 = arith.constant 0 : i32
        %96 = tpu.memref_slice %arg8[%80, %c0_i32_62, %c0_i32_63] : memref<20x16x128xf32, #tpu.memory_space<vmem>> -> memref<1x16x128xf32, #tpu.memory_space<vmem>>
        %97 = tpu.memref_slice %arg9[%78, %c1_i32_59] : memref<2x3x!tpu.dma_semaphore, #tpu.memory_space<semaphore_mem>> -> memref<1x1x!tpu.dma_semaphore, #tpu.memory_space<semaphore_mem>>
        %98 = tpu.memref_squeeze %97 : memref<1x1x!tpu.dma_semaphore, #tpu.memory_space<semaphore_mem>> -> memref<!tpu.dma_semaphore, #tpu.memory_space<semaphore_mem>>
        tpu.enqueue_dma source(%95 : memref<1x16x128xf32, #tpu.memory_space<any>>) target(%96 : memref<1x16x128xf32, #tpu.memory_space<vmem>>) target_semaphore(%98 : memref<!tpu.dma_semaphore, #tpu.memory_space<semaphore_mem>>)
      } else {
      }
      %c1_i32_56 = arith.constant 1 : i32
      %90 = arith.cmpi slt, %76, %c1_i32_56 : i32
      %91 = arith.extui %90 : i1 to i32
      %c0_i32_57 = arith.constant 0 : i32
      %92 = arith.cmpi ne, %91, %c0_i32_57 : i32
      scf.if %92 {
        %c8_i32_58 = arith.constant 8 : i32
        %93 = arith.addi %79, %c8_i32_58 : i32
        %c8_i32_59 = arith.constant 8 : i32
        %94 = arith.addi %80, %c8_i32_59 : i32
        %c1_i32_60 = arith.constant 1 : i32
        %95 = arith.addi %94, %c1_i32_60 : i32
        %c2_i32_61 = arith.constant 2 : i32
        %c0_i32_62 = arith.constant 0 : i32
        %c0_i32_63 = arith.constant 0 : i32
        %96 = tpu.memref_slice %arg2[%arg0, %93, %c0_i32_62, %c0_i32_63] : memref<2x16x16x128xf32, #tpu.memory_space<any>> -> memref<1x1x16x128xf32, #tpu.memory_space<any>>
        %97 = tpu.memref_squeeze %96 : memref<1x1x16x128xf32, #tpu.memory_space<any>> -> memref<1x16x128xf32, #tpu.memory_space<any>>
        %c0_i32_64 = arith.constant 0 : i32
        %c0_i32_65 = arith.constant 0 : i32
        %98 = tpu.memref_slice %arg8[%95, %c0_i32_64, %c0_i32_65] : memref<20x16x128xf32, #tpu.memory_space<vmem>> -> memref<1x16x128xf32, #tpu.memory_space<vmem>>
        %99 = tpu.memref_slice %arg9[%78, %c2_i32_61] : memref<2x3x!tpu.dma_semaphore, #tpu.memory_space<semaphore_mem>> -> memref<1x1x!tpu.dma_semaphore, #tpu.memory_space<semaphore_mem>>
        %100 = tpu.memref_squeeze %99 : memref<1x1x!tpu.dma_semaphore, #tpu.memory_space<semaphore_mem>> -> memref<!tpu.dma_semaphore, #tpu.memory_space<semaphore_mem>>
        tpu.enqueue_dma source(%97 : memref<1x16x128xf32, #tpu.memory_space<any>>) target(%98 : memref<1x16x128xf32, #tpu.memory_space<vmem>>) target_semaphore(%100 : memref<!tpu.dma_semaphore, #tpu.memory_space<semaphore_mem>>)
      } else {
      }
    } else {
    }
    %c10_i32 = arith.constant 10 : i32
    %25 = arith.muli %0, %c10_i32 : i32
    %26 = arith.index_cast %25 : i32 to index
    %c0 = arith.constant 0 : index
    %c0_18 = arith.constant 0 : index
    %27 = vector.load %arg8[%26, %c0, %c0_18] : memref<20x16x128xf32, #tpu.memory_space<vmem>>, vector<10x16x128xf32>
    %cst = arith.constant 0.000000e+00 : f32
    %28 = vector.broadcast %cst : f32 to vector<10x1x128xf32>
    %29 = tpu.concatenate %28, %27, %28 in 1 : vector<10x1x128xf32>, vector<10x16x128xf32>, vector<10x1x128xf32> -> vector<10x18x128xf32>
    %cst_19 = arith.constant 0.000000e+00 : f32
    %30 = vector.broadcast %cst_19 : f32 to vector<128x128xf32>
    %31 = vector.extract_strided_slice %29 {offsets = [0, 0, 0], sizes = [8, 16, 128], strides = [1, 1, 1]} : vector<10x18x128xf32> to vector<8x16x128xf32>
    %32 = vector.extract_strided_slice %29 {offsets = [0, 1, 0], sizes = [8, 16, 128], strides = [1, 1, 1]} : vector<10x18x128xf32> to vector<8x16x128xf32>
    %33 = vector.extract_strided_slice %29 {offsets = [0, 2, 0], sizes = [8, 16, 128], strides = [1, 1, 1]} : vector<10x18x128xf32> to vector<8x16x128xf32>
    %34 = tpu.concatenate %31, %32, %33 in 2 : vector<8x16x128xf32>, vector<8x16x128xf32>, vector<8x16x128xf32> -> vector<8x16x384xf32>
    %35 = vector.shape_cast %34 : vector<8x16x384xf32> to vector<128x384xf32>
    %c0_20 = arith.constant 0 : index
    %c0_21 = arith.constant 0 : index
    %c0_22 = arith.constant 0 : index
    %36 = vector.load %arg3[%c0_20, %c0_21, %c0_22] : memref<3x384x128xf32, #tpu.memory_space<vmem>>, vector<1x384x128xf32>
    %37 = vector.shape_cast %36 : vector<1x384x128xf32> to vector<384x128xf32>
    %cst_23 = arith.constant dense<0.000000e+00> : vector<128x128xf32>
    %38 = tpu.matmul %35, %37, %cst_23 {dimension_numbers = #tpu.dot_dimension_numbers<[1], [0], [0], [1], [0, 0, 1, 1], [], []>} : vector<128x384xf32>, vector<384x128xf32>, vector<128x128xf32> -> vector<128x128xf32>
    %39 = arith.addf %30, %38 : vector<128x128xf32>
    %40 = vector.extract_strided_slice %29 {offsets = [1, 0, 0], sizes = [8, 16, 128], strides = [1, 1, 1]} : vector<10x18x128xf32> to vector<8x16x128xf32>
    %41 = vector.extract_strided_slice %29 {offsets = [1, 1, 0], sizes = [8, 16, 128], strides = [1, 1, 1]} : vector<10x18x128xf32> to vector<8x16x128xf32>
    %42 = vector.extract_strided_slice %29 {offsets = [1, 2, 0], sizes = [8, 16, 128], strides = [1, 1, 1]} : vector<10x18x128xf32> to vector<8x16x128xf32>
    %43 = tpu.concatenate %40, %41, %42 in 2 : vector<8x16x128xf32>, vector<8x16x128xf32>, vector<8x16x128xf32> -> vector<8x16x384xf32>
    %44 = vector.shape_cast %43 : vector<8x16x384xf32> to vector<128x384xf32>
    %c1 = arith.constant 1 : index
    %c0_24 = arith.constant 0 : index
    %c0_25 = arith.constant 0 : index
    %45 = vector.load %arg3[%c1, %c0_24, %c0_25] : memref<3x384x128xf32, #tpu.memory_space<vmem>>, vector<1x384x128xf32>
    %46 = vector.shape_cast %45 : vector<1x384x128xf32> to vector<384x128xf32>
    %cst_26 = arith.constant dense<0.000000e+00> : vector<128x128xf32>
    %47 = tpu.matmul %44, %46, %cst_26 {dimension_numbers = #tpu.dot_dimension_numbers<[1], [0], [0], [1], [0, 0, 1, 1], [], []>} : vector<128x384xf32>, vector<384x128xf32>, vector<128x128xf32> -> vector<128x128xf32>
    %48 = arith.addf %39, %47 : vector<128x128xf32>
    %49 = vector.extract_strided_slice %29 {offsets = [2, 0, 0], sizes = [8, 16, 128], strides = [1, 1, 1]} : vector<10x18x128xf32> to vector<8x16x128xf32>
    %50 = vector.extract_strided_slice %29 {offsets = [2, 1, 0], sizes = [8, 16, 128], strides = [1, 1, 1]} : vector<10x18x128xf32> to vector<8x16x128xf32>
    %51 = vector.extract_strided_slice %29 {offsets = [2, 2, 0], sizes = [8, 16, 128], strides = [1, 1, 1]} : vector<10x18x128xf32> to vector<8x16x128xf32>
    %52 = tpu.concatenate %49, %50, %51 in 2 : vector<8x16x128xf32>, vector<8x16x128xf32>, vector<8x16x128xf32> -> vector<8x16x384xf32>
    %53 = vector.shape_cast %52 : vector<8x16x384xf32> to vector<128x384xf32>
    %c2 = arith.constant 2 : index
    %c0_27 = arith.constant 0 : index
    %c0_28 = arith.constant 0 : index
    %54 = vector.load %arg3[%c2, %c0_27, %c0_28] : memref<3x384x128xf32, #tpu.memory_space<vmem>>, vector<1x384x128xf32>
    %55 = vector.shape_cast %54 : vector<1x384x128xf32> to vector<384x128xf32>
    %cst_29 = arith.constant dense<0.000000e+00> : vector<128x128xf32>
    %56 = tpu.matmul %53, %55, %cst_29 {dimension_numbers = #tpu.dot_dimension_numbers<[1], [0], [0], [1], [0, 0, 1, 1], [], []>} : vector<128x384xf32>, vector<384x128xf32>, vector<128x128xf32> -> vector<128x128xf32>
    %57 = arith.addf %48, %56 : vector<128x128xf32>
    %c0_30 = arith.constant 0 : index
    %c0_31 = arith.constant 0 : index
    %58 = vector.load %arg4[%c0_30, %c0_31] : memref<1x128xf32, #tpu.memory_space<vmem>>, vector<1x128xf32>
    %59 = vector.broadcast %58 : vector<1x128xf32> to vector<128x128xf32>
    %60 = arith.mulf %57, %59 : vector<128x128xf32>
    %c0_32 = arith.constant 0 : index
    %c0_33 = arith.constant 0 : index
    %61 = vector.load %arg5[%c0_32, %c0_33] : memref<1x128xf32, #tpu.memory_space<vmem>>, vector<1x128xf32>
    %62 = vector.broadcast %61 : vector<1x128xf32> to vector<128x128xf32>
    %63 = arith.addf %60, %62 : vector<128x128xf32>
    %cst_34 = arith.constant 0.000000e+00 : f32
    %64 = vector.broadcast %cst_34 : f32 to vector<128x128xf32>
    %65 = arith.cmpf ogt, %63, %64 : vector<128x128xf32>
    %cst_35 = arith.constant 1.000000e-01 : f32
    %66 = vector.broadcast %cst_35 : f32 to vector<128x128xf32>
    %67 = arith.mulf %66, %63 : vector<128x128xf32>
    %68 = arith.select %65, %63, %67 : vector<128x128xi1>, vector<128x128xf32>
    %69 = vector.shape_cast %68 : vector<128x128xf32> to vector<8x16x128xf32>
    %c0_36 = arith.constant 0 : index
    %c0_37 = arith.constant 0 : index
    %c0_38 = arith.constant 0 : index
    %c0_39 = arith.constant 0 : index
    %70 = vector.load %arg6[%c0_36, %c0_37, %c0_38, %c0_39] : memref<1x8x16x128xf32, #tpu.memory_space<vmem>>, vector<1x8x16x128xf32>
    %71 = vector.shape_cast %70 : vector<1x8x16x128xf32> to vector<8x16x128xf32>
    %72 = arith.addf %69, %71 : vector<8x16x128xf32>
    %c0_40 = arith.constant 0 : index
    %c0_41 = arith.constant 0 : index
    %c0_42 = arith.constant 0 : index
    %c0_43 = arith.constant 0 : index
    %73 = vector.load %arg7[%c0_40, %c0_41, %c0_42, %c0_43] : memref<1x8x16x128xf32, #tpu.memory_space<vmem>>, vector<1x8x16x128xf32>
    %74 = vector.shape_cast %73 : vector<1x8x16x128xf32> to vector<8x16x128xf32>
    %75 = vector.shape_cast %72 : vector<8x16x128xf32> to vector<1x8x16x128xf32>
    tpu.vector_store %arg7[%c0_40, %c0_41, %c0_42, %c0_43], %75 {strides = array<i32>} : memref<1x8x16x128xf32, #tpu.memory_space<vmem>>, vector<1x8x16x128xf32>,
    return
  }
  func.func @transform_1(%arg0: i32, %arg1: i32) -> (i32, i32, i32) {
    %c0_i32 = arith.constant 0 : i32
    %c0_i32_0 = arith.constant 0 : i32
    %c0_i32_1 = arith.constant 0 : i32
    %c0_i32_2 = arith.constant 0 : i32
    return %c0_i32, %c0_i32_0, %c0_i32_1 : i32, i32, i32
  }
  func.func @transform_2(%arg0: i32, %arg1: i32) -> (i32, i32) {
    %c0_i32 = arith.constant 0 : i32
    %c0_i32_0 = arith.constant 0 : i32
    %c0_i32_1 = arith.constant 0 : i32
    return %c0_i32, %c0_i32_0 : i32, i32
  }
  func.func @transform_3(%arg0: i32, %arg1: i32) -> (i32, i32) {
    %c0_i32 = arith.constant 0 : i32
    %c0_i32_0 = arith.constant 0 : i32
    %c0_i32_1 = arith.constant 0 : i32
    return %c0_i32, %c0_i32_0 : i32, i32
  }
  func.func @transform_4(%arg0: i32, %arg1: i32) -> (i32, i32, i32, i32) {
    %c0_i32 = arith.constant 0 : i32
    %c0_i32_0 = arith.constant 0 : i32
    %c0_i32_1 = arith.constant 0 : i32
    return %arg0, %arg1, %c0_i32, %c0_i32_0 : i32, i32, i32, i32
  }
  func.func @transform_5(%arg0: i32, %arg1: i32) -> (i32, i32, i32, i32) {
    %c0_i32 = arith.constant 0 : i32
    %c0_i32_0 = arith.constant 0 : i32
    %c0_i32_1 = arith.constant 0 : i32
    return %arg0, %arg1, %c0_i32, %c0_i32_0 : i32, i32, i32, i32
  }
}

</mosaic_0001>

<bundles_post_ra>
// kernel: residual_block_forward.8
= control target key start
LH: loop header
LB: loop body
LE: loop exit
PB: predicated region body
PF: predicated region fallthrough
CT: control target
= control target key end

     0   :  { %s727_s9 = smov 0   ;;  %s729_s10 = smov 0   ;;  %s855_s0 = inlined_call_operand.vmem [shape: f32[512,128], index: 0, kind: input, shape index: {}]   ;;  %s856_s1 = inlined_call_operand.vmem [shape: f32[128,128], index: 1, kind: input, shape index: {}]   ;;  %s857_s2 = inlined_call_operand.vmem [shape: f32[2,2,128], index: 2, kind: output, shape index: {}]  }
   0x1   :  { %s731_s11 = smov 0   ;;  %s733_s12 = smov 0  }
   0x2   :  { %s735_s13 = smov 0  }
   0x3 LB: > { %s21_s14 = sadd.s32 1, %s701_s11  ;;  %s24_s15 = sadd.s32 1, %s705_s12  ;;  %s709_s13 = sphi %s735_s13, %s12_s13   ;;  %s705_s12 = sphi %s733_s12, %s861_s12   ;;  %s701_s11 = sphi %s731_s11, %s860_s11   ;;  %s697_s10 = sphi %s729_s10, %s859_s10   ;;  %s693_s9 = sphi %s727_s9, %s858_s9  }
   0x4   : > { %p22_p0 = scmp.ge.s32.totalorder %s21_s14, 2  ;;  %p486_p1 = scmp.ge.s32.totalorder %s709_s13, 1 }
   0x5   : > { %p133_p2 = scmp.lt.s32.totalorder %s709_s13, 5 }
   0x6   : > { %s863_s14 = smov (%p22_p0, %s21_s14), 0  ;;  %s865_s15 = smov (!%p22_p0, %s24_s15), %s705_s12 }
   0x7   : > { %p134_p3 = pnand %p486_p1, %p133_p2  ;;  %p26_p4 = scmp.ge.s32.totalorder %s865_s15, 2 }
   0x8   : > { %p166_p5 = scmp.lt.s32.totalorder (!%p134_p3), %s697_s10, 1  ;;  %v186_v0 = vld [vmem:[%s856_s1] sm:$0xff] (!%p134_p3)  ;;  %v187_v1 = vld [vmem:[%s856_s1 + $0x8] sm:$0xff] (!%p134_p3)  ;;  %v188_v2 = vld [vmem:[%s856_s1 + $0x10] sm:$0xff] (!%p134_p3)  ;;  %s487_s22 = sshll.u32 (!%p134_p3), %s697_s10, 1 }
   0x9   : > { %s867_s15 = smov (%p26_p4, %s865_s15), 0  ;;  %137 = sbr.rel (%p134_p3) target bundleno = 317 (0x13d), region = 28 }
   0xa   : > { %v582_v3 = vpack.c.bf16 (!%p134_p3), %v187_v1, %v186_v0  ;;  %v189_v4 = vld [vmem:[%s856_s1 + $0x18] sm:$0xff] (!%p134_p3)  ;;  %s157_s25 = sadd.s32 (!%p134_p3), %s693_s9, %s487_s22  ;;  %v190_v6 = vld [vmem:[%s856_s1 + $0x20] sm:$0xff] (!%p134_p3)  ;;  %v191_v7 = vld [vmem:[%s856_s1 + $0x28] sm:$0xff] (!%p134_p3)  ;;  %p491_p7 = scmp.ne.s32.totalorder (!%p134_p3), %s693_s9, 0 }
   0xb   : > { %v586_v5 = vpack.c.bf16 (!%p134_p3), %v189_v4, %v188_v2  ;;  %s488_s30 = sshll.u32 (!%p134_p3), %s157_s25, 4  ;;  %v590_v8 = vpack.c.bf16 (!%p134_p3), %v191_v7, %v190_v6  ;;  %v192_v9 = vld [vmem:[%s856_s1 + $0x30] sm:$0xff] (!%p134_p3)  ;;  %v193_v10 = vld [vmem:[%s856_s1 + $0x38] sm:$0xff] (!%p134_p3)  ;;  %v194_v12 = vld [vmem:[%s856_s1 + $0x40] sm:$0xff] (!%p134_p3) }
   0xc   : > { %583 = vmatprep.subr.bf16.mxu0 (!%p134_p3), %v582_v3  ;;  %614 = vmatprep.subr.bf16.mxu1 (!%p134_p3), %v582_v3  ;;  %p159_p6 = scmp.lt.s32.totalorder (!%p134_p3), %s488_s30, 63  ;;  %v594_v11 = vpack.c.bf16 (!%p134_p3), %v193_v10, %v192_v9  ;;  %v195_v13 = vld [vmem:[%s856_s1 + $0x48] sm:$0xff] (!%p134_p3)  ;;  %v196_v17 = vld [vmem:[%s856_s1 + $0x50] sm:$0xff] (!%p134_p3)  ;;  %v197_v18 = vld [vmem:[%s856_s1 + $0x58] sm:$0xff] (!%p134_p3) }
   0xd   : > { %585 = vmatpush3.bf16.msra.mxu0 (!%p134_p3), %v582_v3  ;;  %622 = vmatpush3.bf16.msra.mxu1 (!%p134_p3), %v582_v3  ;;  %v598_v16 = vpack.c.bf16 (!%p134_p3), %v195_v13, %v194_v12  ;;  %v602_v19 = vpack.c.bf16 (!%p134_p3), %v197_v18, %v196_v17  ;;  %v198_v20 = vld [vmem:[%s856_s1 + $0x60] sm:$0xff] (!%p134_p3)  ;;  %v199_v21 = vld [vmem:[%s856_s1 + $0x68] sm:$0xff] (!%p134_p3)  ;;  %v200_v23 = vld [vmem:[%s856_s1 + $0x70] sm:$0xff] (!%p134_p3) }
   0xe   : > { %587 = vmatprep.subr.bf16.mxu0 (!%p134_p3), %v586_v5  ;;  %615 = vmatprep.subr.bf16.mxu1 (!%p134_p3), %v586_v5  ;;  %v606_v22 = vpack.c.bf16 (!%p134_p3), %v199_v21, %v198_v20  ;;  %v201_v24 = vld [vmem:[%s856_s1 + $0x78] sm:$0xff] (!%p134_p3) }
   0xf   : > { %v610_v25 = vpack.c.bf16 (!%p134_p3), %v201_v24, %v200_v23 }
  0x10   : > { %s869_s10 = smov (!%p166_p5, %s697_s10), 1  ;;  %s871_s30 = smov (!%p159_p6, %s488_s30), 63 }
  0x11   : > { %s490_s3 = sshll.u32 %s869_s10, 1  ;;  %589 = vmatpush3.bf16.msra.mxu0 %v586_v5  ;;  %623 = vmatpush3.bf16.msra.mxu1 %v586_v5  ;;  %s489_s10 = sshll.u32 %s871_s30, 3  ;;  %v711_v56 = vmov (!%p491_p7), 0.0  }
  0x12   : > { %s781_s6 = scalar_lea.vmem %s857_s2, %s490_s3  ;;  %591 = vmatprep.subr.bf16.mxu0 %v590_v8  ;;  %616 = vmatprep.subr.bf16.mxu1 %v590_v8  ;;  %s795_s22 = scalar_lea.vmem %s855_s0, %s489_s10 }
  0x13   : > { %v170_v14 = vld [vmem:[%s795_s22] sm:$0xff]  ;;  %v171_v26 = vld [vmem:[%s795_s22 + $0x8] sm:$0xff]  ;;  %v172_v28 = vld [vmem:[%s795_s22 + $0x10] sm:$0xff]  ;;  %351 = vst [vmem:[%s781_s6] sm:$0x3] (!%p491_p7), %v711_v56 }
  0x14   : > { %v178_v15 = vld [vmem:[%s795_s22 + $0x40] sm:$0xff]  ;;  %558 = vmatprep.mubr.f32.mxu0 %v170_v14  ;;  %v179_v27 = vld [vmem:[%s795_s22 + $0x48] sm:$0xff]  ;;  %v180_v29 = vld [vmem:[%s795_s22 + $0x50] sm:$0xff] }
  0x15   : > { %570 = vmatprep.mubr.f32.mxu1 %v178_v15  ;;  %593 = vmatpush3.bf16.msra.mxu0 %v590_v8  ;;  %v173_v30 = vld [vmem:[%s795_s22 + $0x18] sm:$0xff]  ;;  %v174_v32 = vld [vmem:[%s795_s22 + $0x20] sm:$0xff]  ;;  %v175_v34 = vld [vmem:[%s795_s22 + $0x28] sm:$0xff] }
  0x16   : > { %624 = vmatpush3.bf16.msra.mxu1 %v590_v8  ;;  %595 = vmatprep.subr.bf16.mxu0 %v594_v11  ;;  %v181_v31 = vld [vmem:[%s795_s22 + $0x58] sm:$0xff]  ;;  %v182_v33 = vld [vmem:[%s795_s22 + $0x60] sm:$0xff]  ;;  %v183_v35 = vld [vmem:[%s795_s22 + $0x68] sm:$0xff] }
  0x17   : > { %617 = vmatprep.subr.bf16.mxu1 %v594_v11  ;;  %v176_v36 = vld [vmem:[%s795_s22 + $0x30] sm:$0xff]  ;;  %v177_v38 = vld [vmem:[%s795_s22 + $0x38] sm:$0xff] }
  0x18   : > { %v184_v37 = vld [vmem:[%s795_s22 + $0x70] sm:$0xff]  ;;  %v185_v39 = vld [vmem:[%s795_s22 + $0x78] sm:$0xff] }
  0x19   : > { %597 = vmatpush3.bf16.msra.mxu0 %v594_v11 }
  0x1a   : > { %625 = vmatpush3.bf16.msra.mxu1 %v594_v11  ;;  %599 = vmatprep.subr.bf16.mxu0 %v598_v16 }
  0x1b   : > { %618 = vmatprep.subr.bf16.mxu1 %v598_v16 }
  0x1d   : > { %601 = vmatpush3.bf16.msra.mxu0 %v598_v16 }
  0x1e   : > { %626 = vmatpush3.bf16.msra.mxu1 %v598_v16  ;;  %603 = vmatprep.subr.bf16.mxu0 %v602_v19 }
  0x1f   : > { %619 = vmatprep.subr.bf16.mxu1 %v602_v19 }
  0x21   : > { %605 = vmatpush3.bf16.msra.mxu0 %v602_v19 }
  0x22   : > { %627 = vmatpush3.bf16.msra.mxu1 %v602_v19  ;;  %607 = vmatprep.subr.bf16.mxu0 %v606_v22 }
  0x23   : > { %620 = vmatprep.subr.bf16.mxu1 %v606_v22 }
  0x25   : > { %609 = vmatpush3.bf16.msra.mxu0 %v606_v22 }
  0x26   : > { %628 = vmatpush3.bf16.msra.mxu1 %v606_v22  ;;  %611 = vmatprep.subr.bf16.mxu0 %v610_v25 }
  0x27   : > { %621 = vmatprep.subr.bf16.mxu1 %v610_v25 }
  0x29   : > { %613 = vmatpush3.bf16.msra.mxu0 %v610_v25 }
  0x2a   : > { %629 = vmatpush3.bf16.msra.mxu1 %v610_v25 }
  0x2c   : > { %559 = vmatmul.mubr.f32.vlgmr.msra.gmra.mrb[0].mxu0 %v171_v26 }
  0x2d   : > { %571 = vmatmul.mubr.f32.vlgmr.msra.gmra.mrb[0].mxu1 %v179_v27  ;;  %561 = vmatprep.mubr.f32.mxu0 %v172_v28 }
  0x2e   : > { %573 = vmatprep.mubr.f32.mxu1 %v180_v29 }
  0x30   : > { %562 = vmatmul.mubr.f32.gmra.mrb[2].mxu0 %v173_v30 }
  0x31   : > { %574 = vmatmul.mubr.f32.gmra.mrb[2].mxu1 %v181_v31  ;;  %564 = vmatprep.mubr.f32.mxu0 %v174_v32 }
  0x32   : > { %576 = vmatprep.mubr.f32.mxu1 %v182_v33 }
  0x34   : > { %565 = vmatmul.mubr.f32.gmra.mrb[4].mxu0 %v175_v34 }
  0x35   : > { %577 = vmatmul.mubr.f32.gmra.mrb[4].mxu1 %v183_v35  ;;  %567 = vmatprep.mubr.f32.mxu0 %v176_v36 }
  0x36   : > { %579 = vmatprep.mubr.f32.mxu1 %v184_v37 }
  0x38   : > { %568 = vmatmul.mubr.f32.gmra.mrb[6].mxu0 %v177_v38 }
  0x39   : > { %580 = vmatmul.mubr.f32.gmra.mrb[6].mxu1 %v185_v39 }
  0xff   : > { %v560_v40 = vpop.f32.mrb[0].mxu0 }
 0x100   : > { %v572_v41 = vpop.f32.mrb[0].mxu1  ;;  %v268_v42 = vpop.f32.mrb[1].mxu0 }
 0x101   : > { %v308_v43 = vpop.f32.mrb[1].mxu1 }
 0x103   : > { %v563_v44 = vpop.f32.mrb[2].mxu0 }
 0x104   : > { %v575_v45 = vpop.f32.mrb[2].mxu1  ;;  %v278_v46 = vpop.f32.mrb[3].mxu0 }
 0x105   : > { %v318_v47 = vpop.f32.mrb[3].mxu1 }
 0x107   : > { %v566_v48 = vpop.f32.mrb[4].mxu0  ;;  %350 = sbr.rel (%p491_p7) target bundleno = 270 (0x10e), region = 32 }
 0x108   : > { %v578_v49 = vpop.f32.mrb[4].mxu1  ;;  %v288_v50 = vpop.f32.mrb[5].mxu0 }
 0x109   : > { %v328_v51 = vpop.f32.mrb[5].mxu1 }
 0x10b   : > { %v569_v52 = vpop.f32.mrb[6].mxu0 }
 0x10c   : > { %v581_v53 = vpop.f32.mrb[6].mxu1  ;;  %v298_v54 = vpop.f32.mrb[7].mxu0 }
 0x10d   : > { %v338_v55 = vpop.f32.mrb[7].mxu1 }
 0x10e PF: > { %v353_v57 = vadd.f32 %v560_v40, %v268_v42  ;;  %v377_v58 = vmul.f32 %v268_v42, %v268_v42  ;;  %v378_v59 = vmul.f32 %v560_v40, %v560_v40  ;;  %v379_v61 = vmul.f32 %v278_v46, %v278_v46 }
 0x10f   : > { %v380_v63 = vmul.f32 %v563_v44, %v563_v44  ;;  %v381_v2 = vmul.f32 %v288_v50, %v288_v50  ;;  %v382_v5 = vmul.f32 %v566_v48, %v566_v48  ;;  %v383_v8 = vmul.f32 %v298_v54, %v298_v54 }
 0x110   : > { %v354_v60 = vadd.f32 %v353_v57, %v278_v46  ;;  %v393_v0 = vadd.f32 %v378_v59, %v377_v58  ;;  %v384_v11 = vmul.f32 %v569_v52, %v569_v52  ;;  %v385_v14 = vmul.f32 %v308_v43, %v308_v43 }
 0x111   : > { %v386_v17 = vmul.f32 %v572_v41, %v572_v41  ;;  %v387_v20 = vmul.f32 %v318_v47, %v318_v47  ;;  %v388_v23 = vmul.f32 %v575_v45, %v575_v45  ;;  %v389_v26 = vmul.f32 %v328_v51, %v328_v51 }
 0x112   : > { %v355_v62 = vadd.f32 %v563_v44, %v354_v60  ;;  %v394_v3 = vadd.f32 %v393_v0, %v379_v61  ;;  %v390_v29 = vmul.f32 %v578_v49, %v578_v49  ;;  %v391_v32 = vmul.f32 %v338_v55, %v338_v55 }
 0x113   : > { %v392_v35 = vmul.f32 %v581_v53, %v581_v53 }
 0x114   : > { %v356_v1 = vadd.f32 %v355_v62, %v288_v50  ;;  %v395_v6 = vadd.f32 %v394_v3, %v380_v63 }
 0x116   : > { %v357_v4 = vadd.f32 %v566_v48, %v356_v1  ;;  %v396_v9 = vadd.f32 %v395_v6, %v381_v2 }
 0x118   : > { %v358_v7 = vadd.f32 %v357_v4, %v298_v54  ;;  %v397_v12 = vadd.f32 %v396_v9, %v382_v5 }
 0x11a   : > { %v359_v10 = vadd.f32 %v569_v52, %v358_v7  ;;  %v398_v15 = vadd.f32 %v397_v12, %v383_v8  ;;  %v376_v52 = vld [vmem:[%s781_s6 + $0x1] sm:$0x1] }
 0x11c   : > { %v360_v13 = vadd.f32 %v359_v10, %v308_v43  ;;  %v399_v18 = vadd.f32 %v398_v15, %v384_v11 }
 0x11e   : > { %v361_v16 = vadd.f32 %v572_v41, %v360_v13  ;;  %v400_v21 = vadd.f32 %v399_v18, %v385_v14 }
 0x120   : > { %v362_v19 = vadd.f32 %v361_v16, %v318_v47  ;;  %v401_v24 = vadd.f32 %v400_v21, %v386_v17  ;;  %v352_v47 = vld [vmem:[%s781_s6] sm:$0x1] }
 0x122   : > { %v363_v22 = vadd.f32 %v575_v45, %v362_v19  ;;  %v402_v27 = vadd.f32 %v401_v24, %v387_v20 }
 0x124   : > { %v364_v25 = vadd.f32 %v363_v22, %v328_v51  ;;  %v403_v30 = vadd.f32 %v402_v27, %v388_v23 }
 0x126   : > { %v365_v28 = vadd.f32 %v578_v49, %v364_v25  ;;  %v404_v33 = vadd.f32 %v403_v30, %v389_v26 }
 0x128   : > { %v366_v31 = vadd.f32 %v365_v28, %v338_v55  ;;  %v405_v36 = vadd.f32 %v404_v33, %v390_v29 }
 0x12a   : > { %v367_v34 = vadd.f32 %v581_v53, %v366_v31  ;;  %v406_v38 = vadd.f32 %v405_v36, %v391_v32 }
 0x12c   : > { %v368_v37 = vrot.slane %v367_v34, 4  ;;  %v407_v40 = vadd.f32 %v406_v38, %v392_v35 }
 0x12e   : > { %v369_v39 = vadd.f32 %v368_v37, %v367_v34  ;;  %v408_v42 = vrot.slane %v407_v40, 4 }
 0x130   : > { %v370_v41 = vrot.slane %v369_v39, 2  ;;  %v409_v44 = vadd.f32 %v408_v42, %v407_v40 }
 0x132   : > { %v371_v43 = vadd.f32 %v370_v41, %v369_v39  ;;  %v410_v46 = vrot.slane %v409_v44, 2 }
 0x134   : > { %v372_v45 = vrot.slane %v371_v43, 1  ;;  %v411_v49 = vadd.f32 %v410_v46, %v409_v44 }
 0x136   : > { %v373_v48 = vadd.f32 %v372_v45, %v371_v43  ;;  %v412_v51 = vrot.slane %v411_v49, 1 }
 0x138   : > { %v374_v50 = vadd.f32 %v373_v48, %v352_v47  ;;  %v413_v53 = vadd.f32 %v412_v51, %v411_v49 }
 0x13a   : > { %375 = vst [vmem:[%s781_s6] sm:$0x1] %v374_v50  ;;  %v414_v54 = vadd.f32 %v413_v53, %v376_v52 }
 0x13c   : > { %415 = vst [vmem:[%s781_s6 + $0x1] sm:$0x1] %v414_v54 }
 0x13d PF: > { %s12_s13 = sadd.s32 1, %s709_s13   ;;  %s858_s9 = smov %s701_s11 }
 0x13e   : > { %p9_p8 = scmp.ge.s32.totalorder %s12_s13, 6   ;;  %s859_s10 = smov %s705_s12 }
 0x13f   : > { %s860_s11 = smov %s863_s14  ;;  %s861_s12 = smov %s867_s15 }
 0x140   :  { %11 = sbr.rel (!%p9_p8) target bundleno = 3 (0x3), region = 62 }

// kernel: residual_block_forward.9
= control target key start
LH: loop header
LB: loop body
LE: loop exit
PB: predicated region body
PF: predicated region fallthrough
CT: control target
= control target key end

     0   :  { %s734_s15 = smov 0   ;;  %s884_s0 = inlined_call_operand.vmem [shape: f32[512,128], index: 0, kind: input, shape index: {}]   ;;  %s885_s1 = inlined_call_operand.vmem [shape: f32[128,128], index: 1, kind: input, shape index: {}]   ;;  %s886_s2 = inlined_call_operand.vmem [shape: f32[1,128], index: 2, kind: input, shape index: {}]   ;;  %s887_s3 = inlined_call_operand.vmem [shape: f32[1,128], index: 3, kind: input, shape index: {}]   ;;  %s888_s4 = inlined_call_operand.vmem [shape: f32[512,128], index: 4, kind: output, shape index: {}]  }
   0x1 LB: > { %s544_s16 = sadd.s32 4294967295, %s707_s15   ;;  %p548_p0 = scmp.ge.s32.totalorder %s707_s15, 1  ;;  %s707_s15 = sphi %s734_s15, %s14_s15  }
   0x2   : > { %p163_p1 = scmp.lt.s32.totalorder %s707_s15, 5 }
   0x4   : > { %p164_p2 = pnand %p548_p0, %p163_p1 }
   0x5   : > { %v217_v0 = vld [vmem:[%s885_s1] sm:$0xff] (!%p164_p2)  ;;  %v218_v1 = vld [vmem:[%s885_s1 + $0x8] sm:$0xff] (!%p164_p2)  ;;  %v219_v2 = vld [vmem:[%s885_s1 + $0x10] sm:$0xff] (!%p164_p2)  ;;  %s549_s23 = sshll.u32 (!%p164_p2), %s544_s16, 4 }
   0x6   : > { %167 = sbr.rel (%p164_p2) target bundleno = 278 (0x116), region = 36  ;;  %v645_v3 = vpack.c.bf16 (!%p164_p2), %v218_v1, %v217_v0  ;;  %v220_v4 = vld [vmem:[%s885_s1 + $0x18] sm:$0xff] (!%p164_p2)  ;;  %p190_p3 = scmp.lt.s32.totalorder (!%p164_p2), %s549_s23, 63  ;;  %v221_v6 = vld [vmem:[%s885_s1 + $0x20] sm:$0xff] (!%p164_p2)  ;;  %v222_v7 = vld [vmem:[%s885_s1 + $0x28] sm:$0xff] (!%p164_p2) }
   0x7   : > { %v649_v5 = vpack.c.bf16 (!%p164_p2), %v220_v4, %v219_v2  ;;  %v653_v8 = vpack.c.bf16 (!%p164_p2), %v222_v7, %v221_v6  ;;  %v223_v9 = vld [vmem:[%s885_s1 + $0x30] sm:$0xff] (!%p164_p2)  ;;  %v224_v10 = vld [vmem:[%s885_s1 + $0x38] sm:$0xff] (!%p164_p2)  ;;  %v225_v14 = vld [vmem:[%s885_s1 + $0x40] sm:$0xff] (!%p164_p2) }
   0x8   : > { %646 = vmatprep.subr.bf16.mxu0 (!%p164_p2), %v645_v3  ;;  %677 = vmatprep.subr.bf16.mxu1 (!%p164_p2), %v645_v3  ;;  %v657_v13 = vpack.c.bf16 (!%p164_p2), %v224_v10, %v223_v9  ;;  %v226_v15 = vld [vmem:[%s885_s1 + $0x48] sm:$0xff] (!%p164_p2)  ;;  %v227_v17 = vld [vmem:[%s885_s1 + $0x50] sm:$0xff] (!%p164_p2)  ;;  %v228_v18 = vld [vmem:[%s885_s1 + $0x58] sm:$0xff] (!%p164_p2) }
   0x9   : > { %648 = vmatpush3.bf16.msra.mxu0 (!%p164_p2), %v645_v3  ;;  %685 = vmatpush3.bf16.msra.mxu1 (!%p164_p2), %v645_v3  ;;  %v661_v16 = vpack.c.bf16 (!%p164_p2), %v226_v15, %v225_v14  ;;  %v665_v19 = vpack.c.bf16 (!%p164_p2), %v228_v18, %v227_v17  ;;  %v229_v20 = vld [vmem:[%s885_s1 + $0x60] sm:$0xff] (!%p164_p2)  ;;  %v230_v21 = vld [vmem:[%s885_s1 + $0x68] sm:$0xff] (!%p164_p2)  ;;  %v231_v23 = vld [vmem:[%s885_s1 + $0x70] sm:$0xff] (!%p164_p2) }
   0xa   : > { %650 = vmatprep.subr.bf16.mxu0 (!%p164_p2), %v649_v5  ;;  %678 = vmatprep.subr.bf16.mxu1 (!%p164_p2), %v649_v5  ;;  %v669_v22 = vpack.c.bf16 (!%p164_p2), %v230_v21, %v229_v20  ;;  %v232_v24 = vld [vmem:[%s885_s1 + $0x78] sm:$0xff] (!%p164_p2)  ;;  %v819_v40 = vld [vmem:[%s886_s2] ss:$0 sm:$0xff] (!%p164_p2) }
   0xb   : > { %v673_v25 = vpack.c.bf16 (!%p164_p2), %v232_v24, %v231_v23  ;;  %v824_v42 = vld [vmem:[%s887_s3] ss:$0 sm:$0xff] (!%p164_p2) }
   0xd   : > { %s890_s23 = smov (!%p190_p3, %s549_s23), 63  ;;  %652 = vmatpush3.bf16.msra.mxu0 %v649_v5  ;;  %686 = vmatpush3.bf16.msra.mxu1 %v649_v5 }
   0xe   : > { %s550_s30 = sshll.u32 %s890_s23, 3  ;;  %654 = vmatprep.subr.bf16.mxu0 %v653_v8  ;;  %679 = vmatprep.subr.bf16.mxu1 %v653_v8 }
   0xf   : > { %s774_s11 = scalar_lea.vmem %s884_s0, %s550_s30 }
  0x10   : > { %v201_v11 = vld [vmem:[%s774_s11] sm:$0xff]  ;;  %v202_v26 = vld [vmem:[%s774_s11 + $0x8] sm:$0xff]  ;;  %v203_v28 = vld [vmem:[%s774_s11 + $0x10] sm:$0xff] }
  0x11   : > { %v209_v12 = vld [vmem:[%s774_s11 + $0x40] sm:$0xff]  ;;  %621 = vmatprep.mubr.f32.mxu0 %v201_v11  ;;  %656 = vmatpush3.bf16.msra.mxu0 %v653_v8  ;;  %v210_v27 = vld [vmem:[%s774_s11 + $0x48] sm:$0xff]  ;;  %v211_v29 = vld [vmem:[%s774_s11 + $0x50] sm:$0xff] }
  0x12   : > { %633 = vmatprep.mubr.f32.mxu1 %v209_v12  ;;  %687 = vmatpush3.bf16.msra.mxu1 %v653_v8  ;;  %v204_v30 = vld [vmem:[%s774_s11 + $0x18] sm:$0xff]  ;;  %v205_v32 = vld [vmem:[%s774_s11 + $0x20] sm:$0xff]  ;;  %v206_v34 = vld [vmem:[%s774_s11 + $0x28] sm:$0xff] }
  0x13   : > { %658 = vmatprep.subr.bf16.mxu0 %v657_v13  ;;  %680 = vmatprep.subr.bf16.mxu1 %v657_v13  ;;  %v212_v31 = vld [vmem:[%s774_s11 + $0x58] sm:$0xff]  ;;  %v213_v33 = vld [vmem:[%s774_s11 + $0x60] sm:$0xff]  ;;  %v214_v35 = vld [vmem:[%s774_s11 + $0x68] sm:$0xff] }
  0x14   : > { %v207_v36 = vld [vmem:[%s774_s11 + $0x30] sm:$0xff]  ;;  %v208_v38 = vld [vmem:[%s774_s11 + $0x38] sm:$0xff] }
  0x15   : > { %660 = vmatpush3.bf16.msra.mxu0 %v657_v13  ;;  %v215_v37 = vld [vmem:[%s774_s11 + $0x70] sm:$0xff]  ;;  %v216_v39 = vld [vmem:[%s774_s11 + $0x78] sm:$0xff]  ;;  %s839_s11 = scalar_lea.vmem %s888_s4, %s550_s30 }
  0x16   : > { %688 = vmatpush3.bf16.msra.mxu1 %v657_v13  ;;  %662 = vmatprep.subr.bf16.mxu0 %v661_v16 }
  0x17   : > { %681 = vmatprep.subr.bf16.mxu1 %v661_v16 }
  0x19   : > { %664 = vmatpush3.bf16.msra.mxu0 %v661_v16 }
  0x1a   : > { %689 = vmatpush3.bf16.msra.mxu1 %v661_v16  ;;  %666 = vmatprep.subr.bf16.mxu0 %v665_v19 }
  0x1b   : > { %682 = vmatprep.subr.bf16.mxu1 %v665_v19 }
  0x1d   : > { %668 = vmatpush3.bf16.msra.mxu0 %v665_v19 }
  0x1e   : > { %690 = vmatpush3.bf16.msra.mxu1 %v665_v19  ;;  %670 = vmatprep.subr.bf16.mxu0 %v669_v22 }
  0x1f   : > { %683 = vmatprep.subr.bf16.mxu1 %v669_v22 }
  0x21   : > { %672 = vmatpush3.bf16.msra.mxu0 %v669_v22 }
  0x22   : > { %691 = vmatpush3.bf16.msra.mxu1 %v669_v22  ;;  %674 = vmatprep.subr.bf16.mxu0 %v673_v25 }
  0x23   : > { %684 = vmatprep.subr.bf16.mxu1 %v673_v25 }
  0x25   : > { %676 = vmatpush3.bf16.msra.mxu0 %v673_v25 }
  0x26   : > { %692 = vmatpush3.bf16.msra.mxu1 %v673_v25 }
  0x28   : > { %622 = vmatmul.mubr.f32.vlgmr.msra.gmra.mrb[0].mxu0 %v202_v26 }
  0x29   : > { %634 = vmatmul.mubr.f32.vlgmr.msra.gmra.mrb[0].mxu1 %v210_v27  ;;  %624 = vmatprep.mubr.f32.mxu0 %v203_v28 }
  0x2a   : > { %636 = vmatprep.mubr.f32.mxu1 %v211_v29 }
  0x2c   : > { %625 = vmatmul.mubr.f32.gmra.mrb[2].mxu0 %v204_v30 }
  0x2d   : > { %637 = vmatmul.mubr.f32.gmra.mrb[2].mxu1 %v212_v31  ;;  %627 = vmatprep.mubr.f32.mxu0 %v205_v32 }
  0x2e   : > { %639 = vmatprep.mubr.f32.mxu1 %v213_v33 }
  0x30   : > { %628 = vmatmul.mubr.f32.gmra.mrb[4].mxu0 %v206_v34 }
  0x31   : > { %640 = vmatmul.mubr.f32.gmra.mrb[4].mxu1 %v214_v35  ;;  %630 = vmatprep.mubr.f32.mxu0 %v207_v36 }
  0x32   : > { %642 = vmatprep.mubr.f32.mxu1 %v215_v37 }
  0x34   : > { %631 = vmatmul.mubr.f32.gmra.mrb[6].mxu0 %v208_v38 }
  0x35   : > { %643 = vmatmul.mubr.f32.gmra.mrb[6].mxu1 %v216_v39 }
  0xfb   : > { %v623_v41 = vpop.f32.mrb[0].mxu0 }
  0xfc   : > { %v635_v43 = vpop.f32.mrb[0].mxu1  ;;  %v386_v44 = vmul.f32 %v623_v41, %v819_v40  ;;  %v299_v46 = vpop.f32.mrb[1].mxu0 }
  0xfd   : > { %v394_v45 = vmul.f32 %v635_v43, %v819_v40  ;;  %v339_v47 = vpop.f32.mrb[1].mxu1  ;;  %v385_v48 = vmul.f32 %v819_v40, %v299_v46 }
  0xfe   : > { %v393_v49 = vmul.f32 %v819_v40, %v339_v47  ;;  %v409_v50 = vadd.f32 %v824_v42, %v386_v44 }
  0xff   : > { %v417_v51 = vadd.f32 %v824_v42, %v394_v45  ;;  %v408_v52 = vadd.f32 %v824_v42, %v385_v48  ;;  %v626_v54 = vpop.f32.mrb[2].mxu0 }
 0x100   : > { %v416_v53 = vadd.f32 %v824_v42, %v393_v49  ;;  %v638_v55 = vpop.f32.mrb[2].mxu1  ;;  %vm425_vm0 = vcmp.gt.f32.partialorder %v409_v50, 0.0  ;;  %v441_v56 = vmul.f32 0.1, %v409_v50  ;;  %v388_v62 = vmul.f32 %v626_v54, %v819_v40  ;;  %v309_v0 = vpop.f32.mrb[3].mxu0 }
 0x101   : > { %vm433_vm1 = vcmp.gt.f32.partialorder %v417_v51, 0.0  ;;  %v449_v57 = vmul.f32 0.1, %v417_v51  ;;  %vm424_vm2 = vcmp.gt.f32.partialorder %v408_v52, 0.0  ;;  %v440_v58 = vmul.f32 0.1, %v408_v52 }
 0x102   : > { %vm432_vm3 = vcmp.gt.f32.partialorder %v416_v53, 0.0  ;;  %v448_v59 = vmul.f32 0.1, %v416_v53  ;;  %v457_v60 = vsel %vm425_vm0, %v409_v50, %v441_v56  ;;  %v396_v63 = vmul.f32 %v638_v55, %v819_v40  ;;  %v349_v1 = vpop.f32.mrb[3].mxu1 }
 0x103   : > { %v465_v61 = vsel %vm433_vm1, %v417_v51, %v449_v57  ;;  %473 = vst [vmem:[%s839_s11 + $0x8] sm:$0xff] %v457_v60  ;;  %v456_v2 = vsel %vm424_vm2, %v408_v52, %v440_v58  ;;  %v387_v4 = vmul.f32 %v819_v40, %v309_v0  ;;  %v395_v5 = vmul.f32 %v819_v40, %v349_v1  ;;  %v629_v6 = vpop.f32.mrb[4].mxu0 }
 0x104   : > { %481 = vst [vmem:[%s839_s11 + $0x48] sm:$0xff] %v465_v61  ;;  %v464_v3 = vsel %vm432_vm3, %v416_v53, %v448_v59  ;;  %v641_v7 = vpop.f32.mrb[4].mxu1  ;;  %472 = vst [vmem:[%s839_s11] sm:$0xff] %v456_v2  ;;  %v411_v8 = vadd.f32 %v824_v42, %v388_v62  ;;  %v419_v9 = vadd.f32 %v824_v42, %v396_v63  ;;  %v319_v12 = vpop.f32.mrb[5].mxu0 }
 0x105   : > { %480 = vst [vmem:[%s839_s11 + $0x40] sm:$0xff] %v464_v3  ;;  %v390_v10 = vmul.f32 %v629_v6, %v819_v40  ;;  %v398_v11 = vmul.f32 %v641_v7, %v819_v40  ;;  %v359_v13 = vpop.f32.mrb[5].mxu1  ;;  %v410_v14 = vadd.f32 %v824_v42, %v387_v4  ;;  %v418_v15 = vadd.f32 %v824_v42, %v395_v5 }
 0x106   : > { %v389_v16 = vmul.f32 %v819_v40, %v319_v12  ;;  %v397_v17 = vmul.f32 %v819_v40, %v359_v13  ;;  %vm427_vm4 = vcmp.gt.f32.partialorder %v411_v8, 0.0  ;;  %v443_v18 = vmul.f32 0.1, %v411_v8 }
 0x107   : > { %vm435_vm5 = vcmp.gt.f32.partialorder %v419_v9, 0.0  ;;  %v451_v19 = vmul.f32 0.1, %v419_v9  ;;  %vm426_vm6 = vcmp.gt.f32.partialorder %v410_v14, 0.0  ;;  %v442_v20 = vmul.f32 0.1, %v410_v14 }
 0x108   : > { %vm434_vm7 = vcmp.gt.f32.partialorder %v418_v15, 0.0  ;;  %v450_v21 = vmul.f32 0.1, %v418_v15  ;;  %v459_v22 = vsel %vm427_vm4, %v411_v8, %v443_v18  ;;  %v413_v24 = vadd.f32 %v824_v42, %v390_v10  ;;  %v632_v26 = vpop.f32.mrb[6].mxu0  ;;  %v644_v27 = vpop.f32.mrb[6].mxu1 }
 0x109   : > { %v467_v23 = vsel %vm435_vm5, %v419_v9, %v451_v19  ;;  %v421_v25 = vadd.f32 %v824_v42, %v398_v11  ;;  %475 = vst [vmem:[%s839_s11 + $0x18] sm:$0xff] %v459_v22  ;;  %v458_v28 = vsel %vm426_vm6, %v410_v14, %v442_v20  ;;  %v412_v30 = vadd.f32 %v824_v42, %v389_v16  ;;  %v329_v32 = vpop.f32.mrb[7].mxu0  ;;  %v369_v33 = vpop.f32.mrb[7].mxu1 }
 0x10a   : > { %483 = vst [vmem:[%s839_s11 + $0x58] sm:$0xff] %v467_v23  ;;  %v466_v29 = vsel %vm434_vm7, %v418_v15, %v450_v21  ;;  %v420_v31 = vadd.f32 %v824_v42, %v397_v17  ;;  %474 = vst [vmem:[%s839_s11 + $0x10] sm:$0xff] %v458_v28  ;;  %vm429_vm8 = vcmp.gt.f32.partialorder %v413_v24, 0.0  ;;  %v445_v34 = vmul.f32 0.1, %v413_v24 }
 0x10b   : > { %482 = vst [vmem:[%s839_s11 + $0x50] sm:$0xff] %v466_v29  ;;  %vm437_vm9 = vcmp.gt.f32.partialorder %v421_v25, 0.0  ;;  %v453_v35 = vmul.f32 0.1, %v421_v25  ;;  %vm428_vm10 = vcmp.gt.f32.partialorder %v412_v30, 0.0  ;;  %v392_v41 = vmul.f32 %v632_v26, %v819_v40 }
 0x10c   : > { %v444_v36 = vmul.f32 0.1, %v412_v30  ;;  %vm436_vm11 = vcmp.gt.f32.partialorder %v420_v31, 0.0  ;;  %v452_v37 = vmul.f32 0.1, %v420_v31  ;;  %v461_v38 = vsel %vm429_vm8, %v413_v24, %v445_v34 }
 0x10d   : > { %v469_v39 = vsel %vm437_vm9, %v421_v25, %v453_v35  ;;  %v400_v43 = vmul.f32 %v644_v27, %v819_v40  ;;  %477 = vst [vmem:[%s839_s11 + $0x28] sm:$0xff] %v461_v38  ;;  %v391_v46 = vmul.f32 %v819_v40, %v329_v32  ;;  %v399_v47 = vmul.f32 %v819_v40, %v369_v33 }
 0x10e   : > { %485 = vst [vmem:[%s839_s11 + $0x68] sm:$0xff] %v469_v39  ;;  %v460_v44 = vsel %vm428_vm10, %v412_v30, %v444_v36  ;;  %v468_v45 = vsel %vm436_vm11, %v420_v31, %v452_v37  ;;  %v415_v48 = vadd.f32 %v824_v42, %v392_v41 }
 0x10f   : > { %476 = vst [vmem:[%s839_s11 + $0x20] sm:$0xff] %v460_v44  ;;  %484 = vst [vmem:[%s839_s11 + $0x60] sm:$0xff] %v468_v45  ;;  %v423_v49 = vadd.f32 %v824_v42, %v400_v43  ;;  %v414_v50 = vadd.f32 %v824_v42, %v391_v46  ;;  %v422_v51 = vadd.f32 %v824_v42, %v399_v47 }
 0x110   : > { %vm431_vm12 = vcmp.gt.f32.partialorder %v415_v48, 0.0  ;;  %v447_v52 = vmul.f32 0.1, %v415_v48 }
 0x111   : > { %vm439_vm13 = vcmp.gt.f32.partialorder %v423_v49, 0.0  ;;  %v455_v53 = vmul.f32 0.1, %v423_v49  ;;  %vm430_vm14 = vcmp.gt.f32.partialorder %v414_v50, 0.0  ;;  %v446_v40 = vmul.f32 0.1, %v414_v50 }
 0x112   : > { %vm438_vm15 = vcmp.gt.f32.partialorder %v422_v51, 0.0  ;;  %v454_v54 = vmul.f32 0.1, %v422_v51  ;;  %v463_v55 = vsel %vm431_vm12, %v415_v48, %v447_v52 }
 0x113   : > { %v471_v56 = vsel %vm439_vm13, %v423_v49, %v455_v53  ;;  %479 = vst [vmem:[%s839_s11 + $0x38] sm:$0xff] %v463_v55  ;;  %v462_v57 = vsel %vm430_vm14, %v414_v50, %v446_v40 }
 0x114   : > { %487 = vst [vmem:[%s839_s11 + $0x78] sm:$0xff] %v471_v56  ;;  %v470_v58 = vsel %vm438_vm15, %v422_v51, %v454_v54  ;;  %478 = vst [vmem:[%s839_s11 + $0x30] sm:$0xff] %v462_v57 }
 0x115   : > { %486 = vst [vmem:[%s839_s11 + $0x70] sm:$0xff] %v470_v58 }
 0x116 PF: > { %s14_s15 = sadd.s32 1, %s707_s15  }
 0x117   : > { %p11_p4 = scmp.ge.s32.totalorder %s14_s15, 6  }
 0x119   :  { %13 = sbr.rel (!%p11_p4) target bundleno = 1 (0x1), region = 66 }

// kernel: residual_block_forward.11
= control target key start
LH: loop header
LB: loop body
LE: loop exit
PB: predicated region body
PF: predicated region fallthrough
CT: control target
= control target key end

     0   :  { %s3610_s18 = smov 0   ;;  %s3612_s19 = smov 0   ;;  %s5093_s0 = inlined_call_operand.vmem [shape: f32[2,16,16,128], index: 0, kind: input, shape index: {}]   ;;  %s5094_s1 = inlined_call_operand.vmem [shape: f32[3,384,128], index: 1, kind: input, shape index: {}]   ;;  %s5095_s2 = inlined_call_operand.vmem [shape: f32[1,128], index: 2, kind: input, shape index: {}]   ;;  %s5096_s3 = inlined_call_operand.vmem [shape: f32[1,128], index: 3, kind: input, shape index: {}]   ;;  %s5097_s4 = inlined_call_operand.vmem [shape: f32[2,16,16,128], index: 4, kind: input, shape index: {}, may-alias: {4,5}]   ;;  %s5098_s5 = inlined_call_operand.vmem [shape: f32[2,16,16,128], index: 5, kind: output, shape index: {}, may-alias: {4,5}]  }
   0x1   :  { %s3614_s20 = smov 0   ;;  %s3616_s21 = smov 0  }
   0x2   :  { %s3618_s22 = smov 0  }
   0x3 LB: > { %s24_s23 = sadd.s32 1, %s3568_s20  ;;  %s27_s24 = sadd.s32 1, %s3572_s21  ;;  %s3576_s22 = sphi %s3618_s22, %s15_s22   ;;  %s3572_s21 = sphi %s3616_s21, %s5162_s21   ;;  %s3568_s20 = sphi %s3614_s20, %s5161_s20   ;;  %s3564_s19 = sphi %s3612_s19, %s5160_s19   ;;  %s3560_s18 = sphi %s3610_s18, %s5159_s18  }
   0x4   : > { %p25_p0 = scmp.ge.s32.totalorder %s24_s23, 2  ;;  %p2421_p1 = scmp.ge.s32.totalorder %s3576_s22, 1 }
   0x5   : > { %p185_p2 = scmp.lt.s32.totalorder %s3576_s22, 5 }
   0x6   : > { %s5164_s23 = smov (%p25_p0, %s24_s23), 0  ;;  %s5166_s24 = smov (!%p25_p0, %s27_s24), %s3572_s21 }
   0x7   : > { %p186_p3 = pnand %p2421_p1, %p185_p2  ;;  %p29_p4 = scmp.ge.s32.totalorder %s5166_s24, 2 }
   0x9   : > { %s5168_s24 = smov (%p29_p4, %s5166_s24), 0  ;;  %189 = sbr.rel (%p186_p3) target bundleno = 540 (0x21c), region = 36 }
  0x10   : > { %s3645_s25 = sshll.u32 %s3560_s18, 3  ;;  %p222_p5 = scmp.lt.s32.totalorder %s3564_s19, 1 }
  0x11   : > { %p224_p6 = scmp.lt.s32.totalorder %s3645_s25, 15  ;;  %p243_p7 = scmp.lt.s32.totalorder %s3560_s18, 0 }
  0x12   : > { %s223_s26 = scalar_select %p222_p5, %s3564_s19, 1 }
  0x13   : > { %s225_s27 = scalar_select %p224_p6, %s3645_s25, 15 }
  0x14   : > { %s2424_s28 = sshll.u32 %s223_s26, 5  ;;  %s244_s29 = ssub.s32 0, %s3560_s18 }
  0x15   : > { %s2423_s30 = sshll.u32 %s225_s27, 1  ;;  %s2430_s6 = smin.u32 %s3560_s18, %s244_s29 }
  0x16   : > { %s228_s7 = sadd.s32 %s2424_s28, %s2423_s30  ;;  %s246_s8 = sand.u32 1, %s2430_s6  }
  0x17   : > { %s2425_s9 = sshll.u32 %s228_s7, 3  ;;  %s247_s10 = ssub.s32 0, %s246_s8 }
  0x18   : > { %s3657_s13 = scalar_lea.vmem %s5097_s4, %s2425_s9  ;;  %s3662_s16 = scalar_lea.vmem %s5098_s5, %s2425_s9 }
  0x19   : > { %s5170_s10 = smov (!%p243_p7, %s247_s10), %s246_s8  ;;  %p2431_p8 = scmp.ne.s32.totalorder %s3560_s18, 0 }
  0x1a   : > { %s2683_s17 = sshll.u32 (!%p2431_p8), %s3560_s18, 7  ;;  %s2434_s26 = sshll.u32 (!%p2431_p8), %s3564_s19, 8 }
  0x1b   : > { %252 = sbr.rel (%p2431_p8) target bundleno = 59 (0x3b), region = 40  ;;  %s258_s27 = sadd.s32 (!%p2431_p8), %s2683_s17, %s2434_s26 }
  0x1c   : > { %s2435_s28 = smul.u32 (!%p2431_p8), 160, %s5170_s10  ;;  %s3677_s6 = scalar_lea.vmem (!%p2431_p8), %s5093_s0, %s258_s27 }
  0x1d   : > { %s262_s7 = smul.u32 (!%p2431_p8), 3, %s5170_s10  ;;  %v296_v0 = vld [vmem:[%s3677_s6] sm:$0xff] (!%p2431_p8)  ;;  %v298_v1 = vld [vmem:[%s3677_s6 + $0x8] sm:$0xff] (!%p2431_p8)  ;;  %v300_v2 = vld [vmem:[%s3677_s6 + $0x10] sm:$0xff] (!%p2431_p8) }
  0x1e   : > { %s3683_s8 = scalar_lea.vmem (!%p2431_p8), [#allocation2], %s2435_s28  ;;  %v302_v3 = vld [vmem:[%s3677_s6 + $0x18] sm:$0xff] (!%p2431_p8)  ;;  %v304_v4 = vld [vmem:[%s3677_s6 + $0x20] sm:$0xff] (!%p2431_p8)  ;;  %v306_v5 = vld [vmem:[%s3677_s6 + $0x28] sm:$0xff] (!%p2431_p8) }
  0x1f   : > { %2436 = vst [vmem:[%s3683_s8 + $0x10] sm:$0xff] (!%p2431_p8), %v296_v0  ;;  %2437 = vst [vmem:[%s3683_s8 + $0x18] sm:$0xff] (!%p2431_p8), %v298_v1  ;;  %v308_v6 = vld [vmem:[%s3677_s6 + $0x30] sm:$0xff] (!%p2431_p8)  ;;  %v310_v7 = vld [vmem:[%s3677_s6 + $0x38] sm:$0xff] (!%p2431_p8)  ;;  %s263_s9 = scalar_lea.sflag (!%p2431_p8), [#allocation3], %s262_s7 }
  0x20   : > { %2438 = vst [vmem:[%s3683_s8 + $0x20] sm:$0xff] (!%p2431_p8), %v300_v2  ;;  %2439 = vst [vmem:[%s3683_s8 + $0x28] sm:$0xff] (!%p2431_p8), %v302_v3  ;;  %v312_v8 = vld [vmem:[%s3677_s6 + $0x40] sm:$0xff] (!%p2431_p8)  ;;  %v314_v9 = vld [vmem:[%s3677_s6 + $0x48] sm:$0xff] (!%p2431_p8) }
  0x21   : > { %2440 = vst [vmem:[%s3683_s8 + $0x30] sm:$0xff] (!%p2431_p8), %v304_v4  ;;  %2441 = vst [vmem:[%s3683_s8 + $0x38] sm:$0xff] (!%p2431_p8), %v306_v5  ;;  %v316_v10 = vld [vmem:[%s3677_s6 + $0x50] sm:$0xff] (!%p2431_p8)  ;;  %v318_v11 = vld [vmem:[%s3677_s6 + $0x58] sm:$0xff] (!%p2431_p8) }
  0x22   : > { %2442 = vst [vmem:[%s3683_s8 + $0x40] sm:$0xff] %v308_v6  ;;  %2443 = vst [vmem:[%s3683_s8 + $0x48] sm:$0xff] %v310_v7  ;;  %v320_v12 = vld [vmem:[%s3677_s6 + $0x60] sm:$0xff]  ;;  %v322_v13 = vld [vmem:[%s3677_s6 + $0x68] sm:$0xff] }
  0x23   : > { %2444 = vst [vmem:[%s3683_s8 + $0x50] sm:$0xff] %v312_v8  ;;  %2445 = vst [vmem:[%s3683_s8 + $0x58] sm:$0xff] %v314_v9  ;;  %v324_v14 = vld [vmem:[%s3677_s6 + $0x70] sm:$0xff]  ;;  %v326_v15 = vld [vmem:[%s3677_s6 + $0x78] sm:$0xff] }
  0x24   : > { %2446 = vst [vmem:[%s3683_s8 + $0x60] sm:$0xff] %v316_v10  ;;  %2447 = vst [vmem:[%s3683_s8 + $0x68] sm:$0xff] %v318_v11 }
  0x25   : > { %2448 = vst [vmem:[%s3683_s8 + $0x70] sm:$0xff] %v320_v12  ;;  %2449 = vst [vmem:[%s3683_s8 + $0x78] sm:$0xff] %v322_v13 }
  0x26   : > { %2450 = vst [vmem:[%s3683_s8 + $0x80] sm:$0xff] %v324_v14  ;;  %2451 = vst [vmem:[%s3683_s8 + $0x88] sm:$0xff] %v326_v15 }
  0x27   : > { %335 = vsyncadd %s263_s9, 2048  ;;  %p2453_p9 = scmp.le.s32.totalorder %s3560_s18, 0 }
  0x28   : > { %s2454_s11 = sadd.s32 (!%p2453_p9), 4294967295, %s3645_s25  ;;  %s2270_s12 = scalar_lea.sflag (!%p2453_p9), %s263_s9, 1 [#allocation3] }
  0x29   : > { %339 = sbr.rel (%p2453_p9) target bundleno = 49 (0x31), region = 78  ;;  %s2455_s14 = sshll.u32 (!%p2453_p9), %s2454_s11, 4 }
  0x2a   : > { %s342_s15 = sadd.s32 (!%p2453_p9), %s2455_s14, %s2434_s26 }
  0x2b   : > { %s343_s28 = scalar_lea.vmem (!%p2453_p9), %s5093_s0, %s342_s15 }
  0x2c   : > { %v380_v16 = vld [vmem:[%s343_s28] sm:$0xff] (!%p2453_p9)  ;;  %v382_v17 = vld [vmem:[%s343_s28 + $0x8] sm:$0xff] (!%p2453_p9) }
  0x2d   : > { %381 = vst [vmem:[%s3683_s8] sm:$0xff] (!%p2453_p9), %v380_v16  ;;  %383 = vst [vmem:[%s3683_s8 + $0x8] sm:$0xff] (!%p2453_p9), %v382_v17 }
  0x30   : > { %391 = vsyncadd %s2270_s12, 256 }
  0x31 PF: > { %p2457_p10 = scmp.ge.s32.totalorder %s3560_s18, 1 }
  0x32   : > { %s2283_s29 = scalar_lea.sflag (!%p2457_p10), %s263_s9, 2 [#allocation3]  ;;  %v2462_v18 = vld [vmem:[%s3677_s6 + $0x80] sm:$0xff] (!%p2457_p10)  ;;  %v2464_v19 = vld [vmem:[%s3677_s6 + $0x88] sm:$0xff] (!%p2457_p10) }
  0x33   : > { %395 = sbr.rel (%p2457_p10) target bundleno = 59 (0x3b), region = 116  ;;  %2463 = vst [vmem:[%s3683_s8 + $0x90] sm:$0xff] (!%p2457_p10), %v2462_v18  ;;  %2465 = vst [vmem:[%s3683_s8 + $0x98] sm:$0xff] (!%p2457_p10), %v2464_v19 }
  0x3a   : > { %448 = vsyncadd %s2283_s29, 256 }
  0x3b PF: > { %s449_s26 = smul.u32 3, %s5170_s10 }
  0x3d   : > { %s450_s30 = scalar_lea.sflag [#allocation3], %s449_s26 }
  0x3e   : > { %3548 = dma.done.wait %s450_s30, 2048 }
  0x3f   : > { %3549 = vsyncadd %s450_s30, 4294965248  ;;  %p3484_p11 = scmp.gt.s32.totalorder %s3560_s18, 0  ;;  %s2288_s7 = scalar_lea.sflag %s450_s30, 1 [#allocation3] }
  0x41   : > { %3551 = dma.done.wait (%p3484_p11), %s2288_s7, 256 }
  0x42   : > { %3553 = vsyncadd (%p3484_p11), %s2288_s7, 4294967040  ;;  %p3485_p12 = scmp.lt.s32.totalorder %s3560_s18, 1  ;;  %s2291_s9 = scalar_lea.sflag %s450_s30, 2 [#allocation3] }
  0x44   : > { %3555 = dma.done.wait (%p3485_p12), %s2291_s9, 256 }
  0x45   : > { %3557 = vsyncadd (%p3485_p12), %s2291_s9, 4294967040  ;;  %477 = sbr.rel (%p2431_p8) target bundleno = 76 (0x4c), region = 162 }
  0x46   : > { %v3578_v20 = vmov (!%p2431_p8), 0.0  }
  0x47   : > { %478 = vst [vmem:[#allocation2] sm:$0xff] (!%p2431_p8), %v3578_v20  ;;  %479 = vst [vmem:[#allocation2 + $0x8] sm:$0xff] (!%p2431_p8), %v3578_v20 }
  0x4c PF: > { %p2471_p13 = scmp.ne.s32.totalorder %s3560_s18, 1 }
  0x4d   : > { %v3579_v21 = vmov (!%p2471_p13), 0.0  }
  0x4e   : > { %483 = sbr.rel (%p2471_p13) target bundleno = 85 (0x55), region = 166  ;;  %485 = vst [vmem:[#allocation2 + $0x130] sm:$0xff] (!%p2471_p13), %v3579_v21  ;;  %486 = vst [vmem:[#allocation2 + $0x138] sm:$0xff] (!%p2471_p13), %v3579_v21 }
  0x55 PF: > { %s3737_s6 = sadd.s32 1, %s3560_s18 }
  0x56   : > { %p2472_p0 = scmp.ge.s32.totalorder %s3737_s6, 2 }
  0x57   : > { %p492_p1 = scmp.lt.s32.totalorder (!%p2472_p0), %s3737_s6, 0  ;;  %s493_s8 = ssub.s32 (!%p2472_p0), 0, %s3737_s6 }
  0x58   : > { %491 = sbr.rel (%p2472_p0) target bundleno = 127 (0x7f), region = 170  ;;  %s2473_s11 = smin.u32 (!%p2472_p0), %s493_s8, %s3737_s6 }
  0x59   : > { %s2686_s12 = sadd.s32 (!%p2472_p0), 8, %s3645_s25  ;;  %s495_s14 = sand.u32 (!%p2472_p0), 1, %s2473_s11  }
  0x5a   : > { %s2475_s15 = sshll.u32 (!%p2472_p0), %s3564_s19, 8  ;;  %s496_s17 = ssub.s32 (!%p2472_p0), 0, %s495_s14 }
  0x5b   : > { %s2476_s27 = sshll.u32 (!%p2472_p0), %s3560_s18, 7 }
  0x5c   : > { %s2294_s28 = sadd.s32 (!%p2472_p0), %s2476_s27, %s2475_s15 }
  0x5d   : > { %s3753_s30 = scalar_lea.vmem (!%p2472_p0), %s5093_s0, %s2294_s28 }
  0x5e   : > { %v2479_v22 = vld [vmem:[%s3753_s30 + $0x80] sm:$0xff] (!%p2472_p0)  ;;  %v2481_v23 = vld [vmem:[%s3753_s30 + $0x88] sm:$0xff] (!%p2472_p0)  ;;  %v2483_v24 = vld [vmem:[%s3753_s30 + $0x90] sm:$0xff] (!%p2472_p0) }
  0x5f   : > { %s5172_s17 = smov (!%p492_p1, %s496_s17), %s495_s14  ;;  %v2485_v25 = vld [vmem:[%s3753_s30 + $0x98] sm:$0xff]  ;;  %v2487_v26 = vld [vmem:[%s3753_s30 + $0xa0] sm:$0xff]  ;;  %v2489_v27 = vld [vmem:[%s3753_s30 + $0xa8] sm:$0xff] }
  0x60   : > { %s2478_s7 = smul.u32 160, %s5172_s17  ;;  %v2491_v28 = vld [vmem:[%s3753_s30 + $0xb0] sm:$0xff]  ;;  %v2493_v29 = vld [vmem:[%s3753_s30 + $0xb8] sm:$0xff]  ;;  %v2495_v30 = vld [vmem:[%s3753_s30 + $0xc0] sm:$0xff] }
  0x61   : > { %s507_s18 = smul.u32 3, %s5172_s17  ;;  %v2497_v31 = vld [vmem:[%s3753_s30 + $0xc8] sm:$0xff]  ;;  %v2499_v32 = vld [vmem:[%s3753_s30 + $0xd0] sm:$0xff]  ;;  %v2501_v33 = vld [vmem:[%s3753_s30 + $0xd8] sm:$0xff] }
  0x62   : > { %s3763_s9 = scalar_lea.vmem [#allocation2], %s2478_s7  ;;  %v2503_v34 = vld [vmem:[%s3753_s30 + $0xe0] sm:$0xff]  ;;  %v2505_v35 = vld [vmem:[%s3753_s30 + $0xe8] sm:$0xff]  ;;  %v2507_v36 = vld [vmem:[%s3753_s30 + $0xf0] sm:$0xff] }
  0x63   : > { %2480 = vst [vmem:[%s3763_s9 + $0x10] sm:$0xff] %v2479_v22  ;;  %2482 = vst [vmem:[%s3763_s9 + $0x18] sm:$0xff] %v2481_v23  ;;  %v2509_v37 = vld [vmem:[%s3753_s30 + $0xf8] sm:$0xff]  ;;  %s508_s8 = scalar_lea.sflag [#allocation3], %s507_s18 }
  0x64   : > { %2484 = vst [vmem:[%s3763_s9 + $0x20] sm:$0xff] %v2483_v24  ;;  %2486 = vst [vmem:[%s3763_s9 + $0x28] sm:$0xff] %v2485_v25 }
  0x65   : > { %2488 = vst [vmem:[%s3763_s9 + $0x30] sm:$0xff] %v2487_v26  ;;  %2490 = vst [vmem:[%s3763_s9 + $0x38] sm:$0xff] %v2489_v27 }
  0x66   : > { %2492 = vst [vmem:[%s3763_s9 + $0x40] sm:$0xff] %v2491_v28  ;;  %2494 = vst [vmem:[%s3763_s9 + $0x48] sm:$0xff] %v2493_v29 }
  0x67   : > { %2496 = vst [vmem:[%s3763_s9 + $0x50] sm:$0xff] %v2495_v30  ;;  %2498 = vst [vmem:[%s3763_s9 + $0x58] sm:$0xff] %v2497_v31 }
  0x68   : > { %2500 = vst [vmem:[%s3763_s9 + $0x60] sm:$0xff] %v2499_v32  ;;  %2502 = vst [vmem:[%s3763_s9 + $0x68] sm:$0xff] %v2501_v33 }
  0x69   : > { %2504 = vst [vmem:[%s3763_s9 + $0x70] sm:$0xff] %v2503_v34  ;;  %2506 = vst [vmem:[%s3763_s9 + $0x78] sm:$0xff] %v2505_v35 }
  0x6a   : > { %2508 = vst [vmem:[%s3763_s9 + $0x80] sm:$0xff] %v2507_v36  ;;  %2510 = vst [vmem:[%s3763_s9 + $0x88] sm:$0xff] %v2509_v37 }
  0x6b   : > { %580 = vsyncadd %s508_s8, 2048  ;;  %p2513_p2 = scmp.le.s32.totalorder %s3737_s6, 0 }
  0x6c   : > { %s2514_s11 = sadd.s32 (!%p2513_p2), 4294967295, %s2686_s12  ;;  %s2311_s14 = scalar_lea.sflag (!%p2513_p2), %s508_s8, 1 [#allocation3] }
  0x6d   : > { %584 = sbr.rel (%p2513_p2) target bundleno = 117 (0x75), region = 208  ;;  %s2515_s27 = sshll.u32 (!%p2513_p2), %s2514_s11, 4 }
  0x6e   : > { %s587_s28 = sadd.s32 (!%p2513_p2), %s2515_s27, %s2475_s15 }
  0x6f   : > { %s588_s7 = scalar_lea.vmem (!%p2513_p2), %s5093_s0, %s587_s28 }
  0x70   : > { %v625_v38 = vld [vmem:[%s588_s7] sm:$0xff] (!%p2513_p2)  ;;  %v627_v39 = vld [vmem:[%s588_s7 + $0x8] sm:$0xff] (!%p2513_p2) }
  0x71   : > { %626 = vst [vmem:[%s3763_s9] sm:$0xff] (!%p2513_p2), %v625_v38  ;;  %628 = vst [vmem:[%s3763_s9 + $0x8] sm:$0xff] (!%p2513_p2), %v627_v39 }
  0x74   : > { %636 = vsyncadd %s2311_s14, 256 }
  0x75 PF: > { %p2517_p3 = scmp.ge.s32.totalorder %s3737_s6, 1 }
  0x76   : > { %s2324_s25 = scalar_lea.sflag (!%p2517_p3), %s508_s8, 2 [#allocation3]  ;;  %v2522_v40 = vld [vmem:[%s3753_s30 + $0x100] sm:$0xff] (!%p2517_p3)  ;;  %v2524_v41 = vld [vmem:[%s3753_s30 + $0x108] sm:$0xff] (!%p2517_p3) }
  0x77   : > { %640 = sbr.rel (%p2517_p3) target bundleno = 127 (0x7f), region = 246  ;;  %2523 = vst [vmem:[%s3763_s9 + $0x90] sm:$0xff] (!%p2517_p3), %v2522_v40  ;;  %2525 = vst [vmem:[%s3763_s9 + $0x98] sm:$0xff] (!%p2517_p3), %v2524_v41 }
  0x7e   : > { %693 = vsyncadd %s2324_s25, 256 }
  0x7f PF: > { %v2545_v42 = vld [vmem:[%s5094_s1 + $0x200] sm:$0xff]  ;;  %v2546_v43 = vld [vmem:[%s5094_s1 + $0x208] sm:$0xff]  ;;  %v2547_v51 = vld [vmem:[%s5094_s1 + $0x210] sm:$0xff]  ;;  %s2528_s26 = smul.u32 160, %s5170_s10  ;;  %vm737_vm0 = vcmask 1040384   ;;  %vm834_vm1 = vcmask 1046528  }
  0x80   : > { %v2561_v44 = vld [vmem:[%s5094_s1 + $0x280] sm:$0xff]  ;;  %v3192_v45 = vpack.c.bf16 %v2546_v43, %v2545_v42  ;;  %v2562_v46 = vld [vmem:[%s5094_s1 + $0x288] sm:$0xff]  ;;  %v2548_v52 = vld [vmem:[%s5094_s1 + $0x218] sm:$0xff]  ;;  %vm891_vm2 = vcmask 1045504  }
  0x81   : > { %v2529_v47 = vld [vmem:[%s5094_s1 + $0x180] sm:$0xff]  ;;  %v2530_v48 = vld [vmem:[%s5094_s1 + $0x188] sm:$0xff]  ;;  %v3224_v49 = vpack.c.bf16 %v2562_v46, %v2561_v44  ;;  %v2563_v53 = vld [vmem:[%s5094_s1 + $0x290] sm:$0xff]  ;;  %v3196_v54 = vpack.c.bf16 %v2548_v52, %v2547_v51  ;;  %s3917_s18 = scalar_lea.vmem [#allocation2], %s2528_s26 }
  0x82   : > { %v3194_v50 = vpack.c.bf16 %v2530_v48, %v2529_v47  ;;  %3193 = vmatprep.subr.bf16.mxu0 %v3192_v45  ;;  %v2564_v55 = vld [vmem:[%s5094_s1 + $0x298] sm:$0xff]  ;;  %v2531_v56 = vld [vmem:[%s5094_s1 + $0x190] sm:$0xff]  ;;  %v2549_v60 = vld [vmem:[%s5094_s1 + $0x220] sm:$0xff] }
  0x83   : > { %v2532_v57 = vld [vmem:[%s5094_s1 + $0x198] sm:$0xff]  ;;  %3225 = vmatprep.subr.bf16.mxu1 %v3224_v49  ;;  %v3228_v58 = vpack.c.bf16 %v2564_v55, %v2563_v53  ;;  %v2550_v61 = vld [vmem:[%s5094_s1 + $0x228] sm:$0xff]  ;;  %v2565_v62 = vld [vmem:[%s5094_s1 + $0x2a0] sm:$0xff] }
  0x84   : > { %3195 = vmatpush3.bf16.msra.mxu0 %v3194_v50  ;;  %v3198_v59 = vpack.c.bf16 %v2532_v57, %v2531_v56  ;;  %3227 = vmatpush3.bf16.msra.mxu1 %v3224_v49  ;;  %v3200_v63 = vpack.c.bf16 %v2550_v61, %v2549_v60  ;;  %v2566_v0 = vld [vmem:[%s5094_s1 + $0x2a8] sm:$0xff]  ;;  %v2533_v1 = vld [vmem:[%s5094_s1 + $0x1a0] sm:$0xff]  ;;  %v2551_v4 = vld [vmem:[%s5094_s1 + $0x230] sm:$0xff] }
  0x85   : > { %3197 = vmatprep.subr.bf16.mxu0 %v3196_v54  ;;  %v2534_v2 = vld [vmem:[%s5094_s1 + $0x1a8] sm:$0xff]  ;;  %3229 = vmatprep.subr.bf16.mxu1 %v3228_v58  ;;  %v3232_v3 = vpack.c.bf16 %v2566_v0, %v2565_v62  ;;  %v2552_v5 = vld [vmem:[%s5094_s1 + $0x238] sm:$0xff]  ;;  %v2567_v6 = vld [vmem:[%s5094_s1 + $0x2b0] sm:$0xff] }
  0x86   : > { %v2568_v7 = vld [vmem:[%s5094_s1 + $0x2b8] sm:$0xff]  ;;  %v3202_v8 = vpack.c.bf16 %v2534_v2, %v2533_v1  ;;  %v3204_v9 = vpack.c.bf16 %v2552_v5, %v2551_v4  ;;  %v2535_v10 = vld [vmem:[%s5094_s1 + $0x1b0] sm:$0xff]  ;;  %v2553_v13 = vld [vmem:[%s5094_s1 + $0x240] sm:$0xff] }
  0x87   : > { %v2536_v11 = vld [vmem:[%s5094_s1 + $0x1b8] sm:$0xff]  ;;  %v3236_v12 = vpack.c.bf16 %v2568_v7, %v2567_v6  ;;  %v2554_v14 = vld [vmem:[%s5094_s1 + $0x248] sm:$0xff]  ;;  %v2569_v15 = vld [vmem:[%s5094_s1 + $0x2c0] sm:$0xff] }
  0x88   : > { %3199 = vmatpush3.bf16.msra.mxu0 %v3198_v59  ;;  %3231 = vmatpush3.bf16.msra.mxu1 %v3228_v58  ;;  %v2570_v16 = vld [vmem:[%s5094_s1 + $0x2c8] sm:$0xff]  ;;  %v3206_v17 = vpack.c.bf16 %v2536_v11, %v2535_v10  ;;  %v3208_v18 = vpack.c.bf16 %v2554_v14, %v2553_v13  ;;  %v2537_v19 = vld [vmem:[%s5094_s1 + $0x1c0] sm:$0xff]  ;;  %v2555_v22 = vld [vmem:[%s5094_s1 + $0x250] sm:$0xff] }
  0x89   : > { %3201 = vmatprep.subr.bf16.mxu0 %v3200_v63  ;;  %3233 = vmatprep.subr.bf16.mxu1 %v3232_v3  ;;  %v2538_v20 = vld [vmem:[%s5094_s1 + $0x1c8] sm:$0xff]  ;;  %v3240_v21 = vpack.c.bf16 %v2570_v16, %v2569_v15  ;;  %v2556_v23 = vld [vmem:[%s5094_s1 + $0x258] sm:$0xff]  ;;  %v2571_v24 = vld [vmem:[%s5094_s1 + $0x2d0] sm:$0xff] }
  0x8a   : > { %v2572_v25 = vld [vmem:[%s5094_s1 + $0x2d8] sm:$0xff]  ;;  %v2539_v26 = vld [vmem:[%s5094_s1 + $0x1d0] sm:$0xff]  ;;  %v3210_v27 = vpack.c.bf16 %v2538_v20, %v2537_v19  ;;  %v3212_v31 = vpack.c.bf16 %v2556_v23, %v2555_v22  ;;  %v2557_v32 = vld [vmem:[%s5094_s1 + $0x260] sm:$0xff] }
  0x8b   : > { %v2540_v28 = vld [vmem:[%s5094_s1 + $0x1d8] sm:$0xff]  ;;  %v699_v29 = vld [vmem:[%s3917_s18 + $0x10] sm:$0xff]  ;;  %v3244_v35 = vpack.c.bf16 %v2572_v25, %v2571_v24  ;;  %v2558_v36 = vld [vmem:[%s5094_s1 + $0x268] sm:$0xff] }
  0x8c   : > { %3203 = vmatpush3.bf16.msra.mxu0 %v3202_v8  ;;  %3235 = vmatpush3.bf16.msra.mxu1 %v3232_v3  ;;  %v700_v30 = vld [vmem:[%s3917_s18 + $0x18] sm:$0xff]  ;;  %v3924_v33 = vrot.slane %v699_v29, 7  ;;  %v2573_v37 = vld [vmem:[%s5094_s1 + $0x2e0] sm:$0xff]  ;;  %v2574_v38 = vld [vmem:[%s5094_s1 + $0x2e8] sm:$0xff]  ;;  %v3214_v39 = vpack.c.bf16 %v2540_v28, %v2539_v26  ;;  %v3216_v48 = vpack.c.bf16 %v2558_v36, %v2557_v32 }
  0x8d   : > { %3205 = vmatprep.subr.bf16.mxu0 %v3204_v9  ;;  %3237 = vmatprep.subr.bf16.mxu1 %v3236_v12  ;;  %v742_v34 = vrot.slane %v700_v30, 7  ;;  %v701_v42 = vld [vmem:[%s3917_s18 + $0x20] sm:$0xff]  ;;  %v702_v47 = vld [vmem:[%s3917_s18 + $0x28] sm:$0xff]  ;;  %v3248_v49 = vpack.c.bf16 %v2574_v38, %v2573_v37  ;;  %v2559_v52 = vld [vmem:[%s5094_s1 + $0x270] sm:$0xff] }
  0x8e   : > { %v799_v41 = vsel %vm737_vm0, 0.0, %v3924_v33  ;;  %v2541_v50 = vld [vmem:[%s5094_s1 + $0x1e0] sm:$0xff]  ;;  %v2542_v51 = vld [vmem:[%s5094_s1 + $0x1e8] sm:$0xff]  ;;  %v2560_v53 = vld [vmem:[%s5094_s1 + $0x278] sm:$0xff]  ;;  %v3974_v59 = vrot.slane %v701_v42, 7  ;;  %v745_v61 = vrot.slane %v702_v47, 7 }
  0x8f   : > { %v3937_v40 = vsel %vm737_vm0, %v3924_v33, %v742_v34  ;;  %v840_v43 = vrot.slane %v799_v41, 1  ;;  %v897_v45 = vrot.slane %v799_v41, 2  ;;  %v2575_v54 = vld [vmem:[%s5094_s1 + $0x2f0] sm:$0xff]  ;;  %v2576_v55 = vld [vmem:[%s5094_s1 + $0x2f8] sm:$0xff]  ;;  %v3972_v58 = vsel %vm737_vm0, %v742_v34, 0.0  ;;  %v3991_v2 = vld [vmem:[%s5094_s1 + $0x80] sm:$0xff] }
  0x90   : > { %3207 = vmatpush3.bf16.msra.mxu0 %v3206_v17  ;;  %3239 = vmatpush3.bf16.msra.mxu1 %v3236_v12  ;;  %v841_v44 = vrot.slane %v3937_v40, 1  ;;  %v898_v46 = vrot.slane %v3937_v40, 2  ;;  %v2543_v60 = vld [vmem:[%s5094_s1 + $0x1f0] sm:$0xff]  ;;  %v3983_v63 = vld [vmem:[%s3917_s18 + $0x38] sm:$0xff]  ;;  %v3218_v0 = vpack.c.bf16 %v2542_v51, %v2541_v50  ;;  %v3996_v3 = vld [vmem:[%s5094_s1 + $0x88] sm:$0xff]  ;;  %v3220_v4 = vpack.c.bf16 %v2560_v53, %v2559_v52 }
  0x91   : > { %3209 = vmatprep.subr.bf16.mxu0 %v3208_v18  ;;  %3241 = vmatprep.subr.bf16.mxu1 %v3240_v21  ;;  %v703_v62 = vld [vmem:[%s3917_s18 + $0x30] sm:$0xff]  ;;  %v2544_v1 = vld [vmem:[%s5094_s1 + $0x1f8] sm:$0xff]  ;;  %v900_v5 = vrot.slane %v3972_v58, 2  ;;  %v2625_v6 = vld [vmem:[%s5094_s1 + $0x380] sm:$0xff]  ;;  %v3252_v9 = vpack.c.bf16 %v2576_v55, %v2575_v54  ;;  %v4027_v13 = vsel %vm737_vm0, 0.0, %v3974_v59  ;;  %v748_v15 = vrot.slane %v3983_v63, 7 }
  0x92   : > { %v3966_v56 = vsel %vm834_vm1, %v840_v43, %v841_v44  ;;  %v3969_v57 = vsel %vm891_vm2, %v897_v45, %v898_v46  ;;  %v2626_v7 = vld [vmem:[%s5094_s1 + $0x388] sm:$0xff]  ;;  %v4008_v8 = vld [vmem:[%s5094_s1] sm:$0xff]  ;;  %v4029_v14 = vrot.slane %v703_v62, 7  ;;  %v4034_v16 = vsel %vm737_vm0, %v3974_v59, %v745_v61  ;;  %v4042_v18 = vld [vmem:[%s5094_s1 + $0x90] sm:$0xff] }
  0x93   : > { %1125 = vmatprep.mubr.f32.mxu0 %v3966_v56  ;;  %3056 = vmatprep.mubr.f32.mxu1 %v3969_v57  ;;  %v4013_v10 = vld [vmem:[%s5094_s1 + $0x8] sm:$0xff]  ;;  %v4018_v11 = vld [vmem:[%s5094_s1 + $0x300] sm:$0xff]  ;;  %v4037_v17 = vsel %vm737_vm0, %v745_v61, 0.0  ;;  %v4047_v19 = vld [vmem:[%s5094_s1 + $0x98] sm:$0xff]  ;;  %v3222_v20 = vpack.c.bf16 %v2544_v1, %v2543_v60  ;;  %v3320_v22 = vpack.c.bf16 %v2626_v7, %v2625_v6  ;;  %v843_v23 = vrot.slane %v3972_v58, 1 }
  0x94   : > { %3211 = vmatpush3.bf16.msra.mxu0 %v3210_v27  ;;  %3243 = vmatpush3.bf16.msra.mxu1 %v3240_v21  ;;  %v4023_v12 = vld [vmem:[%s5094_s1 + $0x308] sm:$0xff]  ;;  %v3256_v21 = vpack.c.bf16 %v3996_v3, %v3991_v2  ;;  %v4055_v24 = vld [vmem:[%s5094_s1 + $0x10] sm:$0xff]  ;;  %v705_v25 = vld [vmem:[%s3917_s18 + $0x40] sm:$0xff]  ;;  %v4062_v27 = vsel %vm891_vm2, %v898_v46, %v900_v5  ;;  %v3258_v28 = vpack.c.bf16 %v4013_v10, %v4008_v8  ;;  %v902_v30 = vrot.slane %v4027_v13, 2 }
  0x95   : > { %3213 = vmatprep.subr.bf16.mxu0 %v3212_v31  ;;  %3245 = vmatprep.subr.bf16.mxu1 %v3244_v35  ;;  %v4059_v26 = vld [vmem:[%s3917_s18 + $0x48] sm:$0xff]  ;;  %5126 = vst [vmem:[#allocation13_spill] sm:$0xff] %v4062_v27  ;;  %v3322_v29 = vpack.c.bf16 %v4023_v12, %v4018_v11  ;;  %v4072_v31 = vld [vmem:[%s5094_s1 + $0x18] sm:$0xff]  ;;  %v4077_v32 = vld [vmem:[%s5094_s1 + $0xa0] sm:$0xff]  ;;  %v905_v36 = vrot.slane %v4037_v17, 2  ;;  %v4088_v37 = vsel %vm737_vm0, %v4029_v14, %v748_v15  ;;  %v4092_v38 = vsel %vm737_vm0, 0.0, %v4029_v14 }
  0x96   : > { %v4082_v34 = vld [vmem:[%s5094_s1 + $0xa8] sm:$0xff]  ;;  %v2628_v41 = vld [vmem:[%s5094_s1 + $0x398] sm:$0xff]  ;;  %v707_v42 = vld [vmem:[%s3917_s18 + $0x50] sm:$0xff]  ;;  %v845_v45 = vrot.slane %v4027_v13, 1  ;;  %v846_v46 = vrot.slane %v4034_v16, 1  ;;  %v4124_v51 = vsel %vm834_vm1, %v841_v44, %v843_v23  ;;  %v3260_v52 = vpack.c.bf16 %v4047_v19, %v4042_v18 }
  0x97   : > { %vm4104_vm3 = vmneg %vm737_vm0  ;;  %v4113_v47 = vld [vmem:[%s5094_s1 + $0x20] sm:$0xff]  ;;  %v4119_v50 = vld [vmem:[%s3917_s18 + $0x58] sm:$0xff]  ;;  %v3262_v53 = vpack.c.bf16 %v4072_v31, %v4055_v24  ;;  %v3264_v54 = vpack.c.bf16 %v4082_v34, %v4077_v32  ;;  %v907_v60 = vrot.slane %v4092_v38, 2  ;;  %v908_v61 = vrot.slane %v4088_v37, 2 }
  0x98   : > { %3215 = vmatpush3.bf16.msra.mxu0 %v3214_v39  ;;  %3247 = vmatpush3.bf16.msra.mxu1 %v3244_v35  ;;  %v903_v35 = vrot.slane %v4034_v16, 2  ;;  %v4097_v39 = vld [vmem:[%s5094_s1 + $0x390] sm:$0xff]  ;;  %v4135_v55 = vld [vmem:[%s5094_s1 + $0x28] sm:$0xff]  ;;  %v4145_v44 = vld [vmem:[%s5094_s1 + $0x318] sm:$0xff]  ;;  %v4150_v62 = vsel %vm737_vm0, %v748_v15, 0.0  ;;  %v4162_v1 = vrot.slane %v707_v42, 7  ;;  %v4178_v6 = vsel %vm834_vm1, %v845_v45, %v846_v46 }
  0x99   : > { %3217 = vmatprep.subr.bf16.mxu0 %v3216_v48  ;;  %3249 = vmatprep.subr.bf16.mxu1 %v3248_v49  ;;  %v4115_v48 = vrot.slane %v705_v25, 7  ;;  %v4140_v58 = vld [vmem:[%s5094_s1 + $0x310] sm:$0xff]  ;;  %v754_v5 = vrot.slane %v4119_v50, 7  ;;  %v3266_v7 = vpack.c.bf16 %v4135_v55, %v4113_v47  ;;  %v709_v11 = vld [vmem:[%s3917_s18 + $0x60] sm:$0xff]  ;;  %v4197_v12 = vld [vmem:[%s3917_s18 + $0x68] sm:$0xff]  ;;  %v910_v13 = vrot.slane %v4150_v62, 2 }
  0x9a   : > { %v4155_v63 = vld [vmem:[%s5094_s1 + $0xb0] sm:$0xff]  ;;  %v4165_v2 = vsel %vm891_vm2, %v902_v30, %v903_v35  ;;  %v4168_v3 = vsel %vm891_vm2, %v903_v35, %v905_v36  ;;  %v3326_v15 = vpack.c.bf16 %v4145_v44, %v4140_v58  ;;  %v848_v18 = vrot.slane %v4037_v17, 1  ;;  %v2614_v58 = vld [vmem:[%s5094_s1 + $0x328] sm:$0xff]  ;;  %v4301_v31 = vld [vmem:[%s5094_s1 + $0x40] sm:$0xff] }
  0x9b   : > { %5129 = vst [vmem:[#allocation14_spill] sm:$0xff] %v4165_v2  ;;  %5130 = vst [vmem:[#allocation15_spill] sm:$0xff] %v4168_v3  ;;  %v4193_v10 = vld [vmem:[%s5094_s1 + $0x30] sm:$0xff]  ;;  %v4219_v17 = vsel %vm891_vm2, %v907_v60, %v908_v61  ;;  %v4226_v25 = vsel %vm737_vm0, %v4162_v1, %v754_v5  ;;  %v4235_v30 = vrot.slane %v709_v11, 7  ;;  %v757_v35 = vrot.slane %v4197_v12, 7  ;;  %v4269_v11 = vld [vmem:[%s5094_s1 + $0xc8] sm:$0xff] }
  0x9c   : > { %3219 = vmatpush3.bf16.msra.mxu0 %v3218_v0  ;;  %3251 = vmatpush3.bf16.msra.mxu1 %v3248_v49  ;;  %v751_v49 = vrot.slane %v4059_v26, 7  ;;  %v4160_v0 = vld [vmem:[%s5094_s1 + $0xb8] sm:$0xff]  ;;  %5131 = vst [vmem:[#allocation16_spill] sm:$0xff] %v4219_v17  ;;  %v4230_v26 = vsel %vm737_vm0, 0.0, %v4162_v1  ;;  %v711_v36 = vld [vmem:[%s3917_s18 + $0x70] sm:$0xff]  ;;  %v850_v42 = vrot.slane %v4092_v38, 1  ;;  %v4261_v38 = vsel %vm891_vm2, %v908_v61, %v910_v13 }
  0x9d   : > { %3221 = vmatprep.subr.bf16.mxu0 %v3220_v4  ;;  %3253 = vmatprep.subr.bf16.mxu1 %v3252_v9  ;;  %v3324_v4 = vpack.c.bf16 %v2628_v41, %v4097_v39  ;;  %v3268_v19 = vpack.c.bf16 %v4160_v0, %v4155_v63  ;;  %v4240_v39 = vld [vmem:[%s3917_s18 + $0x78] sm:$0xff]  ;;  %v851_v45 = vrot.slane %v4088_v37, 1  ;;  %5132 = vst [vmem:[#allocation17_spill] sm:$0xff] %v4261_v38  ;;  %v917_v60 = vrot.slane %v4230_v26, 2  ;;  %v2631_v12 = vld [vmem:[%s5094_s1 + $0x3b0] sm:$0xff]  ;;  %v2633_v0 = vld [vmem:[%s5094_s1 + $0x3c0] sm:$0xff] }
  0x9e   : > { %v4184_v8 = vsel %vm737_vm0, %v4115_v48, %v751_v49  ;;  %v4222_v23 = vsel %vm737_vm0, %v751_v49, 0.0  ;;  %v4250_v49 = vld [vmem:[%s5094_s1 + $0xc0] sm:$0xff]  ;;  %v2632_v61 = vld [vmem:[%s5094_s1 + $0x3b8] sm:$0xff]  ;;  %v4284_v13 = vsel %vm834_vm1, %v846_v46, %v848_v18  ;;  %v760_v41 = vrot.slane %v4240_v39, 7  ;;  %v2615_v32 = vld [vmem:[%s5094_s1 + $0x330] sm:$0xff] }
  0x9f   : > { %v915_v44 = vrot.slane %v4222_v23, 2  ;;  %v4320_v34 = vsel %vm834_vm1, %v850_v42, %v851_v45  ;;  %v2616_v18 = vld [vmem:[%s5094_s1 + $0x338] sm:$0xff] }
  0xa0   : > { %3223 = vmatpush3.bf16.msra.mxu0 %v3222_v20  ;;  %3255 = vmatpush3.bf16.msra.mxu1 %v3252_v9  ;;  %v4188_v9 = vsel %vm737_vm0, 0.0, %v4115_v48  ;;  %v4209_v20 = vld [vmem:[%s5094_s1 + $0x38] sm:$0xff]  ;;  %v3334_v55 = vpack.c.bf16 %v2616_v18, %v2615_v32  ;;  %v856_v32 = vrot.slane %v4184_v8, 1  ;;  %v4401_v18 = vld [vmem:[%s3917_s18 + $0x8] sm:$0xff] }
  0xa1   : > { %3321 = vmatprep.subr.bf16.mxu0 %v3320_v22  ;;  %3257 = vmatprep.subr.bf16.mxu1 %v3256_v21  ;;  %v2629_v21 = vld [vmem:[%s5094_s1 + $0x3a0] sm:$0xff]  ;;  %v2630_v22 = vld [vmem:[%s5094_s1 + $0x3a8] sm:$0xff] }
  0xa2   : > { %v3328_v50 = vpack.c.bf16 %v2630_v22, %v2629_v21  ;;  %v4287_v21 = vsel %vm737_vm0, %v754_v5, 0.0  ;;  %v4289_v22 = vrot.slane %v711_v36, 7  ;;  %v4309_v5 = vsel %vm737_vm0, 0.0, %v4235_v30  ;;  %v4329_v36 = vld [vmem:[%s3917_s18 + $0x88] sm:$0xff] }
  0xa3   : > { %2578 = vmatmul.mubr.msk.f32.vlgmr.msra.gmra.mrb[0].mxu0 %vm4104_vm3, %v3924_v33  ;;  %3057 = vmatmul.mubr.f32.vlgmr.msra.gmra.mrb[0].mxu1 %v4062_v27 }
  0xa4   : > { %3323 = vmatpush3.bf16.msra.mxu0 %v3322_v29  ;;  %3259 = vmatpush3.bf16.msra.mxu1 %v3258_v28  ;;  %v912_v28 = vrot.slane %v4188_v9, 2  ;;  %v913_v29 = vrot.slane %v4184_v8, 2  ;;  %v4372_v47 = vsel %vm737_vm0, 0.0, %v4289_v22 }
  0xa5   : > { %1130 = vmatprep.mubr.f32.mxu0 %v4124_v51  ;;  %3059 = vmatprep.mubr.f32.mxu1 %v4165_v2  ;;  %v981_v2 = vld [vmem:[%s5094_s1 + $0x108] sm:$0xff] }
  0xa6   : > { %3261 = vmatprep.subr.bf16.mxu1 %v3260_v52  ;;  %3325 = vmatprep.subr.bf16.mxu0 %v3324_v4  ;;  %v2613_v52 = vld [vmem:[%s5094_s1 + $0x320] sm:$0xff]  ;;  %v918_v4 = vrot.slane %v4226_v25, 2  ;;  %v4296_v24 = vsel %vm891_vm2, %v912_v28, %v913_v29  ;;  %v4334_v39 = vsel %vm891_vm2, %v913_v29, %v915_v44  ;;  %v4352_v29 = vld [vmem:[%s5094_s1 + $0xd8] sm:$0xff]  ;;  %v922_v44 = vrot.slane %v4309_v5, 2 }
  0xa7   : > { %1131 = vmatmul.mubr.f32.gmra.mrb[2].mxu0 %v3937_v40  ;;  %3060 = vmatmul.mubr.f32.gmra.mrb[2].mxu1 %v4168_v3  ;;  %5133 = vst [vmem:[#allocation18_spill] sm:$0xff] %v4296_v24  ;;  %v3330_v46 = vpack.c.bf16 %v2614_v58, %v2613_v52  ;;  %v713_v28 = vld [vmem:[%s3917_s18 + $0x80] sm:$0xff]  ;;  %5134 = vst [vmem:[#allocation19_spill] sm:$0xff] %v4334_v39  ;;  %v853_v52 = vrot.slane %v4150_v62, 1  ;;  %v4347_v58 = vld [vmem:[%s5094_s1 + $0xd0] sm:$0xff] }
  0xa8   : > { %1135 = vmatprep.mubr.f32.mxu0 %v4178_v6  ;;  %3263 = vmatpush3.bf16.msra.mxu1 %v3262_v53  ;;  %v4305_v53 = vsel %vm737_vm0, %v4235_v30, %v757_v35  ;;  %v4337_v42 = vsel %vm891_vm2, %v917_v60, %v918_v4  ;;  %v4361_v60 = vsel %vm737_vm0, %v757_v35, 0.0  ;;  %v763_v35 = vrot.slane %v4329_v36, 7  ;;  %v2637_v3 = vld [vmem:[%s5094_s1 + $0x3e0] sm:$0xff] }
  0xa9   : > { %3062 = vmatprep.mubr.f32.mxu1 %v4219_v17  ;;  %3265 = vmatprep.subr.bf16.mxu1 %v3264_v54  ;;  %v3272_v54 = vpack.c.bf16 %v4269_v11, %v4250_v49  ;;  %5135 = vst [vmem:[#allocation20_spill] sm:$0xff] %v4337_v42  ;;  %v920_v49 = vrot.slane %v4287_v21, 2  ;;  %v923_v62 = vrot.slane %v4305_v53, 2  ;;  %v4365_v11 = vsel %vm737_vm0, %v4289_v22, %v760_v41 }
  0xaa   : > { %3327 = vmatpush3.bf16.msra.mxu0 %v3326_v15  ;;  %v3332_v15 = vpack.c.bf16 %v2632_v61, %v2631_v12  ;;  %v3276_v63 = vpack.c.bf16 %v4352_v29, %v4347_v58  ;;  %v925_v36 = vrot.slane %v4361_v60, 2  ;;  %v861_v17 = vrot.slane %v4226_v25, 1 }
  0xab   : > { %2580 = vmatmul.mubr.msk.f32.gmra.mrb[4].mxu0 %vm4104_vm3, %v3974_v59  ;;  %3329 = vmatprep.subr.bf16.mxu0 %v3328_v50  ;;  %v957_v50 = vld [vmem:[%s5094_s1 + $0x48] sm:$0xff]  ;;  %v4390_v61 = vsel %vm891_vm2, %v918_v4, %v920_v49  ;;  %v4408_v4 = vsel %vm891_vm2, %v922_v44, %v923_v62  ;;  %v927_v49 = vrot.slane %v4372_v47, 2  ;;  %v739_v44 = vrot.slane %v4401_v18, 7  ;;  %v2635_v18 = vld [vmem:[%s5094_s1 + $0x3d0] sm:$0xff] }
  0xac   : > { %3063 = vmatmul.mubr.f32.gmra.mrb[4].mxu1 %v4261_v38  ;;  %1140 = vmatprep.mubr.f32.mxu0 %v4284_v13  ;;  %v3274_v12 = vpack.c.bf16 %v957_v50, %v4301_v31  ;;  %5136 = vst [vmem:[#allocation21_spill] sm:$0xff] %v4390_v61  ;;  %v4395_v31 = vsel %vm834_vm1, %v851_v45, %v853_v52  ;;  %5138 = vst [vmem:[#allocation22_spill] sm:$0xff] %v4408_v4  ;;  %v959_v45 = vld [vmem:[%s5094_s1 + $0x58] sm:$0xff]  ;;  %v976_v50 = vld [vmem:[%s5094_s1 + $0xe0] sm:$0xff] }
  0xad   : > { %3267 = vmatpush3.bf16.msra.mxu1 %v3266_v7  ;;  %3065 = vmatprep.mubr.f32.mxu1 %v4296_v24  ;;  %v4374_v7 = vrot.slane %v713_v28, 7  ;;  %v5137_v28 = vpack.c.bf16 %v4209_v20, %v4193_v10  ;;  %v928_v10 = vrot.slane %v4365_v11, 2  ;;  %v4420_v20 = vsel %vm737_vm0, %v760_v41, 0.0  ;;  %v977_v41 = vld [vmem:[%s5094_s1 + $0xe8] sm:$0xff]  ;;  %v979_v24 = vld [vmem:[%s5094_s1 + $0xf8] sm:$0xff] }
  0xae   : > { %3269 = vmatprep.subr.bf16.mxu1 %v3268_v19  ;;  %3331 = vmatpush3.bf16.msra.mxu0 %v3330_v46  ;;  %v2634_v19 = vld [vmem:[%s5094_s1 + $0x3c8] sm:$0xff]  ;;  %v855_v46 = vrot.slane %v4188_v9, 1  ;;  %v958_v9 = vld [vmem:[%s5094_s1 + $0x50] sm:$0xff] }
  0xaf   : > { %1141 = vmatmul.mubr.f32.gmra.mrb[6].mxu0 %v4034_v16  ;;  %3333 = vmatprep.subr.bf16.mxu0 %v3332_v15  ;;  %v697_v15 = vld [vmem:[%s3917_s18] sm:$0xff]  ;;  %v4427_v52 = vsel %vm737_vm0, %v4374_v7, %v763_v35  ;;  %v4431_v58 = vsel %vm737_vm0, 0.0, %v4374_v7  ;;  %v3336_v29 = vpack.c.bf16 %v2634_v19, %v2633_v0  ;;  %v2618_v0 = vld [vmem:[%s5094_s1 + $0x348] sm:$0xff]  ;;  %v3278_v19 = vpack.c.bf16 %v959_v45, %v958_v9 }
  0xb0   : > { %3066 = vmatmul.mubr.f32.gmra.mrb[6].mxu1 %v4334_v39  ;;  %1145 = vmatprep.mubr.f32.mxu0 %v4320_v34  ;;  %v930_v9 = vrot.slane %v4420_v20, 2  ;;  %v1005_v45 = vrot.slane %v4431_v58, 2  ;;  %v1006_v39 = vrot.slane %v4427_v52, 2 }
  0xb1   : > { %3271 = vmatpush3.bf16.msra.mxu1 %v5137_v28  ;;  %3068 = vmatprep.mubr.f32.mxu1 %v4337_v42  ;;  %v4451_v28 = vsel %vm834_vm1, %v855_v46, %v856_v32  ;;  %v2636_v42 = vld [vmem:[%s5094_s1 + $0x3d8] sm:$0xff]  ;;  %v961_v46 = vld [vmem:[%s5094_s1 + $0x68] sm:$0xff] }
  0xb2   : > { %3273 = vmatprep.subr.bf16.mxu1 %v3272_v54  ;;  %3335 = vmatpush3.bf16.msra.mxu0 %v3334_v55  ;;  %v4439_v54 = vrot.slane %v697_v15, 7  ;;  %v2617_v55 = vld [vmem:[%s5094_s1 + $0x340] sm:$0xff]  ;;  %v858_v15 = vrot.slane %v4222_v23, 1 }
  0xb3   : > { %2582 = vmatmul.mubr.msk.f32.gmra.mrb[8].mxu0 %vm4104_vm3, %v4029_v14  ;;  %v960_v23 = vld [vmem:[%s5094_s1 + $0x60] sm:$0xff]  ;;  %3337 = vmatprep.subr.bf16.mxu0 %v3336_v29  ;;  %v3338_v38 = vpack.c.bf16 %v2618_v0, %v2617_v55  ;;  %v2619_v29 = vld [vmem:[%s5094_s1 + $0x350] sm:$0xff] }
  0xb4   : > { %3069 = vmatmul.mubr.f32.gmra.mrb[8].mxu1 %v4390_v61  ;;  %1150 = vmatprep.mubr.f32.mxu0 %v4395_v31  ;;  %v4462_v61 = vsel %vm891_vm2, %v923_v62, %v925_v36  ;;  %v3280_v62 = vpack.c.bf16 %v977_v41, %v976_v50  ;;  %v4477_v36 = vsel %vm737_vm0, %v763_v35, 0.0  ;;  %v4493_v35 = vsel %vm737_vm0, %v4439_v54, %v739_v44  ;;  %v2620_v41 = vld [vmem:[%s5094_s1 + $0x358] sm:$0xff] }
  0xb5   : > { %3275 = vmatpush3.bf16.msra.mxu1 %v3274_v12  ;;  %3071 = vmatprep.mubr.f32.mxu1 %v4408_v4  ;;  %5139 = vst [vmem:[#allocation23_spill] sm:$0xff] %v4462_v61  ;;  %v4474_v12 = vsel %vm891_vm2, %v927_v49, %v928_v10  ;;  %v978_v4 = vld [vmem:[%s5094_s1 + $0xf0] sm:$0xff]  ;;  %v4497_v49 = vsel %vm737_vm0, 0.0, %v4439_v54  ;;  %v3340_v50 = vpack.c.bf16 %v2636_v42, %v2635_v18  ;;  %v4513_v42 = vld [vmem:[%s5094_s1 + $0x78] sm:$0xff]  ;;  %v860_v18 = vrot.slane %v4230_v26, 1 }
  0xb6   : > { %3277 = vmatprep.subr.bf16.mxu1 %v3276_v63  ;;  %5140 = vst [vmem:[#allocation24_spill] sm:$0xff] %v4474_v12  ;;  %v4489_v63 = vld [vmem:[%s5094_s1 + $0x70] sm:$0xff]  ;;  %v3282_v55 = vpack.c.bf16 %v961_v46, %v960_v23  ;;  %v4508_v0 = vsel %vm834_vm1, %v856_v32, %v858_v15  ;;  %v2638_v23 = vld [vmem:[%s5094_s1 + $0x3e8] sm:$0xff]  ;;  %v4525_v32 = vsel %vm891_vm2, %v928_v10, %v930_v9  ;;  %v1008_v26 = vrot.slane %v4477_v36, 2 }
  0xb7   : > { %1151 = vmatmul.mubr.f32.gmra.mrb[10].mxu0 %v4088_v37  ;;  %5141 = vst [vmem:[#allocation25_spill] sm:$0xff] %v4525_v32  ;;  %v4528_v15 = vsel %vm891_vm2, %v1005_v45, %v1006_v39  ;;  %v3284_v46 = vpack.c.bf16 %v979_v24, %v978_v4  ;;  %v836_v10 = vrot.slane %v4493_v35, 1  ;;  %v808_v9 = vsel %vm737_vm0, %v739_v44, 0.0 }
  0xb8   : > { %3072 = vmatmul.mubr.f32.gmra.mrb[10].mxu1 %v4462_v61  ;;  %1155 = vmatprep.mubr.f32.mxu0 %v4451_v28  ;;  %5142 = vst [vmem:[#allocation26_spill] sm:$0xff] %v4528_v15  ;;  %v980_v61 = vld [vmem:[%s5094_s1 + $0x100] sm:$0xff]  ;;  %v3342_v45 = vpack.c.bf16 %v2620_v41, %v2619_v29  ;;  %v3286_v24 = vpack.c.bf16 %v4513_v42, %v4489_v63  ;;  %v895_v4 = vrot.slane %v808_v9, 2  ;;  %v892_v44 = vrot.slane %v4497_v49, 2  ;;  %v716_v29 = vld [vmem:[%s3917_s18 + $0x98] sm:$0xff]  ;;  %v2639_v41 = vld [vmem:[%s5094_s1 + $0x3f0] sm:$0xff] }
  0xb9   : > { %3279 = vmatpush3.bf16.msra.mxu1 %v3278_v19  ;;  %3074 = vmatprep.mubr.f32.mxu1 %v4474_v12  ;;  %v835_v19 = vrot.slane %v4497_v49, 1  ;;  %v715_v12 = vld [vmem:[%s3917_s18 + $0x90] sm:$0xff]  ;;  %v3344_v27 = vpack.c.bf16 %v2638_v23, %v2637_v3  ;;  %v4557_v63 = vsel %vm834_vm1, %v860_v18, %v861_v17  ;;  %v863_v3 = vrot.slane %v4287_v21, 1  ;;  %v2640_v42 = vld [vmem:[%s5094_s1 + $0x3f8] sm:$0xff] }
  0xba   : > { %3281 = vmatprep.subr.bf16.mxu1 %v3280_v62  ;;  %3339 = vmatpush3.bf16.msra.mxu0 %v3338_v38  ;;  %v2621_v62 = vld [vmem:[%s5094_s1 + $0x360] sm:$0xff]  ;;  %v2622_v38 = vld [vmem:[%s5094_s1 + $0x368] sm:$0xff]  ;;  %v893_v49 = vrot.slane %v4493_v35, 2  ;;  %v4569_v23 = vsel %vm891_vm2, %v1006_v39, %v1008_v26  ;;  %v838_v18 = vrot.slane %v808_v9, 1  ;;  %v982_v21 = vld [vmem:[%s5094_s1 + $0x110] sm:$0xff]  ;;  %v766_v26 = vrot.slane %v716_v29, 7 }
  0xbb   : > { %2584 = vmatmul.mubr.msk.f32.gmra.mrb[12].mxu0 %vm4104_vm3, %v4115_v48  ;;  %3341 = vmatprep.subr.bf16.mxu0 %v3340_v50  ;;  %v3288_v50 = vpack.c.bf16 %v981_v2, %v980_v61  ;;  %5143 = vst [vmem:[#allocation27_spill] sm:$0xff] %v4569_v23  ;;  %v865_v2 = vrot.slane %v4309_v5, 1  ;;  %v983_v61 = vld [vmem:[%s5094_s1 + $0x118] sm:$0xff]  ;;  %v3346_v39 = vpack.c.bf16 %v2622_v38, %v2621_v62  ;;  %v2623_v9 = vld [vmem:[%s5094_s1 + $0x370] sm:$0xff]  ;;  %v2641_v38 = vld [vmem:[%s5094_s1 + $0x400] sm:$0xff] }
  0xbc   : > { %3075 = vmatmul.mubr.f32.gmra.mrb[12].mxu1 %v4525_v32  ;;  %1160 = vmatprep.mubr.f32.mxu0 %v4508_v0  ;;  %v4578_v32 = vrot.slane %v715_v12, 7  ;;  %v3348_v5 = vpack.c.bf16 %v2640_v42, %v2639_v41  ;;  %v2624_v12 = vld [vmem:[%s5094_s1 + $0x378] sm:$0xff]  ;;  %v3292_v62 = vpack.c.bf16 %v983_v61, %v982_v21  ;;  %v839_v41 = vsel %vm834_vm1, %v836_v10, %v838_v18 }
  0xbd   : > { %3283 = vmatpush3.bf16.msra.mxu1 %v3282_v55  ;;  %3077 = vmatprep.mubr.f32.mxu1 %v4528_v15  ;;  %v837_v55 = vsel %vm834_vm1, %v835_v19, %v836_v10  ;;  %v866_v15 = vrot.slane %v4305_v53, 1  ;;  %v4593_v19 = vsel %vm891_vm2, %v893_v49, %v895_v4  ;;  %v2642_v4 = vld [vmem:[%s5094_s1 + $0x408] sm:$0xff]  ;;  %v984_v10 = vld [vmem:[%s5094_s1 + $0x120] sm:$0xff] }
  0xbe   : > { %3285 = vmatprep.subr.bf16.mxu1 %v3284_v46  ;;  %3343 = vmatpush3.bf16.msra.mxu0 %v3342_v45  ;;  %v4590_v46 = vsel %vm891_vm2, %v892_v44, %v893_v49  ;;  %v807_v45 = vsel %vm737_vm0, 0.0, %v4578_v32  ;;  %v4610_v44 = vsel %vm737_vm0, %v4578_v32, %v766_v26  ;;  %v3350_v49 = vpack.c.bf16 %v2624_v12, %v2623_v9 }
  0xbf   : > { %1161 = vmatmul.mubr.f32.gmra.mrb[14].mxu0 %v4184_v8  ;;  %3345 = vmatprep.subr.bf16.mxu0 %v3344_v27  ;;  %v4600_v27 = vsel %vm834_vm1, %v861_v17, %v863_v3  ;;  %v1643_v29 = vrot.slane %v807_v45, 1  ;;  %v1644_v17 = vrot.slane %v4610_v44, 1  ;;  %v817_v3 = vsel %vm737_vm0, %v766_v26, 0.0  ;;  %v5157_v43 = vld [vmem:[#allocation26_spill] sm:$0xff] }
  0xc0   : > { %3078 = vmatmul.mubr.f32.gmra.mrb[14].mxu1 %v4569_v23  ;;  %1165 = vmatprep.mubr.f32.mxu0 %v4557_v63  ;;  %v1650_v42 = vrot.slane %v807_v45, 2  ;;  %v1646_v21 = vrot.slane %v817_v3, 1  ;;  %v1651_v61 = vrot.slane %v4610_v44, 2  ;;  %v1653_v23 = vrot.slane %v817_v3, 2  ;;  %v986_v45 = vld [vmem:[%s5094_s1 + $0x130] sm:$0xff] }
  0xc1   : > { %3287 = vmatpush3.bf16.msra.mxu1 %v3286_v24  ;;  %1415 = vmatprep.mubr.f32.mxu1 %v837_v55  ;;  %v985_v24 = vld [vmem:[%s5094_s1 + $0x128] sm:$0xff]  ;;  %v4625_v18 = vpack.c.bf16 %v2642_v4, %v2641_v38  ;;  %v4628_v55 = vsel %vm834_vm1, %v1643_v29, %v1644_v17  ;;  %v868_v12 = vrot.slane %v4361_v60, 1  ;;  %v990_v4 = vld [vmem:[%s5094_s1 + $0x150] sm:$0xff]  ;;  %v999_v29 = vrot.slane %v4427_v52, 1 }
  0xc2   : > { %3289 = vmatprep.subr.bf16.mxu1 %v3288_v50  ;;  %3347 = vmatpush3.bf16.msra.mxu0 %v3346_v39  ;;  %v4635_v39 = vsel %vm834_vm1, %v1644_v17, %v1646_v21  ;;  %v4638_v26 = vsel %vm891_vm2, %v1650_v42, %v1651_v61  ;;  %v4641_v9 = vsel %vm891_vm2, %v1651_v61, %v1653_v23  ;;  %v987_v23 = vld [vmem:[%s5094_s1 + $0x138] sm:$0xff]  ;;  %v993_v17 = vld [vmem:[%s5094_s1 + $0x168] sm:$0xff]  ;;  %v1001_v3 = vrot.slane %v4477_v36, 1 }
  0xc3   : > { %2586 = vmatmul.mubr.msk.f32.gmra.mrb[16].mxu0 %vm4104_vm3, %v4162_v1  ;;  %3349 = vmatprep.subr.bf16.mxu0 %v3348_v5  ;;  %v4644_v5 = vsel %vm834_vm1, %v865_v2, %v866_v15  ;;  %v4659_v60 = vsel %vm834_vm1, %v866_v15, %v868_v12  ;;  %v871_v2 = vrot.slane %v4365_v11, 1  ;;  %v3300_v38 = vpack.c.bf16 %v987_v23, %v986_v45  ;;  %v995_v21 = vld [vmem:[%s5094_s1 + $0x178] sm:$0xff]  ;;  %v2646_v45 = vld [vmem:[%s5094_s1 + $0x428] sm:$0xff] }
  0xc4   : > { %2594 = vmatmul.mubr.msk.f32.vlgmr.msra.gmra.mrb[16].mxu1 %vm4104_vm3, %v4439_v54  ;;  %1170 = vmatprep.mubr.f32.mxu0 %v4600_v27  ;;  %v3296_v54 = vpack.c.bf16 %v985_v24, %v984_v10  ;;  %v873_v15 = vrot.slane %v4420_v20, 1  ;;  %v998_v20 = vrot.slane %v4431_v58, 1  ;;  %v4725_v36 = vsel %vm834_vm1, %v999_v29, %v1001_v3  ;;  %v2643_v10 = vld [vmem:[%s5094_s1 + $0x410] sm:$0xff]  ;;  %v2644_v24 = vld [vmem:[%s5094_s1 + $0x418] sm:$0xff] }
  0xc5   : > { %3291 = vmatpush3.bf16.msra.mxu1 %v3288_v50  ;;  %1420 = vmatprep.mubr.f32.mxu1 %v839_v41  ;;  %v870_v50 = vrot.slane %v4372_v47, 1  ;;  %v4745_v12 = vpack.c.bf16 %v2644_v24, %v2643_v10  ;;  %v2648_v23 = vld [vmem:[%s5094_s1 + $0x438] sm:$0xff] }
  0xc6   : > { %3293 = vmatprep.subr.bf16.mxu1 %v3292_v62  ;;  %3351 = vmatpush3.bf16.msra.mxu0 %v3350_v49  ;;  %v4711_v58 = vsel %vm834_vm1, %v998_v20, %v999_v29  ;;  %v994_v49 = vld [vmem:[%s5094_s1 + $0x170] sm:$0xff] }
  0xc7   : > { %1171 = vmatmul.mubr.f32.gmra.mrb[18].mxu0 %v4226_v25  ;;  %3353 = vmatprep.subr.bf16.mxu0 %v4625_v18  ;;  %v4678_v47 = vsel %vm834_vm1, %v870_v50, %v871_v2  ;;  %v3316_v61 = vpack.c.bf16 %v995_v21, %v994_v49  ;;  %v2651_v50 = vld [vmem:[%s5094_s1 + $0x450] sm:$0xff] }
  0xc8   : > { %1421 = vmatmul.mubr.f32.gmra.mrb[18].mxu1 %v4493_v35  ;;  %1175 = vmatprep.mubr.f32.mxu0 %v4644_v5  ;;  %v988_v35 = vld [vmem:[%s5094_s1 + $0x140] sm:$0xff] }
  0xc9   : > { %1425 = vmatprep.mubr.f32.mxu1 %v3966_v56  ;;  %3295 = vmatpush3.bf16.msra.mxu1 %v3292_v62  ;;  %v989_v56 = vld [vmem:[%s5094_s1 + $0x148] sm:$0xff] }
  0xca   : > { %3297 = vmatprep.subr.bf16.mxu1 %v3296_v54  ;;  %v3304_v62 = vpack.c.bf16 %v989_v56, %v988_v35  ;;  %v2656_v35 = vld [vmem:[%s5094_s1 + $0x478] sm:$0xff] }
  0xcb   : > { %2588 = vmatmul.mubr.msk.f32.gmra.mrb[20].mxu0 %vm4104_vm3, %v4235_v30 }
  0xcc   : > { %2596 = vmatmul.mubr.msk.f32.gmra.mrb[20].mxu1 %vm4104_vm3, %v3924_v33  ;;  %1180 = vmatprep.mubr.f32.mxu0 %v4659_v60  ;;  %v991_v33 = vld [vmem:[%s5094_s1 + $0x158] sm:$0xff] }
  0xcd   : > { %1430 = vmatprep.mubr.f32.mxu1 %v4124_v51  ;;  %3299 = vmatpush3.bf16.msra.mxu1 %v3296_v54  ;;  %v4692_v51 = vsel %vm834_vm1, %v871_v2, %v873_v15  ;;  %v3308_v41 = vpack.c.bf16 %v991_v33, %v990_v4  ;;  %v2645_v54 = vld [vmem:[%s5094_s1 + $0x420] sm:$0xff]  ;;  %v2652_v2 = vld [vmem:[%s5094_s1 + $0x458] sm:$0xff] }
  0xce   : > { %3301 = vmatprep.subr.bf16.mxu1 %v3300_v38 }
  0xcf   : > { %1181 = vmatmul.mubr.f32.gmra.mrb[22].mxu0 %v4305_v53 }
  0xd0   : > { %1431 = vmatmul.mubr.f32.gmra.mrb[22].mxu1 %v3937_v40  ;;  %1185 = vmatprep.mubr.f32.mxu0 %v4678_v47  ;;  %v992_v40 = vld [vmem:[%s5094_s1 + $0x160] sm:$0xff] }
  0xd1   : > { %1435 = vmatprep.mubr.f32.mxu1 %v4178_v6  ;;  %3303 = vmatpush3.bf16.msra.mxu1 %v3300_v38  ;;  %v3312_v42 = vpack.c.bf16 %v993_v17, %v992_v40  ;;  %v2654_v38 = vld [vmem:[%s5094_s1 + $0x468] sm:$0xff] }
  0xd2   : > { %3305 = vmatprep.subr.bf16.mxu1 %v3304_v62 }
  0xd3   : > { %2590 = vmatmul.mubr.msk.f32.gmra.mrb[24].mxu0 %vm4104_vm3, %v4289_v22 }
  0xd4   : > { %2598 = vmatmul.mubr.msk.f32.gmra.mrb[24].mxu1 %vm4104_vm3, %v3974_v59  ;;  %1190 = vmatprep.mubr.f32.mxu0 %v4692_v51 }
  0xd5   : > { %1440 = vmatprep.mubr.f32.mxu1 %v4284_v13  ;;  %3307 = vmatpush3.bf16.msra.mxu1 %v3304_v62 }
  0xd6   : > { %3309 = vmatprep.subr.bf16.mxu1 %v3308_v41 }
  0xd7   : > { %1191 = vmatmul.mubr.f32.gmra.mrb[26].mxu0 %v4365_v11 }
  0xd8   : > { %1441 = vmatmul.mubr.f32.gmra.mrb[26].mxu1 %v4034_v16  ;;  %1195 = vmatprep.mubr.f32.mxu0 %v4711_v58 }
  0xd9   : > { %1445 = vmatprep.mubr.f32.mxu1 %v4320_v34  ;;  %3311 = vmatpush3.bf16.msra.mxu1 %v3308_v41 }
  0xda   : > { %3313 = vmatprep.subr.bf16.mxu1 %v3312_v42 }
  0xdb   : > { %2592 = vmatmul.mubr.msk.f32.gmra.mrb[28].mxu0 %vm4104_vm3, %v4374_v7 }
  0xdc   : > { %2600 = vmatmul.mubr.msk.f32.gmra.mrb[28].mxu1 %vm4104_vm3, %v4029_v14  ;;  %1200 = vmatprep.mubr.f32.mxu0 %v4725_v36 }
  0xdd   : > { %1450 = vmatprep.mubr.f32.mxu1 %v4395_v31  ;;  %3315 = vmatpush3.bf16.msra.mxu1 %v3312_v42 }
  0xde   : > { %3317 = vmatprep.subr.bf16.mxu1 %v3316_v61 }
  0xdf   : > { %1201 = vmatmul.mubr.f32.gmra.mrb[30].mxu0 %v4427_v52 }
  0xe0   : > { %1451 = vmatmul.mubr.f32.gmra.mrb[30].mxu1 %v4088_v37  ;;  %1770 = vmatprep.mubr.f32.mxu0 %v4178_v6  ;;  %v2647_v6 = vld [vmem:[%s5094_s1 + $0x430] sm:$0xff] }
  0xe1   : > { %1455 = vmatprep.mubr.f32.mxu1 %v4451_v28  ;;  %3319 = vmatpush3.bf16.msra.mxu1 %v3316_v61 }
  0xe2   : > { %3384 = vmatprep.subr.bf16.mxu1 %v4625_v18 }
  0xe3   : > { %2658 = vmatmul.mubr.msk.f32.vlgmr.msra.gmra.mrb[32].mxu0 %vm4104_vm3, %v3974_v59  ;;  %v4764_v59 = vpack.c.bf16 %v2646_v45, %v2645_v54 }
  0xe4   : > { %2602 = vmatmul.mubr.msk.f32.gmra.mrb[32].mxu1 %vm4104_vm3, %v4115_v48  ;;  %3355 = vmatpush3.bf16.msra.mxu0 %v4625_v18 }
  0xe5   : > { %1460 = vmatprep.mubr.f32.mxu1 %v4508_v0  ;;  %1775 = vmatprep.mubr.f32.mxu0 %v4284_v13  ;;  %v4778_v13 = vpack.c.bf16 %v2648_v23, %v2647_v6 }
  0xe6   : > { %3357 = vmatprep.subr.bf16.mxu0 %v4745_v12 }
  0xe7   : > { %1776 = vmatmul.mubr.f32.gmra.mrb[34].mxu0 %v4034_v16  ;;  %v2649_v16 = vld [vmem:[%s5094_s1 + $0x440] sm:$0xff] }
  0xe8   : > { %1461 = vmatmul.mubr.f32.gmra.mrb[34].mxu1 %v4184_v8  ;;  %1780 = vmatprep.mubr.f32.mxu0 %v4320_v34  ;;  %v2650_v34 = vld [vmem:[%s5094_s1 + $0x448] sm:$0xff] }
  0xe9   : > { %1465 = vmatprep.mubr.f32.mxu1 %v4557_v63  ;;  %3359 = vmatpush3.bf16.msra.mxu0 %v4745_v12 }
  0xea   : > { %3361 = vmatprep.subr.bf16.mxu0 %v4764_v59 }
  0xeb   : > { %2660 = vmatmul.mubr.msk.f32.gmra.mrb[36].mxu0 %vm4104_vm3, %v4029_v14  ;;  %v4796_v14 = vpack.c.bf16 %v2650_v34, %v2649_v16 }
  0xec   : > { %2604 = vmatmul.mubr.msk.f32.gmra.mrb[36].mxu1 %vm4104_vm3, %v4162_v1  ;;  %1785 = vmatprep.mubr.f32.mxu0 %v4395_v31  ;;  %v3372_v31 = vpack.c.bf16 %v2652_v2, %v2651_v50 }
  0xed   : > { %1470 = vmatprep.mubr.f32.mxu1 %v4600_v27  ;;  %3363 = vmatpush3.bf16.msra.mxu0 %v4764_v59 }
  0xee   : > { %3365 = vmatprep.subr.bf16.mxu0 %v4778_v13 }
  0xef   : > { %1786 = vmatmul.mubr.f32.gmra.mrb[38].mxu0 %v4088_v37  ;;  %v2653_v37 = vld [vmem:[%s5094_s1 + $0x460] sm:$0xff] }
  0xf0   : > { %1471 = vmatmul.mubr.f32.gmra.mrb[38].mxu1 %v4226_v25  ;;  %1790 = vmatprep.mubr.f32.mxu0 %v4451_v28  ;;  %v2655_v28 = vld [vmem:[%s5094_s1 + $0x470] sm:$0xff] }
  0xf1   : > { %1475 = vmatprep.mubr.f32.mxu1 %v4644_v5  ;;  %3367 = vmatpush3.bf16.msra.mxu0 %v4778_v13 }
  0xf2   : > { %3369 = vmatprep.subr.bf16.mxu0 %v4796_v14 }
  0xf3   : > { %2662 = vmatmul.mubr.msk.f32.gmra.mrb[40].mxu0 %vm4104_vm3, %v4115_v48  ;;  %v3376_v48 = vpack.c.bf16 %v2654_v38, %v2653_v37 }
  0xf4   : > { %2606 = vmatmul.mubr.msk.f32.gmra.mrb[40].mxu1 %vm4104_vm3, %v4235_v30  ;;  %1795 = vmatprep.mubr.f32.mxu0 %v4508_v0  ;;  %v3380_v0 = vpack.c.bf16 %v2656_v35, %v2655_v28 }
  0xf5   : > { %1480 = vmatprep.mubr.f32.mxu1 %v4659_v60  ;;  %3371 = vmatpush3.bf16.msra.mxu0 %v4796_v14 }
  0xf6   : > { %3373 = vmatprep.subr.bf16.mxu0 %v3372_v31 }
  0xf7   : > { %1796 = vmatmul.mubr.f32.gmra.mrb[42].mxu0 %v4184_v8  ;;  %v5145_v8 = vld [vmem:[#allocation14_spill] sm:$0xff] }
  0xf8   : > { %1481 = vmatmul.mubr.f32.gmra.mrb[42].mxu1 %v4305_v53  ;;  %1800 = vmatprep.mubr.f32.mxu0 %v4557_v63  ;;  %v5152_v63 = vld [vmem:[#allocation21_spill] sm:$0xff] }
  0xf9   : > { %1485 = vmatprep.mubr.f32.mxu1 %v4678_v47  ;;  %3375 = vmatpush3.bf16.msra.mxu0 %v3372_v31 }
  0xfa   : > { %3377 = vmatprep.subr.bf16.mxu0 %v3376_v48 }
  0xfb   : > { %2664 = vmatmul.mubr.msk.f32.gmra.mrb[44].mxu0 %vm4104_vm3, %v4162_v1  ;;  %v5144_v1 = vld [vmem:[#allocation13_spill] sm:$0xff] }
  0xfc   : > { %2608 = vmatmul.mubr.msk.f32.gmra.mrb[44].mxu1 %vm4104_vm3, %v4289_v22  ;;  %1805 = vmatprep.mubr.f32.mxu0 %v4600_v27 }
  0xfd   : > { %1490 = vmatprep.mubr.f32.mxu1 %v4692_v51  ;;  %3379 = vmatpush3.bf16.msra.mxu0 %v3376_v48 }
  0xfe   : > { %3381 = vmatprep.subr.bf16.mxu0 %v3380_v0 }
  0xff   : > { %1806 = vmatmul.mubr.f32.gmra.mrb[46].mxu0 %v4226_v25  ;;  %v5146_v25 = vld [vmem:[#allocation15_spill] sm:$0xff] }
 0x100   : > { %1491 = vmatmul.mubr.f32.gmra.mrb[46].mxu1 %v4365_v11  ;;  %1810 = vmatprep.mubr.f32.mxu0 %v4644_v5 }
 0x101   : > { %3112 = vmatprep.mubr.f32.mxu1 %v4590_v46  ;;  %3383 = vmatpush3.bf16.msra.mxu0 %v3380_v0  ;;  %v5153_v46 = vld [vmem:[#allocation22_spill] sm:$0xff] }
 0x103   : > { %2666 = vmatmul.mubr.msk.f32.gmra.mrb[48].mxu0 %vm4104_vm3, %v4235_v30  ;;  %v5148_v30 = vld [vmem:[#allocation17_spill] sm:$0xff] }
 0x104   : > { %3113 = vmatmul.mubr.f32.vlgmr.msra.gmra.mrb[0].mxu1 %v4593_v19  ;;  %1815 = vmatprep.mubr.f32.mxu0 %v4659_v60  ;;  %v5155_v19 = vld [vmem:[#allocation24_spill] sm:$0xff] }
 0x105   : > { %3392 = vmatpush3.bf16.msra.mxu1 %v4625_v18  ;;  %3115 = vmatprep.mubr.f32.mxu1 %v3969_v57  ;;  %v5147_v57 = vld [vmem:[#allocation16_spill] sm:$0xff] }
 0x106   : > { %3385 = vmatprep.subr.bf16.mxu1 %v4745_v12 }
 0x107   : > { %1816 = vmatmul.mubr.f32.gmra.mrb[50].mxu0 %v4305_v53  ;;  %v5149_v53 = vld [vmem:[#allocation18_spill] sm:$0xff] }
 0x108   : > { %3116 = vmatmul.mubr.f32.gmra.mrb[2].mxu1 %v5144_v1  ;;  %1820 = vmatprep.mubr.f32.mxu0 %v4678_v47 }
 0x109   : > { %3393 = vmatpush3.bf16.msra.mxu1 %v4745_v12  ;;  %3118 = vmatprep.mubr.f32.mxu1 %v5145_v8 }
 0x10a   : > { %3386 = vmatprep.subr.bf16.mxu1 %v4764_v59 }
 0x10b   : > { %2668 = vmatmul.mubr.msk.f32.gmra.mrb[52].mxu0 %vm4104_vm3, %v4289_v22  ;;  %v5150_v22 = vld [vmem:[#allocation19_spill] sm:$0xff] }
 0x10c   : > { %3119 = vmatmul.mubr.f32.gmra.mrb[4].mxu1 %v5146_v25  ;;  %1825 = vmatprep.mubr.f32.mxu0 %v4692_v51 }
 0x10d   : > { %3394 = vmatpush3.bf16.msra.mxu1 %v4764_v59  ;;  %3121 = vmatprep.mubr.f32.mxu1 %v5147_v57 }
 0x10e   : > { %3387 = vmatprep.subr.bf16.mxu1 %v4778_v13 }
 0x10f   : > { %1826 = vmatmul.mubr.f32.gmra.mrb[54].mxu0 %v4365_v11  ;;  %v5151_v11 = vld [vmem:[#allocation20_spill] sm:$0xff] }
 0x110   : > { %3122 = vmatmul.mubr.f32.gmra.mrb[6].mxu1 %v5148_v30  ;;  %1830 = vmatprep.mubr.f32.mxu0 %v4711_v58 }
 0x111   : > { %3395 = vmatpush3.bf16.msra.mxu1 %v4778_v13  ;;  %3124 = vmatprep.mubr.f32.mxu1 %v5149_v53 }
 0x112   : > { %3388 = vmatprep.subr.bf16.mxu1 %v4796_v14 }
 0x113   : > { %2670 = vmatmul.mubr.msk.f32.gmra.mrb[56].mxu0 %vm4104_vm3, %v4374_v7  ;;  %v5154_v7 = vld [vmem:[#allocation23_spill] sm:$0xff] }
 0x114   : > { %3125 = vmatmul.mubr.f32.gmra.mrb[8].mxu1 %v5150_v22  ;;  %1835 = vmatprep.mubr.f32.mxu0 %v4725_v36 }
 0x115   : > { %3396 = vmatpush3.bf16.msra.mxu1 %v4796_v14  ;;  %3127 = vmatprep.mubr.f32.mxu1 %v5151_v11 }
 0x116   : > { %3389 = vmatprep.subr.bf16.mxu1 %v3372_v31 }
 0x117   : > { %1836 = vmatmul.mubr.f32.gmra.mrb[58].mxu0 %v4427_v52  ;;  %v5156_v52 = vld [vmem:[#allocation25_spill] sm:$0xff] }
 0x118   : > { %3128 = vmatmul.mubr.f32.gmra.mrb[10].mxu1 %v5152_v63  ;;  %1840 = vmatprep.mubr.f32.mxu0 %v4628_v55 }
 0x119   : > { %3397 = vmatpush3.bf16.msra.mxu1 %v3372_v31  ;;  %3130 = vmatprep.mubr.f32.mxu1 %v5153_v46 }
 0x11a   : > { %3390 = vmatprep.subr.bf16.mxu1 %v3376_v48 }
 0x11b   : > { %2672 = vmatmul.mubr.msk.f32.gmra.mrb[60].mxu0 %vm4104_vm3, %v4578_v32  ;;  %v5158_v32 = vld [vmem:[#allocation27_spill] sm:$0xff] }
 0x11c   : > { %3131 = vmatmul.mubr.f32.gmra.mrb[12].mxu1 %v5154_v7  ;;  %1845 = vmatprep.mubr.f32.mxu0 %v4635_v39 }
 0x11d   : > { %3398 = vmatpush3.bf16.msra.mxu1 %v3376_v48  ;;  %3133 = vmatprep.mubr.f32.mxu1 %v5155_v19 }
 0x11e   : > { %3391 = vmatprep.subr.bf16.mxu1 %v3380_v0 }
 0x11f   : > { %1846 = vmatmul.mubr.f32.gmra.mrb[62].mxu0 %v4610_v44 }
 0x120   : > { %3134 = vmatmul.mubr.f32.gmra.mrb[14].mxu1 %v5156_v52  ;;  %3168 = vmatprep.mubr.f32.mxu0 %v5145_v8 }
 0x121   : > { %3399 = vmatpush3.bf16.msra.mxu1 %v3380_v0  ;;  %3180 = vmatprep.mubr.f32.mxu1 %v5153_v46 }
 0x123   : > { %3169 = vmatmul.mubr.f32.vlgmr.msra.gmra.mrb[64].mxu0 %v5146_v25 }
 0x124   : > { %3181 = vmatmul.mubr.f32.vlgmr.msra.gmra.mrb[8].mxu1 %v5154_v7  ;;  %3171 = vmatprep.mubr.f32.mxu0 %v5147_v57 }
 0x125   : > { %3183 = vmatprep.mubr.f32.mxu1 %v5155_v19 }
 0x127   : > { %3172 = vmatmul.mubr.f32.gmra.mrb[66].mxu0 %v5148_v30 }
 0x128   : > { %3184 = vmatmul.mubr.f32.gmra.mrb[10].mxu1 %v5156_v52  ;;  %3174 = vmatprep.mubr.f32.mxu0 %v5149_v53 }
 0x129   : > { %3186 = vmatprep.mubr.f32.mxu1 %v5157_v43 }
 0x12b   : > { %3175 = vmatmul.mubr.f32.gmra.mrb[68].mxu0 %v5150_v22 }
 0x12c   : > { %3187 = vmatmul.mubr.f32.gmra.mrb[12].mxu1 %v5158_v32  ;;  %3177 = vmatprep.mubr.f32.mxu0 %v5151_v11 }
 0x12d   : > { %3189 = vmatprep.mubr.f32.mxu1 %v4638_v26 }
 0x12f   : > { %3178 = vmatmul.mubr.f32.gmra.mrb[70].mxu0 %v5152_v63 }
 0x130   : > { %3190 = vmatmul.mubr.f32.gmra.mrb[14].mxu1 %v4641_v9 }
 0x176   : > { %v2720_v27 = vpop.f32.mrb[0].mxu0 }
 0x177   : > { %v2721_v44 = vpop.f32.mrb[1].mxu0 }
 0x178   : > { %v2722_v18 = vadd.f32 %v2721_v44, %v2720_v27 }
 0x17a   : > { %v2723_v55 = vpop.f32.mrb[2].mxu0 }
 0x17b   : > { %v2724_v39 = vpop.f32.mrb[3].mxu0 }
 0x17c   : > { %v2725_v5 = vadd.f32 %v2724_v39, %v2723_v55 }
 0x17e   : > { %v2726_v60 = vpop.f32.mrb[4].mxu0 }
 0x17f   : > { %v2727_v56 = vpop.f32.mrb[5].mxu0 }
 0x180   : > { %v2728_v47 = vadd.f32 %v2727_v56, %v2726_v60 }
 0x182   : > { %v2729_v15 = vpop.f32.mrb[6].mxu0 }
 0x183   : > { %v2730_v62 = vpop.f32.mrb[7].mxu0 }
 0x184   : > { %v2731_v4 = vadd.f32 %v2730_v62, %v2729_v15 }
 0x186   : > { %v2732_v33 = vpop.f32.mrb[8].mxu0 }
 0x187   : > { %v2733_v51 = vpop.f32.mrb[9].mxu0 }
 0x188   : > { %v2734_v20 = vadd.f32 %v2733_v51, %v2732_v33 }
 0x18a   : > { %v2735_v26 = vpop.f32.mrb[10].mxu0 }
 0x18b   : > { %v2736_v29 = vpop.f32.mrb[11].mxu0 }
 0x18c   : > { %v2737_v41 = vadd.f32 %v2736_v29, %v2735_v26 }
 0x18e   : > { %v2738_v40 = vpop.f32.mrb[12].mxu0 }
 0x18f   : > { %v2739_v9 = vpop.f32.mrb[13].mxu0 }
 0x190   : > { %v2740_v17 = vadd.f32 %v2739_v9, %v2738_v40 }
 0x192   : > { %v2741_v58 = vpop.f32.mrb[14].mxu0 }
 0x193   : > { %v2742_v3 = vpop.f32.mrb[15].mxu0 }
 0x194   : > { %v2743_v42 = vadd.f32 %v2742_v3, %v2741_v58 }
 0x196   : > { %v2744_v49 = vpop.f32.mrb[16].mxu0 }
 0x197   : > { %v2832_v21 = vpop.f32.mrb[16].mxu1  ;;  %v2745_v36 = vpop.f32.mrb[17].mxu0 }
 0x198   : > { %v2746_v61 = vadd.f32 %v2745_v36, %v2744_v49  ;;  %v2833_v10 = vpop.f32.mrb[17].mxu1 }
 0x199   : > { %v2834_v24 = vadd.f32 %v2833_v10, %v2832_v21 }
 0x19a   : > { %v2747_v12 = vpop.f32.mrb[18].mxu0 }
 0x19b   : > { %v2835_v54 = vpop.f32.mrb[18].mxu1  ;;  %v2748_v45 = vpop.f32.mrb[19].mxu0  ;;  %v4910_v59 = vadd.f32 %v2834_v24, %v2722_v18 }
 0x19c   : > { %v2749_v6 = vadd.f32 %v2748_v45, %v2747_v12  ;;  %v2836_v23 = vpop.f32.mrb[19].mxu1 }
 0x19d   : > { %v2837_v13 = vadd.f32 %v2836_v23, %v2835_v54 }
 0x19e   : > { %v2750_v16 = vpop.f32.mrb[20].mxu0 }
 0x19f   : > { %v2838_v34 = vpop.f32.mrb[20].mxu1  ;;  %v2751_v14 = vpop.f32.mrb[21].mxu0  ;;  %v4912_v50 = vadd.f32 %v2837_v13, %v2725_v5 }
 0x1a0   : > { %v2752_v2 = vadd.f32 %v2751_v14, %v2750_v16  ;;  %v2839_v31 = vpop.f32.mrb[21].mxu1 }
 0x1a1   : > { %v2840_v37 = vadd.f32 %v2839_v31, %v2838_v34 }
 0x1a2   : > { %v2753_v38 = vpop.f32.mrb[22].mxu0 }
 0x1a3   : > { %v2841_v48 = vpop.f32.mrb[22].mxu1  ;;  %v2754_v28 = vpop.f32.mrb[23].mxu0  ;;  %v4914_v35 = vadd.f32 %v2840_v37, %v2728_v47 }
 0x1a4   : > { %v2755_v0 = vadd.f32 %v2754_v28, %v2753_v38  ;;  %v2842_v1 = vpop.f32.mrb[23].mxu1 }
 0x1a5   : > { %v2843_v8 = vadd.f32 %v2842_v1, %v2841_v48 }
 0x1a6   : > { %v2756_v25 = vpop.f32.mrb[24].mxu0 }
 0x1a7   : > { %v2844_v57 = vpop.f32.mrb[24].mxu1  ;;  %v2757_v30 = vpop.f32.mrb[25].mxu0  ;;  %v4916_v53 = vadd.f32 %v2843_v8, %v2731_v4 }
 0x1a8   : > { %v2758_v22 = vadd.f32 %v2757_v30, %v2756_v25  ;;  %v2845_v11 = vpop.f32.mrb[25].mxu1 }
 0x1a9   : > { %v2846_v63 = vadd.f32 %v2845_v11, %v2844_v57 }
 0x1aa   : > { %v2759_v46 = vpop.f32.mrb[26].mxu0 }
 0x1ab   : > { %v2847_v7 = vpop.f32.mrb[26].mxu1  ;;  %v2760_v19 = vpop.f32.mrb[27].mxu0  ;;  %v4918_v52 = vadd.f32 %v2846_v63, %v2734_v20 }
 0x1ac   : > { %v2761_v43 = vadd.f32 %v2760_v19, %v2759_v46  ;;  %v2848_v32 = vpop.f32.mrb[27].mxu1 }
 0x1ad   : > { %v2849_v27 = vadd.f32 %v2848_v32, %v2847_v7 }
 0x1ae   : > { %v2762_v44 = vpop.f32.mrb[28].mxu0 }
 0x1af   : > { %v2850_v18 = vpop.f32.mrb[28].mxu1  ;;  %v2763_v55 = vpop.f32.mrb[29].mxu0  ;;  %v4920_v39 = vadd.f32 %v2849_v27, %v2737_v41 }
 0x1b0   : > { %v2764_v5 = vadd.f32 %v2763_v55, %v2762_v44  ;;  %v2851_v60 = vpop.f32.mrb[29].mxu1 }
 0x1b1   : > { %v2852_v56 = vadd.f32 %v2851_v60, %v2850_v18 }
 0x1b2   : > { %v2765_v47 = vpop.f32.mrb[30].mxu0 }
 0x1b3   : > { %v2853_v15 = vpop.f32.mrb[30].mxu1  ;;  %v2766_v62 = vpop.f32.mrb[31].mxu0  ;;  %v4922_v4 = vadd.f32 %v2852_v56, %v2740_v17 }
 0x1b4   : > { %v2767_v33 = vadd.f32 %v2766_v62, %v2765_v47  ;;  %v2854_v51 = vpop.f32.mrb[31].mxu1 }
 0x1b5   : > { %v2855_v20 = vadd.f32 %v2854_v51, %v2853_v15 }
 0x1b6   : > { %v2944_v26 = vpop.f32.mrb[32].mxu0 }
 0x1b7   : > { %v2856_v29 = vpop.f32.mrb[32].mxu1  ;;  %v2945_v40 = vpop.f32.mrb[33].mxu0  ;;  %v4924_v9 = vadd.f32 %v2855_v20, %v2743_v42 }
 0x1b8   : > { %v2857_v58 = vpop.f32.mrb[33].mxu1  ;;  %v4926_v3 = vadd.f32 %v2945_v40, %v2944_v26 }
 0x1b9   : > { %v2858_v41 = vadd.f32 %v2857_v58, %v2856_v29 }
 0x1ba   : > { %v2947_v49 = vpop.f32.mrb[34].mxu0 }
 0x1bb   : > { %v3435_v21 = vadd.f32 %v2858_v41, %v2746_v61  ;;  %v2859_v36 = vpop.f32.mrb[34].mxu1  ;;  %v2948_v10 = vpop.f32.mrb[35].mxu0 }
 0x1bc   : > { %v2860_v24 = vpop.f32.mrb[35].mxu1  ;;  %v2949_v12 = vadd.f32 %v2948_v10, %v2947_v49 }
 0x1bd   : > { %v2861_v17 = vadd.f32 %v2860_v24, %v2859_v36 }
 0x1be   : > { %v2950_v54 = vpop.f32.mrb[36].mxu0 }
 0x1bf   : > { %v3432_v45 = vadd.f32 %v2861_v17, %v2749_v6  ;;  %v2862_v23 = vpop.f32.mrb[36].mxu1  ;;  %v2951_v13 = vpop.f32.mrb[37].mxu0 }
 0x1c0   : > { %v2863_v16 = vpop.f32.mrb[37].mxu1  ;;  %v2952_v34 = vadd.f32 %v2951_v13, %v2950_v54 }
 0x1c1   : > { %v2864_v14 = vadd.f32 %v2863_v16, %v2862_v23 }
 0x1c2   : > { %v2953_v42 = vpop.f32.mrb[38].mxu0 }
 0x1c3   : > { %v4928_v31 = vadd.f32 %v2864_v14, %v2752_v2  ;;  %v2865_v37 = vpop.f32.mrb[38].mxu1  ;;  %v2954_v38 = vpop.f32.mrb[39].mxu0 }
 0x1c4   : > { %v2866_v48 = vpop.f32.mrb[39].mxu1  ;;  %v2955_v28 = vadd.f32 %v2954_v38, %v2953_v42 }
 0x1c5   : > { %v2867_v61 = vadd.f32 %v2866_v48, %v2865_v37 }
 0x1c6   : > { %v2956_v1 = vpop.f32.mrb[40].mxu0 }
 0x1c7   : > { %v4930_v8 = vadd.f32 %v2867_v61, %v2755_v0  ;;  %v2868_v25 = vpop.f32.mrb[40].mxu1  ;;  %v2957_v57 = vpop.f32.mrb[41].mxu0 }
 0x1c8   : > { %v2869_v30 = vpop.f32.mrb[41].mxu1  ;;  %v2958_v6 = vadd.f32 %v2957_v57, %v2956_v1 }
 0x1c9   : > { %v2870_v11 = vadd.f32 %v2869_v30, %v2868_v25 }
 0x1ca   : > { %v2959_v63 = vpop.f32.mrb[42].mxu0 }
 0x1cb   : > { %v4932_v46 = vadd.f32 %v2870_v11, %v2758_v22  ;;  %v2871_v7 = vpop.f32.mrb[42].mxu1  ;;  %v2960_v19 = vpop.f32.mrb[43].mxu0 }
 0x1cc   : > { %v2872_v2 = vpop.f32.mrb[43].mxu1  ;;  %v2961_v32 = vadd.f32 %v2960_v19, %v2959_v63 }
 0x1cd   : > { %v2873_v27 = vadd.f32 %v2872_v2, %v2871_v7 }
 0x1ce   : > { %v2962_v44 = vpop.f32.mrb[44].mxu0 }
 0x1cf   : > { %v3444_v18 = vadd.f32 %v2873_v27, %v2761_v43  ;;  %v2874_v55 = vpop.f32.mrb[44].mxu1  ;;  %v2963_v60 = vpop.f32.mrb[45].mxu0 }
 0x1d0   : > { %v2875_v56 = vpop.f32.mrb[45].mxu1  ;;  %v2964_v0 = vadd.f32 %v2963_v60, %v2962_v44 }
 0x1d1   : > { %v2876_v47 = vadd.f32 %v2875_v56, %v2874_v55 }
 0x1d2   : > { %v2965_v15 = vpop.f32.mrb[46].mxu0 }
 0x1d3   : > { %v3453_v62 = vadd.f32 %v2876_v47, %v2764_v5  ;;  %v2877_v51 = vpop.f32.mrb[46].mxu1  ;;  %v2966_v20 = vpop.f32.mrb[47].mxu0 }
 0x1d4   : > { %v2878_v26 = vpop.f32.mrb[47].mxu1  ;;  %v2967_v29 = vadd.f32 %v2966_v20, %v2965_v15 }
 0x1d5   : > { %v2879_v22 = vadd.f32 %v2878_v26, %v2877_v51 }
 0x1d6   : > { %v2968_v40 = vpop.f32.mrb[48].mxu0 }
 0x1d7   : > { %v3450_v58 = vadd.f32 %v2879_v22, %v2767_v33  ;;  %v3114_v41 = vpop.f32.mrb[0].mxu1  ;;  %v2969_v49 = vpop.f32.mrb[49].mxu0  ;;  %v4972_v22 = vld [vmem:[%s5096_s3] ss:$0 sm:$0xff] }
 0x1d8   : > { %v3401_v36 = vadd.f32 %v4912_v50, %v3114_v41  ;;  %v1562_v10 = vpop.f32.mrb[1].mxu1  ;;  %v2970_v43 = vadd.f32 %v2969_v49, %v2968_v40 }
 0x1d9   : > { %v3405_v24 = vadd.f32 %v4910_v59, %v1562_v10 }
 0x1da   : > { %v2971_v17 = vpop.f32.mrb[50].mxu0  ;;  %v3402_v54 = vadd.f32 %v3401_v36, %v2949_v12  ;;  %v3436_v23 = vadd.f32 %v3435_v21, %v2970_v43 }
 0x1db   : > { %v3117_v13 = vpop.f32.mrb[2].mxu1  ;;  %v2972_v5 = vpop.f32.mrb[51].mxu0  ;;  %v3406_v16 = vadd.f32 %v3405_v24, %v4926_v3 }
 0x1dc   : > { %v3409_v14 = vadd.f32 %v4916_v53, %v3117_v13  ;;  %v1572_v42 = vpop.f32.mrb[3].mxu1  ;;  %v2973_v37 = vadd.f32 %v2972_v5, %v2971_v17 }
 0x1dd   : > { %v3413_v33 = vadd.f32 %v4914_v35, %v1572_v42 }
 0x1de   : > { %v2974_v38 = vpop.f32.mrb[52].mxu0  ;;  %v3433_v48 = vadd.f32 %v3432_v45, %v2973_v37  ;;  %v3410_v50 = vadd.f32 %v3409_v14, %v2955_v28  ;;  %v2115_v14 = vld [vmem:[%s3657_s13 + $0x48] sm:$0xff]  ;;  %v2106_v37 = vld [vmem:[%s3657_s13] sm:$0xff] }
 0x1df   : > { %v3120_v61 = vpop.f32.mrb[4].mxu1  ;;  %v2975_v1 = vpop.f32.mrb[53].mxu0  ;;  %v3414_v25 = vadd.f32 %v3413_v33, %v2952_v34 }
 0x1e0   : > { %v3417_v59 = vadd.f32 %v4920_v39, %v3120_v61  ;;  %v1582_v12 = vpop.f32.mrb[5].mxu1  ;;  %v2976_v21 = vadd.f32 %v2975_v1, %v2974_v38  ;;  %v2114_v1 = vld [vmem:[%s3657_s13 + $0x40] sm:$0xff] }
 0x1e1   : > { %v3421_v57 = vadd.f32 %v4918_v52, %v1582_v12  ;;  %v2109_v12 = vld [vmem:[%s3657_s13 + $0x18] sm:$0xff] }
 0x1e2   : > { %v2977_v30 = vpop.f32.mrb[54].mxu0  ;;  %v4942_v3 = vadd.f32 %v4928_v31, %v2976_v21  ;;  %v4944_v53 = vadd.f32 %v3417_v59, %v2961_v32  ;;  %v2117_v21 = vld [vmem:[%s3657_s13 + $0x58] sm:$0xff] }
 0x1e3   : > { %v3123_v11 = vpop.f32.mrb[6].mxu1  ;;  %v2978_v35 = vpop.f32.mrb[55].mxu0  ;;  %v4946_v63 = vadd.f32 %v3421_v57, %v2958_v6  ;;  %v4990_v57 = vld [vmem:[%s3657_s13 + $0x10] sm:$0xff] }
 0x1e4   : > { %v3425_v45 = vadd.f32 %v4924_v9, %v3123_v11  ;;  %v1592_v28 = vpop.f32.mrb[7].mxu1  ;;  %v2979_v34 = vadd.f32 %v2978_v35, %v2977_v30  ;;  %v4993_v30 = vld [vmem:[%s3657_s13 + $0x50] sm:$0xff]  ;;  %v4996_v11 = vld [vmem:[%s3657_s13 + $0x28] sm:$0xff] }
 0x1e5   : > { %v3429_v39 = vadd.f32 %v4922_v4, %v1592_v28  ;;  %v4999_v35 = vld [vmem:[%s3657_s13 + $0x68] sm:$0xff]  ;;  %v5008_v28 = vld [vmem:[%s3657_s13 + $0x38] sm:$0xff] }
 0x1e6   : > { %v2980_v7 = vpop.f32.mrb[56].mxu0  ;;  %v3439_v19 = vadd.f32 %v4930_v8, %v2979_v34  ;;  %v4951_v52 = vadd.f32 %v3425_v45, %v2967_v29  ;;  %v5005_v45 = vld [vmem:[%s3657_s13 + $0x60] sm:$0xff]  ;;  %v5011_v34 = vld [vmem:[%s3657_s13 + $0x78] sm:$0xff] }
 0x1e7   : > { %v2981_v2 = vpop.f32.mrb[57].mxu0  ;;  %v4953_v31 = vadd.f32 %v3429_v39, %v2964_v0  ;;  %v4965_v0 = vld [vmem:[%s5095_s2] ss:$0 sm:$0xff]  ;;  %v5014_v39 = vld [vmem:[%s3657_s13 + $0x30] sm:$0xff] }
 0x1e8   : > { %v2982_v32 = vadd.f32 %v2981_v2, %v2980_v7 }
 0x1ea   : > { %v2983_v27 = vpop.f32.mrb[58].mxu0  ;;  %v4956_v44 = vadd.f32 %v4932_v46, %v2982_v32 }
 0x1eb   : > { %v2984_v6 = vpop.f32.mrb[59].mxu0 }
 0x1ec   : > { %v2985_v55 = vadd.f32 %v2984_v6, %v2983_v27 }
 0x1ee   : > { %v2986_v9 = vpop.f32.mrb[60].mxu0  ;;  %v4958_v60 = vadd.f32 %v3444_v18, %v2985_v55 }
 0x1ef   : > { %v2987_v56 = vpop.f32.mrb[61].mxu0 }
 0x1f0   : > { %v2988_v4 = vadd.f32 %v2987_v56, %v2986_v9  ;;  %v5019_v9 = vld [vmem:[%s3657_s13 + $0x70] sm:$0xff] }
 0x1f2   : > { %v2989_v47 = vpop.f32.mrb[62].mxu0  ;;  %v4960_v15 = vadd.f32 %v3453_v62, %v2988_v4 }
 0x1f3   : > { %v2990_v8 = vpop.f32.mrb[63].mxu0 }
 0x1f4   : > { %v2991_v51 = vadd.f32 %v2990_v8, %v2989_v47 }
 0x1f6   : > { %v3170_v20 = vpop.f32.mrb[64].mxu0  ;;  %v4967_v46 = vadd.f32 %v3450_v58, %v2991_v51 }
 0x1f7   : > { %v3403_v26 = vadd.f32 %v3402_v54, %v3170_v20  ;;  %v3182_v29 = vpop.f32.mrb[8].mxu1  ;;  %v1917_v18 = vpop.f32.mrb[65].mxu0 }
 0x1f8   : > { %v3434_v62 = vadd.f32 %v3433_v48, %v3182_v29  ;;  %v3407_v40 = vadd.f32 %v3406_v16, %v1917_v18  ;;  %v1957_v41 = vpop.f32.mrb[9].mxu1  ;;  %v2107_v16 = vld [vmem:[%s3657_s13 + $0x8] sm:$0xff] }
 0x1f9   : > { %v2020_v49 = vmul.f32 %v3403_v26, %v4965_v0  ;;  %v3437_v36 = vadd.f32 %v3436_v23, %v1957_v41 }
 0x1fa   : > { %v2028_v58 = vmul.f32 %v3434_v62, %v4965_v0  ;;  %v2019_v10 = vmul.f32 %v3407_v40, %v4965_v0  ;;  %v3173_v43 = vpop.f32.mrb[66].mxu0 }
 0x1fb   : > { %v2043_v24 = vadd.f32 %v4972_v22, %v2020_v49  ;;  %v2027_v17 = vmul.f32 %v3437_v36, %v4965_v0  ;;  %v3411_v54 = vadd.f32 %v3410_v50, %v3173_v43  ;;  %v3185_v13 = vpop.f32.mrb[10].mxu1  ;;  %v1927_v5 = vpop.f32.mrb[67].mxu0 }
 0x1fc   : > { %v2051_v23 = vadd.f32 %v4972_v22, %v2028_v58  ;;  %v2042_v42 = vadd.f32 %v4972_v22, %v2019_v10  ;;  %v3440_v33 = vadd.f32 %v3439_v19, %v3185_v13  ;;  %v3415_v38 = vadd.f32 %v3414_v25, %v1927_v5  ;;  %v1967_v48 = vpop.f32.mrb[11].mxu1  ;;  %v5002_v25 = vld [vmem:[%s3657_s13 + $0x20] sm:$0xff] }
 0x1fd   : > { %vm2059_vm4 = vcmp.gt.f32.partialorder %v2043_v24, 0.0  ;;  %v2075_v50 = vmul.f32 0.1, %v2043_v24  ;;  %v2050_v61 = vadd.f32 %v4972_v22, %v2027_v17  ;;  %v2022_v59 = vmul.f32 %v3411_v54, %v4965_v0 }
 0x1fe   : > { %vm2067_vm5 = vcmp.gt.f32.partialorder %v2051_v23, 0.0  ;;  %v2083_v7 = vmul.f32 0.1, %v2051_v23  ;;  %vm2058_vm6 = vcmp.gt.f32.partialorder %v2042_v42, 0.0  ;;  %v2074_v19 = vmul.f32 0.1, %v2042_v42 }
 0x1ff   : > { %v2091_v2 = vsel %vm2059_vm4, %v2043_v24, %v2075_v50  ;;  %vm2066_vm7 = vcmp.gt.f32.partialorder %v2050_v61, 0.0  ;;  %v2082_v32 = vmul.f32 0.1, %v2050_v61  ;;  %v2045_v27 = vadd.f32 %v4972_v22, %v2022_v59  ;;  %v3176_v6 = vpop.f32.mrb[68].mxu0  ;;  %v3188_v55 = vpop.f32.mrb[12].mxu1 }
 0x200   : > { %v2123_v56 = vadd.f32 %v2107_v16, %v2091_v2  ;;  %v2099_v4 = vsel %vm2067_vm5, %v2051_v23, %v2083_v7  ;;  %v2090_v47 = vsel %vm2058_vm6, %v2042_v42, %v2074_v19  ;;  %v2030_v8 = vmul.f32 %v3440_v33, %v4965_v0  ;;  %v1937_v51 = vpop.f32.mrb[69].mxu0  ;;  %v1977_v20 = vpop.f32.mrb[13].mxu1 }
 0x201   : > { %v2131_v26 = vadd.f32 %v2115_v14, %v2099_v4  ;;  %v2122_v29 = vadd.f32 %v2106_v37, %v2090_v47  ;;  %v2098_v18 = vsel %vm2066_vm7, %v2050_v61, %v2082_v32  ;;  %vm2061_vm8 = vcmp.gt.f32.partialorder %v2045_v27, 0.0 }
 0x202   : > { %v2130_v62 = vadd.f32 %v2114_v1, %v2098_v18  ;;  %v2077_v40 = vmul.f32 0.1, %v2045_v27  ;;  %v2053_v41 = vadd.f32 %v4972_v22, %v2030_v8  ;;  %v2021_v49 = vmul.f32 %v3415_v38, %v4965_v0  ;;  %v3179_v36 = vpop.f32.mrb[70].mxu0  ;;  %2139 = vst [vmem:[%s3662_s16 + $0x8] sm:$0xff] %v2123_v56 }
 0x203   : > { %v3443_v58 = vadd.f32 %v4942_v3, %v1967_v48  ;;  %v3419_v10 = vadd.f32 %v4944_v53, %v3176_v6  ;;  %v3446_v43 = vadd.f32 %v4958_v60, %v3188_v55  ;;  %v3423_v24 = vadd.f32 %v4946_v63, %v1937_v51  ;;  %v3191_v17 = vpop.f32.mrb[14].mxu1  ;;  %v1947_v54 = vpop.f32.mrb[71].mxu0  ;;  %2138 = vst [vmem:[%s3662_s16] sm:$0xff] %v2122_v29 }
 0x204   : > { %2147 = vst [vmem:[%s3662_s16 + $0x48] sm:$0xff] %v2131_v26  ;;  %v2093_v13 = vsel %vm2061_vm8, %v2045_v27, %v2077_v40  ;;  %vm2069_vm9 = vcmp.gt.f32.partialorder %v2053_v41, 0.0  ;;  %v2085_v5 = vmul.f32 0.1, %v2053_v41  ;;  %v2044_v16 = vadd.f32 %v4972_v22, %v2021_v49  ;;  %v1987_v23 = vpop.f32.mrb[15].mxu1  ;;  %2146 = vst [vmem:[%s3662_s16 + $0x40] sm:$0xff] %v2130_v62 }
 0x205   : > { %v2125_v14 = vadd.f32 %v2109_v12, %v2093_v13  ;;  %v2029_v3 = vmul.f32 %v3443_v58, %v4965_v0  ;;  %v2024_v53 = vmul.f32 %v3419_v10, %v4965_v0  ;;  %v2032_v60 = vmul.f32 %v3446_v43, %v4965_v0 }
 0x206   : > { %v2101_v63 = vsel %vm2069_vm9, %v2053_v41, %v2085_v5  ;;  %vm2060_vm10 = vcmp.gt.f32.partialorder %v2044_v16, 0.0  ;;  %v2076_v42 = vmul.f32 0.1, %v2044_v16  ;;  %v2023_v37 = vmul.f32 %v3423_v24, %v4965_v0 }
 0x207   : > { %v2133_v33 = vadd.f32 %v2117_v21, %v2101_v63  ;;  %v2052_v38 = vadd.f32 %v4972_v22, %v2029_v3  ;;  %v2047_v48 = vadd.f32 %v4972_v22, %v2024_v53  ;;  %v2055_v50 = vadd.f32 %v4972_v22, %v2032_v60  ;;  %2141 = vst [vmem:[%s3662_s16 + $0x18] sm:$0xff] %v2125_v14 }
 0x208   : > { %v2092_v61 = vsel %vm2060_vm10, %v2044_v16, %v2076_v42  ;;  %v2046_v1 = vadd.f32 %v4972_v22, %v2023_v37  ;;  %v3449_v59 = vadd.f32 %v4956_v44, %v1977_v20  ;;  %v3427_v12 = vadd.f32 %v4951_v52, %v3179_v36 }
 0x209   : > { %v2124_v7 = vadd.f32 %v4990_v57, %v2092_v61  ;;  %vm2068_vm11 = vcmp.gt.f32.partialorder %v2052_v38, 0.0  ;;  %v2084_v19 = vmul.f32 0.1, %v2052_v38  ;;  %vm2063_vm12 = vcmp.gt.f32.partialorder %v2047_v48, 0.0  ;;  %2149 = vst [vmem:[%s3662_s16 + $0x58] sm:$0xff] %v2133_v33 }
 0x20a   : > { %v2079_v21 = vmul.f32 0.1, %v2047_v48  ;;  %vm2071_vm13 = vcmp.gt.f32.partialorder %v2055_v50, 0.0  ;;  %v2087_v2 = vmul.f32 0.1, %v2055_v50  ;;  %vm2062_vm14 = vcmp.gt.f32.partialorder %v2046_v1, 0.0 }
 0x20b   : > { %v2100_v32 = vsel %vm2068_vm11, %v2052_v38, %v2084_v19  ;;  %v2078_v27 = vmul.f32 0.1, %v2046_v1  ;;  %v2031_v6 = vmul.f32 %v3449_v59, %v4965_v0  ;;  %v2026_v55 = vmul.f32 %v3427_v12, %v4965_v0  ;;  %2140 = vst [vmem:[%s3662_s16 + $0x10] sm:$0xff] %v2124_v7 }
 0x20c   : > { %v2132_v52 = vadd.f32 %v4993_v30, %v2100_v32  ;;  %v2095_v44 = vsel %vm2063_vm12, %v2047_v48, %v2079_v21  ;;  %v2103_v57 = vsel %vm2071_vm13, %v2055_v50, %v2087_v2  ;;  %v3452_v56 = vadd.f32 %v4967_v46, %v3191_v17 }
 0x20d   : > { %v2127_v4 = vadd.f32 %v4996_v11, %v2095_v44  ;;  %v2135_v47 = vadd.f32 %v4999_v35, %v2103_v57  ;;  %v2094_v8 = vsel %vm2062_vm14, %v2046_v1, %v2078_v27  ;;  %v2054_v51 = vadd.f32 %v4972_v22, %v2031_v6 }
 0x20e   : > { %v2126_v20 = vadd.f32 %v5002_v25, %v2094_v8  ;;  %v2049_v26 = vadd.f32 %v4972_v22, %v2026_v55  ;;  %v2034_v30 = vmul.f32 %v3452_v56, %v4965_v0  ;;  %v3431_v29 = vadd.f32 %v4953_v31, %v1947_v54  ;;  %2148 = vst [vmem:[%s3662_s16 + $0x50] sm:$0xff] %v2132_v52 }
 0x20f   : > { %vm2070_vm15 = vcmp.gt.f32.partialorder %v2054_v51, 0.0  ;;  %v2086_v18 = vmul.f32 0.1, %v2054_v51  ;;  %v3455_v46 = vadd.f32 %v4960_v15, %v1987_v23  ;;  %2143 = vst [vmem:[%s3662_s16 + $0x28] sm:$0xff] %v2127_v4  ;;  %2151 = vst [vmem:[%s3662_s16 + $0x68] sm:$0xff] %v2135_v47 }
 0x210   : > { %vm2065_vm0 = vcmp.gt.f32.partialorder %v2049_v26, 0.0  ;;  %v2081_v11 = vmul.f32 0.1, %v2049_v26  ;;  %v2057_v35 = vadd.f32 %v4972_v22, %v2034_v30  ;;  %v2025_v25 = vmul.f32 %v3431_v29, %v4965_v0  ;;  %2142 = vst [vmem:[%s3662_s16 + $0x20] sm:$0xff] %v2126_v20 }
 0x211   : > { %v2102_v62 = vsel %vm2070_vm15, %v2054_v51, %v2086_v18  ;;  %v2033_v40 = vmul.f32 %v3455_v46, %v4965_v0 }
 0x212   : > { %v2134_v31 = vadd.f32 %v5005_v45, %v2102_v62  ;;  %v2097_v41 = vsel %vm2065_vm0, %v2049_v26, %v2081_v11  ;;  %vm2073_vm1 = vcmp.gt.f32.partialorder %v2057_v35, 0.0  ;;  %v2089_v15 = vmul.f32 0.1, %v2057_v35 }
 0x213   : > { %v2129_v49 = vadd.f32 %v5008_v28, %v2097_v41  ;;  %v2048_v36 = vadd.f32 %v4972_v22, %v2025_v25  ;;  %v2056_v58 = vadd.f32 %v4972_v22, %v2033_v40 }
 0x214   : > { %v2105_v10 = vsel %vm2073_vm1, %v2057_v35, %v2089_v15  ;;  %2150 = vst [vmem:[%s3662_s16 + $0x60] sm:$0xff] %v2134_v31 }
 0x215   : > { %v2137_v43 = vadd.f32 %v5011_v34, %v2105_v10  ;;  %vm2064_vm2 = vcmp.gt.f32.partialorder %v2048_v36, 0.0  ;;  %v2080_v0 = vmul.f32 0.1, %v2048_v36  ;;  %vm2072_vm3 = vcmp.gt.f32.partialorder %v2056_v58, 0.0  ;;  %2145 = vst [vmem:[%s3662_s16 + $0x38] sm:$0xff] %v2129_v49 }
 0x216   : > { %v2088_v45 = vmul.f32 0.1, %v2056_v58 }
 0x217   : > { %v2096_v24 = vsel %vm2064_vm2, %v2048_v36, %v2080_v0  ;;  %2153 = vst [vmem:[%s3662_s16 + $0x78] sm:$0xff] %v2137_v43 }
 0x218   : > { %v2128_v17 = vadd.f32 %v5014_v39, %v2096_v24  ;;  %v2104_v28 = vsel %vm2072_vm3, %v2056_v58, %v2088_v45 }
 0x219   : > { %v2136_v54 = vadd.f32 %v5019_v9, %v2104_v28 }
 0x21a   : > { %2144 = vst [vmem:[%s3662_s16 + $0x30] sm:$0xff] %v2128_v17 }
 0x21b   : > { %2152 = vst [vmem:[%s3662_s16 + $0x70] sm:$0xff] %v2136_v54 }
 0x21c PF: > { %s15_s22 = sadd.s32 1, %s3576_s22   ;;  %s5159_s18 = smov %s3568_s20 }
 0x21d   : > { %p12_p4 = scmp.ge.s32.totalorder %s15_s22, 6   ;;  %s5160_s19 = smov %s3572_s21 }
 0x21e   : > { %s5161_s20 = smov %s5164_s23  ;;  %s5162_s21 = smov %s5168_s24 }
 0x21f   :  { %14 = sbr.rel (!%p12_p4) target bundleno = 3 (0x3), region = 388 }
 0x226   :  { %2186 = vsyncmov [#allocation3] }
 0x229   :  { %s2187_s13 = vpop.sfrf %2186 }
 0x22a   :  { %p2677_p5 = scmp.ne.s32.totalorder %s2187_s13, 0 }
 0x22c   :  { %2191 = shalt.err (%p2677_p5)  }
 0x22d   :  { %2193 = vsyncmov [#allocation3 + $0x1] }
 0x230   :  { %s2194_s16 = vpop.sfrf %2193 }
 0x231   :  { %p2678_p6 = scmp.ne.s32.totalorder %s2194_s16, 0 }
 0x233   :  { %2198 = shalt.err (%p2678_p6)  }
 0x234   :  { %2200 = vsyncmov [#allocation3 + $0x2] }
 0x237   :  { %s2201_s12 = vpop.sfrf %2200 }
 0x238   :  { %p2679_p7 = scmp.ne.s32.totalorder %s2201_s12, 0 }
 0x23a   :  { %2205 = shalt.err (%p2679_p7)  }
 0x23b   :  { %2207 = vsyncmov [#allocation3 + $0x3] }
 0x23e   :  { %s2208_s15 = vpop.sfrf %2207 }
 0x23f   :  { %p2680_p8 = scmp.ne.s32.totalorder %s2208_s15, 0 }
 0x241   :  { %2212 = shalt.err (%p2680_p8)  }
 0x242   :  { %2214 = vsyncmov [#allocation3 + $0x4] }
 0x245   :  { %s2215_s23 = vpop.sfrf %2214 }
 0x246   :  { %p2681_p9 = scmp.ne.s32.totalorder %s2215_s23, 0 }
 0x248   :  { %2219 = shalt.err (%p2681_p9)  }
 0x249   :  { %2221 = vsyncmov [#allocation3 + $0x5] }
 0x24c   :  { %s2222_s0 = vpop.sfrf %2221 }
 0x24d   :  { %p2682_p10 = scmp.ne.s32.totalorder %s2222_s0, 0 }
 0x24f   :  { %2226 = shalt.err (%p2682_p10)  }

// kernel: residual_block_forward.10
= control target key start
LH: loop header
LB: loop body
LE: loop exit
PB: predicated region body
PF: predicated region fallthrough
CT: control target
= control target key end

     0   :  { %s3332_s9 = smov 0   ;;  %s3334_s10 = smov 0   ;;  %s4683_s0 = inlined_call_operand.vmem [shape: f32[2,16,16,128], index: 0, kind: input, shape index: {}]   ;;  %s4684_s1 = inlined_call_operand.vmem [shape: f32[3,384,128], index: 1, kind: input, shape index: {}]   ;;  %s4685_s2 = inlined_call_operand.vmem [shape: f32[2,2,128], index: 2, kind: output, shape index: {}]  }
   0x1   :  { %s3336_s11 = smov 0   ;;  %s3338_s12 = smov 0  }
   0x2   :  { %s3340_s13 = smov 0  }
   0x3 LB: > { %s21_s14 = sadd.s32 1, %s3304_s11  ;;  %s24_s15 = sadd.s32 1, %s3308_s12  ;;  %s3312_s13 = sphi %s3340_s13, %s12_s13   ;;  %s3308_s12 = sphi %s3338_s12, %s4749_s12   ;;  %s3304_s11 = sphi %s3336_s11, %s4748_s11   ;;  %s3300_s10 = sphi %s3334_s10, %s4747_s10   ;;  %s3296_s9 = sphi %s3332_s9, %s4746_s9  }
   0x4   : > { %p22_p0 = scmp.ge.s32.totalorder %s21_s14, 2  ;;  %p2164_p1 = scmp.ge.s32.totalorder %s3312_s13, 1 }
   0x5   : > { %p90_p2 = scmp.lt.s32.totalorder %s3312_s13, 5 }
   0x6   : > { %s4751_s14 = smov (%p22_p0, %s21_s14), 0  ;;  %s4753_s15 = smov (!%p22_p0, %s24_s15), %s3308_s12 }
   0x7   : > { %p91_p3 = pnand %p2164_p1, %p90_p2  ;;  %p26_p4 = scmp.ge.s32.totalorder %s4753_s15, 2 }
   0x9   : > { %s4755_s15 = smov (%p26_p4, %s4753_s15), 0  ;;  %94 = sbr.rel (%p91_p3) target bundleno = 561 (0x231), region = 24 }
  0x10   : > { %p104_p5 = scmp.lt.s32.totalorder %s3300_s10, 1  ;;  %p108_p6 = scmp.lt.s32.totalorder %s3296_s9, 0 }
  0x11   : > { %s109_s16 = ssub.s32 0, %s3296_s9  ;;  %p2167_p7 = scmp.ne.s32.totalorder %s3296_s9, 0 }
  0x12   : > { %s105_s17 = scalar_select %p104_p5, %s3300_s10, 1 }
  0x13   : > { %s2166_s18 = smin.u32 %s3296_s9, %s109_s16  ;;  %117 = sbr.rel (%p2167_p7) target bundleno = 55 (0x37), region = 28 }
  0x14   : > { %s2165_s19 = sshll.u32 %s105_s17, 1  ;;  %s111_s20 = sand.u32 1, %s2166_s18  }
  0x15   : > { %s3374_s23 = scalar_lea.vmem %s4685_s2, %s2165_s19  ;;  %s112_s24 = ssub.s32 0, %s111_s20 }
  0x16   : > { %s4757_s24 = smov (!%p108_p6, %s112_s24), %s111_s20  ;;  %s2168_s25 = sshll.u32 (!%p2167_p7), %s3296_s9, 3 }
  0x17   : > { %s2418_s26 = sshll.u32 (!%p2167_p7), %s3296_s9, 7  ;;  %s2170_s27 = sshll.u32 (!%p2167_p7), %s3300_s10, 8 }
  0x18   : > { %s2171_s28 = smul.u32 (!%p2167_p7), 160, %s4757_s24  ;;  %s123_s29 = sadd.s32 (!%p2167_p7), %s2418_s26, %s2170_s27 }
  0x19   : > { %s127_s30 = smul.u32 (!%p2167_p7), 3, %s4757_s24  ;;  %s3391_s5 = scalar_lea.vmem (!%p2167_p7), %s4683_s0, %s123_s29 }
  0x1a   : > { %v161_v0 = vld [vmem:[%s3391_s5] sm:$0xff]  ;;  %v163_v1 = vld [vmem:[%s3391_s5 + $0x8] sm:$0xff]  ;;  %v165_v2 = vld [vmem:[%s3391_s5 + $0x10] sm:$0xff]  ;;  %s3396_s6 = scalar_lea.vmem [#allocation2], %s2171_s28 }
  0x1b   : > { %2172 = vst [vmem:[%s3396_s6 + $0x10] sm:$0xff] %v161_v0  ;;  %2173 = vst [vmem:[%s3396_s6 + $0x18] sm:$0xff] %v163_v1  ;;  %v167_v3 = vld [vmem:[%s3391_s5 + $0x18] sm:$0xff]  ;;  %v169_v4 = vld [vmem:[%s3391_s5 + $0x20] sm:$0xff]  ;;  %s128_s7 = scalar_lea.sflag [#allocation3], %s127_s30 }
  0x1c   : > { %2174 = vst [vmem:[%s3396_s6 + $0x20] sm:$0xff] %v165_v2  ;;  %v171_v5 = vld [vmem:[%s3391_s5 + $0x28] sm:$0xff]  ;;  %2175 = vst [vmem:[%s3396_s6 + $0x28] sm:$0xff] %v167_v3  ;;  %v173_v6 = vld [vmem:[%s3391_s5 + $0x30] sm:$0xff] }
  0x1d   : > { %2176 = vst [vmem:[%s3396_s6 + $0x30] sm:$0xff] %v169_v4  ;;  %2177 = vst [vmem:[%s3396_s6 + $0x38] sm:$0xff] %v171_v5  ;;  %v175_v7 = vld [vmem:[%s3391_s5 + $0x38] sm:$0xff]  ;;  %v177_v8 = vld [vmem:[%s3391_s5 + $0x40] sm:$0xff] }
  0x1e   : > { %2178 = vst [vmem:[%s3396_s6 + $0x40] sm:$0xff] %v173_v6  ;;  %2179 = vst [vmem:[%s3396_s6 + $0x48] sm:$0xff] %v175_v7  ;;  %v179_v9 = vld [vmem:[%s3391_s5 + $0x48] sm:$0xff]  ;;  %v181_v10 = vld [vmem:[%s3391_s5 + $0x50] sm:$0xff] }
  0x1f   : > { %2180 = vst [vmem:[%s3396_s6 + $0x50] sm:$0xff] %v177_v8  ;;  %v183_v11 = vld [vmem:[%s3391_s5 + $0x58] sm:$0xff]  ;;  %2181 = vst [vmem:[%s3396_s6 + $0x58] sm:$0xff] %v179_v9  ;;  %v185_v12 = vld [vmem:[%s3391_s5 + $0x60] sm:$0xff] }
  0x20   : > { %2182 = vst [vmem:[%s3396_s6 + $0x60] sm:$0xff] %v181_v10  ;;  %2183 = vst [vmem:[%s3396_s6 + $0x68] sm:$0xff] %v183_v11  ;;  %v187_v13 = vld [vmem:[%s3391_s5 + $0x68] sm:$0xff]  ;;  %v189_v14 = vld [vmem:[%s3391_s5 + $0x70] sm:$0xff] }
  0x21   : > { %2184 = vst [vmem:[%s3396_s6 + $0x70] sm:$0xff] %v185_v12  ;;  %2185 = vst [vmem:[%s3396_s6 + $0x78] sm:$0xff] %v187_v13  ;;  %v191_v15 = vld [vmem:[%s3391_s5 + $0x78] sm:$0xff] }
  0x22   : > { %2186 = vst [vmem:[%s3396_s6 + $0x80] sm:$0xff] %v189_v14  ;;  %2187 = vst [vmem:[%s3396_s6 + $0x88] sm:$0xff] %v191_v15 }
  0x23   : > { %200 = vsyncadd %s128_s7, 2048  ;;  %p2189_p8 = scmp.le.s32.totalorder %s3296_s9, 0 }
  0x24   : > { %s2190_s8 = sadd.s32 (!%p2189_p8), 4294967295, %s2168_s25  ;;  %s2027_s16 = scalar_lea.sflag (!%p2189_p8), %s128_s7, 1 [#allocation3] }
  0x25   : > { %204 = sbr.rel (%p2189_p8) target bundleno = 45 (0x2d), region = 66  ;;  %s2191_s17 = sshll.u32 (!%p2189_p8), %s2190_s8, 4 }
  0x26   : > { %s207_s18 = sadd.s32 (!%p2189_p8), %s2191_s17, %s2170_s27 }
  0x27   : > { %s208_s21 = scalar_lea.vmem (!%p2189_p8), %s4683_s0, %s207_s18 }
  0x28   : > { %v245_v16 = vld [vmem:[%s208_s21] sm:$0xff] (!%p2189_p8)  ;;  %v247_v17 = vld [vmem:[%s208_s21 + $0x8] sm:$0xff] (!%p2189_p8) }
  0x29   : > { %246 = vst [vmem:[%s3396_s6] sm:$0xff] (!%p2189_p8), %v245_v16  ;;  %248 = vst [vmem:[%s3396_s6 + $0x8] sm:$0xff] (!%p2189_p8), %v247_v17 }
  0x2c   : > { %256 = vsyncadd %s2027_s16, 256 }
  0x2d PF: > { %p2193_p9 = scmp.ge.s32.totalorder %s3296_s9, 1 }
  0x2e   : > { %s2040_s22 = scalar_lea.sflag (!%p2193_p9), %s128_s7, 2 [#allocation3]  ;;  %v2198_v18 = vld [vmem:[%s3391_s5 + $0x80] sm:$0xff] (!%p2193_p9)  ;;  %v2200_v19 = vld [vmem:[%s3391_s5 + $0x88] sm:$0xff] (!%p2193_p9) }
  0x2f   : > { %260 = sbr.rel (%p2193_p9) target bundleno = 55 (0x37), region = 104  ;;  %2199 = vst [vmem:[%s3396_s6 + $0x90] sm:$0xff] (!%p2193_p9), %v2198_v18  ;;  %2201 = vst [vmem:[%s3396_s6 + $0x98] sm:$0xff] (!%p2193_p9), %v2200_v19 }
  0x36   : > { %313 = vsyncadd %s2040_s22, 256 }
  0x37 PF: > { %s314_s25 = smul.u32 3, %s4757_s24 }
  0x39   : > { %s315_s26 = scalar_lea.sflag [#allocation3], %s314_s25 }
  0x3a   : > { %3284 = dma.done.wait %s315_s26, 2048 }
  0x3b   : > { %3285 = vsyncadd %s315_s26, 4294965248  ;;  %p3219_p10 = scmp.gt.s32.totalorder %s3296_s9, 0  ;;  %s2045_s27 = scalar_lea.sflag %s315_s26, 1 [#allocation3] }
  0x3d   : > { %3287 = dma.done.wait (%p3219_p10), %s2045_s27, 256 }
  0x3e   : > { %3289 = vsyncadd (%p3219_p10), %s2045_s27, 4294967040  ;;  %p3220_p11 = scmp.lt.s32.totalorder %s3296_s9, 1  ;;  %s2048_s28 = scalar_lea.sflag %s315_s26, 2 [#allocation3] }
  0x40   : > { %3291 = dma.done.wait (%p3220_p11), %s2048_s28, 256 }
  0x41   : > { %3293 = vsyncadd (%p3220_p11), %s2048_s28, 4294967040  ;;  %342 = sbr.rel (%p2167_p7) target bundleno = 72 (0x48), region = 150 }
  0x42   : > { %v3314_v20 = vmov (!%p2167_p7), 0.0  }
  0x43   : > { %343 = vst [vmem:[#allocation2] sm:$0xff] (!%p2167_p7), %v3314_v20  ;;  %344 = vst [vmem:[#allocation2 + $0x8] sm:$0xff] (!%p2167_p7), %v3314_v20 }
  0x48 PF: > { %p2207_p12 = scmp.ne.s32.totalorder %s3296_s9, 1 }
  0x49   : > { %v3315_v21 = vmov (!%p2207_p12), 0.0  }
  0x4a   : > { %348 = sbr.rel (%p2207_p12) target bundleno = 81 (0x51), region = 154  ;;  %350 = vst [vmem:[#allocation2 + $0x130] sm:$0xff] (!%p2207_p12), %v3315_v21  ;;  %351 = vst [vmem:[#allocation2 + $0x138] sm:$0xff] (!%p2207_p12), %v3315_v21 }
  0x51 PF: > { %s3451_s29 = sadd.s32 1, %s3296_s9 }
  0x52   : > { %p2208_p13 = scmp.ge.s32.totalorder %s3451_s29, 2 }
  0x53   : > { %p357_p0 = scmp.lt.s32.totalorder (!%p2208_p13), %s3451_s29, 0  ;;  %s358_s30 = ssub.s32 (!%p2208_p13), 0, %s3451_s29 }
  0x54   : > { %356 = sbr.rel (%p2208_p13) target bundleno = 123 (0x7b), region = 158  ;;  %s2209_s3 = smin.u32 (!%p2208_p13), %s358_s30, %s3451_s29 }
  0x55   : > { %s2420_s4 = sshll.u32 (!%p2208_p13), %s3296_s9, 3  ;;  %s360_s5 = sand.u32 (!%p2208_p13), 1, %s2209_s3  }
  0x56   : > { %s3458_s6 = sadd.s32 (!%p2208_p13), 8, %s2420_s4  ;;  %s361_s7 = ssub.s32 (!%p2208_p13), 0, %s360_s5 }
  0x57   : > { %s2211_s8 = sshll.u32 (!%p2208_p13), %s3300_s10, 8  ;;  %s2212_s16 = sshll.u32 (!%p2208_p13), %s3296_s9, 7 }
  0x58   : > { %s2051_s17 = sadd.s32 (!%p2208_p13), %s2212_s16, %s2211_s8 }
  0x59   : > { %s3470_s21 = scalar_lea.vmem (!%p2208_p13), %s4683_s0, %s2051_s17 }
  0x5a   : > { %v2215_v22 = vld [vmem:[%s3470_s21 + $0x80] sm:$0xff] (!%p2208_p13)  ;;  %v2217_v23 = vld [vmem:[%s3470_s21 + $0x88] sm:$0xff] (!%p2208_p13)  ;;  %v2219_v24 = vld [vmem:[%s3470_s21 + $0x90] sm:$0xff] (!%p2208_p13) }
  0x5b   : > { %s4759_s7 = smov (!%p357_p0, %s361_s7), %s360_s5  ;;  %v2221_v25 = vld [vmem:[%s3470_s21 + $0x98] sm:$0xff]  ;;  %v2223_v26 = vld [vmem:[%s3470_s21 + $0xa0] sm:$0xff]  ;;  %v2225_v27 = vld [vmem:[%s3470_s21 + $0xa8] sm:$0xff] }
  0x5c   : > { %s2214_s18 = smul.u32 160, %s4759_s7  ;;  %v2227_v28 = vld [vmem:[%s3470_s21 + $0xb0] sm:$0xff]  ;;  %v2229_v29 = vld [vmem:[%s3470_s21 + $0xb8] sm:$0xff]  ;;  %v2231_v30 = vld [vmem:[%s3470_s21 + $0xc0] sm:$0xff] }
  0x5d   : > { %s372_s22 = smul.u32 3, %s4759_s7  ;;  %v2233_v31 = vld [vmem:[%s3470_s21 + $0xc8] sm:$0xff]  ;;  %v2235_v32 = vld [vmem:[%s3470_s21 + $0xd0] sm:$0xff]  ;;  %v2237_v33 = vld [vmem:[%s3470_s21 + $0xd8] sm:$0xff] }
  0x5e   : > { %s3476_s25 = scalar_lea.vmem [#allocation2], %s2214_s18  ;;  %v2239_v34 = vld [vmem:[%s3470_s21 + $0xe0] sm:$0xff]  ;;  %v2241_v35 = vld [vmem:[%s3470_s21 + $0xe8] sm:$0xff]  ;;  %v2243_v36 = vld [vmem:[%s3470_s21 + $0xf0] sm:$0xff] }
  0x5f   : > { %2216 = vst [vmem:[%s3476_s25 + $0x10] sm:$0xff] %v2215_v22  ;;  %2218 = vst [vmem:[%s3476_s25 + $0x18] sm:$0xff] %v2217_v23  ;;  %v2245_v37 = vld [vmem:[%s3470_s21 + $0xf8] sm:$0xff]  ;;  %s373_s26 = scalar_lea.sflag [#allocation3], %s372_s22 }
  0x60   : > { %2220 = vst [vmem:[%s3476_s25 + $0x20] sm:$0xff] %v2219_v24  ;;  %2222 = vst [vmem:[%s3476_s25 + $0x28] sm:$0xff] %v2221_v25 }
  0x61   : > { %2224 = vst [vmem:[%s3476_s25 + $0x30] sm:$0xff] %v2223_v26  ;;  %2226 = vst [vmem:[%s3476_s25 + $0x38] sm:$0xff] %v2225_v27 }
  0x62   : > { %2228 = vst [vmem:[%s3476_s25 + $0x40] sm:$0xff] %v2227_v28  ;;  %2230 = vst [vmem:[%s3476_s25 + $0x48] sm:$0xff] %v2229_v29 }
  0x63   : > { %2232 = vst [vmem:[%s3476_s25 + $0x50] sm:$0xff] %v2231_v30  ;;  %2234 = vst [vmem:[%s3476_s25 + $0x58] sm:$0xff] %v2233_v31 }
  0x64   : > { %2236 = vst [vmem:[%s3476_s25 + $0x60] sm:$0xff] %v2235_v32  ;;  %2238 = vst [vmem:[%s3476_s25 + $0x68] sm:$0xff] %v2237_v33 }
  0x65   : > { %2240 = vst [vmem:[%s3476_s25 + $0x70] sm:$0xff] %v2239_v34  ;;  %2242 = vst [vmem:[%s3476_s25 + $0x78] sm:$0xff] %v2241_v35 }
  0x66   : > { %2244 = vst [vmem:[%s3476_s25 + $0x80] sm:$0xff] %v2243_v36  ;;  %2246 = vst [vmem:[%s3476_s25 + $0x88] sm:$0xff] %v2245_v37 }
  0x67   : > { %445 = vsyncadd %s373_s26, 2048  ;;  %p2249_p1 = scmp.le.s32.totalorder %s3451_s29, 0 }
  0x68   : > { %s2250_s27 = sadd.s32 (!%p2249_p1), 4294967295, %s3458_s6  ;;  %s2068_s28 = scalar_lea.sflag (!%p2249_p1), %s373_s26, 1 [#allocation3] }
  0x69   : > { %449 = sbr.rel (%p2249_p1) target bundleno = 113 (0x71), region = 196  ;;  %s2251_s30 = sshll.u32 (!%p2249_p1), %s2250_s27, 4 }
  0x6a   : > { %s452_s3 = sadd.s32 (!%p2249_p1), %s2251_s30, %s2211_s8 }
  0x6b   : > { %s453_s16 = scalar_lea.vmem (!%p2249_p1), %s4683_s0, %s452_s3 }
  0x6c   : > { %v490_v38 = vld [vmem:[%s453_s16] sm:$0xff] (!%p2249_p1)  ;;  %v492_v39 = vld [vmem:[%s453_s16 + $0x8] sm:$0xff] (!%p2249_p1) }
  0x6d   : > { %491 = vst [vmem:[%s3476_s25] sm:$0xff] (!%p2249_p1), %v490_v38  ;;  %493 = vst [vmem:[%s3476_s25 + $0x8] sm:$0xff] (!%p2249_p1), %v492_v39 }
  0x70   : > { %501 = vsyncadd %s2068_s28, 256 }
  0x71 PF: > { %p2253_p2 = scmp.ge.s32.totalorder %s3451_s29, 1 }
  0x72   : > { %s2081_s7 = scalar_lea.sflag (!%p2253_p2), %s373_s26, 2 [#allocation3]  ;;  %v2258_v40 = vld [vmem:[%s3470_s21 + $0x100] sm:$0xff] (!%p2253_p2)  ;;  %v2260_v41 = vld [vmem:[%s3470_s21 + $0x108] sm:$0xff] (!%p2253_p2) }
  0x73   : > { %505 = sbr.rel (%p2253_p2) target bundleno = 123 (0x7b), region = 234  ;;  %2259 = vst [vmem:[%s3476_s25 + $0x90] sm:$0xff] (!%p2253_p2), %v2258_v40  ;;  %2261 = vst [vmem:[%s3476_s25 + $0x98] sm:$0xff] (!%p2253_p2), %v2260_v41 }
  0x7a   : > { %558 = vsyncadd %s2081_s7, 256 }
  0x7b PF: > { %v2281_v42 = vld [vmem:[%s4684_s1 + $0x200] sm:$0xff]  ;;  %v2282_v43 = vld [vmem:[%s4684_s1 + $0x208] sm:$0xff]  ;;  %v2283_v51 = vld [vmem:[%s4684_s1 + $0x210] sm:$0xff]  ;;  %s2264_s21 = smul.u32 160, %s4757_s24  ;;  %vm602_vm0 = vcmask 1040384   ;;  %vm699_vm1 = vcmask 1046528  }
  0x7c   : > { %v2297_v44 = vld [vmem:[%s4684_s1 + $0x280] sm:$0xff]  ;;  %v2927_v45 = vpack.c.bf16 %v2282_v43, %v2281_v42  ;;  %v2298_v46 = vld [vmem:[%s4684_s1 + $0x288] sm:$0xff]  ;;  %v2284_v52 = vld [vmem:[%s4684_s1 + $0x218] sm:$0xff]  ;;  %vm756_vm2 = vcmask 1045504  }
  0x7d   : > { %v2265_v47 = vld [vmem:[%s4684_s1 + $0x180] sm:$0xff]  ;;  %v2266_v48 = vld [vmem:[%s4684_s1 + $0x188] sm:$0xff]  ;;  %v2959_v49 = vpack.c.bf16 %v2298_v46, %v2297_v44  ;;  %v2299_v53 = vld [vmem:[%s4684_s1 + $0x290] sm:$0xff]  ;;  %v2931_v54 = vpack.c.bf16 %v2284_v52, %v2283_v51  ;;  %s3632_s28 = scalar_lea.vmem [#allocation2], %s2264_s21 }
  0x7e   : > { %v2929_v50 = vpack.c.bf16 %v2266_v48, %v2265_v47  ;;  %2928 = vmatprep.subr.bf16.mxu0 %v2927_v45  ;;  %v2300_v55 = vld [vmem:[%s4684_s1 + $0x298] sm:$0xff]  ;;  %v2267_v56 = vld [vmem:[%s4684_s1 + $0x190] sm:$0xff]  ;;  %v2285_v60 = vld [vmem:[%s4684_s1 + $0x220] sm:$0xff] }
  0x7f   : > { %v2268_v57 = vld [vmem:[%s4684_s1 + $0x198] sm:$0xff]  ;;  %2960 = vmatprep.subr.bf16.mxu1 %v2959_v49  ;;  %v2963_v58 = vpack.c.bf16 %v2300_v55, %v2299_v53  ;;  %v2286_v61 = vld [vmem:[%s4684_s1 + $0x228] sm:$0xff]  ;;  %v2301_v62 = vld [vmem:[%s4684_s1 + $0x2a0] sm:$0xff] }
  0x80   : > { %2930 = vmatpush3.bf16.msra.mxu0 %v2929_v50  ;;  %v2933_v59 = vpack.c.bf16 %v2268_v57, %v2267_v56  ;;  %2962 = vmatpush3.bf16.msra.mxu1 %v2959_v49  ;;  %v2935_v63 = vpack.c.bf16 %v2286_v61, %v2285_v60  ;;  %v2302_v0 = vld [vmem:[%s4684_s1 + $0x2a8] sm:$0xff]  ;;  %v2269_v1 = vld [vmem:[%s4684_s1 + $0x1a0] sm:$0xff]  ;;  %v2287_v4 = vld [vmem:[%s4684_s1 + $0x230] sm:$0xff] }
  0x81   : > { %2932 = vmatprep.subr.bf16.mxu0 %v2931_v54  ;;  %v2270_v2 = vld [vmem:[%s4684_s1 + $0x1a8] sm:$0xff]  ;;  %2964 = vmatprep.subr.bf16.mxu1 %v2963_v58  ;;  %v2967_v3 = vpack.c.bf16 %v2302_v0, %v2301_v62  ;;  %v2288_v5 = vld [vmem:[%s4684_s1 + $0x238] sm:$0xff]  ;;  %v2303_v6 = vld [vmem:[%s4684_s1 + $0x2b0] sm:$0xff] }
  0x82   : > { %v2304_v7 = vld [vmem:[%s4684_s1 + $0x2b8] sm:$0xff]  ;;  %v2937_v8 = vpack.c.bf16 %v2270_v2, %v2269_v1  ;;  %v2939_v9 = vpack.c.bf16 %v2288_v5, %v2287_v4  ;;  %v2271_v10 = vld [vmem:[%s4684_s1 + $0x1b0] sm:$0xff]  ;;  %v2289_v13 = vld [vmem:[%s4684_s1 + $0x240] sm:$0xff] }
  0x83   : > { %v2272_v11 = vld [vmem:[%s4684_s1 + $0x1b8] sm:$0xff]  ;;  %v2971_v12 = vpack.c.bf16 %v2304_v7, %v2303_v6  ;;  %v2290_v14 = vld [vmem:[%s4684_s1 + $0x248] sm:$0xff]  ;;  %v2305_v15 = vld [vmem:[%s4684_s1 + $0x2c0] sm:$0xff] }
  0x84   : > { %2934 = vmatpush3.bf16.msra.mxu0 %v2933_v59  ;;  %2966 = vmatpush3.bf16.msra.mxu1 %v2963_v58  ;;  %v2306_v16 = vld [vmem:[%s4684_s1 + $0x2c8] sm:$0xff]  ;;  %v2941_v17 = vpack.c.bf16 %v2272_v11, %v2271_v10  ;;  %v2943_v18 = vpack.c.bf16 %v2290_v14, %v2289_v13  ;;  %v2273_v19 = vld [vmem:[%s4684_s1 + $0x1c0] sm:$0xff]  ;;  %v2291_v22 = vld [vmem:[%s4684_s1 + $0x250] sm:$0xff] }
  0x85   : > { %2936 = vmatprep.subr.bf16.mxu0 %v2935_v63  ;;  %2968 = vmatprep.subr.bf16.mxu1 %v2967_v3  ;;  %v2274_v20 = vld [vmem:[%s4684_s1 + $0x1c8] sm:$0xff]  ;;  %v2975_v21 = vpack.c.bf16 %v2306_v16, %v2305_v15  ;;  %v2292_v23 = vld [vmem:[%s4684_s1 + $0x258] sm:$0xff]  ;;  %v2307_v24 = vld [vmem:[%s4684_s1 + $0x2d0] sm:$0xff] }
  0x86   : > { %v2308_v25 = vld [vmem:[%s4684_s1 + $0x2d8] sm:$0xff]  ;;  %v2275_v26 = vld [vmem:[%s4684_s1 + $0x1d0] sm:$0xff]  ;;  %v2945_v27 = vpack.c.bf16 %v2274_v20, %v2273_v19  ;;  %v2947_v31 = vpack.c.bf16 %v2292_v23, %v2291_v22  ;;  %v2293_v32 = vld [vmem:[%s4684_s1 + $0x260] sm:$0xff] }
  0x87   : > { %v2276_v28 = vld [vmem:[%s4684_s1 + $0x1d8] sm:$0xff]  ;;  %v564_v29 = vld [vmem:[%s3632_s28 + $0x10] sm:$0xff]  ;;  %v2979_v35 = vpack.c.bf16 %v2308_v25, %v2307_v24  ;;  %v2294_v36 = vld [vmem:[%s4684_s1 + $0x268] sm:$0xff] }
  0x88   : > { %2938 = vmatpush3.bf16.msra.mxu0 %v2937_v8  ;;  %2970 = vmatpush3.bf16.msra.mxu1 %v2967_v3  ;;  %v565_v30 = vld [vmem:[%s3632_s28 + $0x18] sm:$0xff]  ;;  %v3639_v33 = vrot.slane %v564_v29, 7  ;;  %v2309_v37 = vld [vmem:[%s4684_s1 + $0x2e0] sm:$0xff]  ;;  %v2310_v38 = vld [vmem:[%s4684_s1 + $0x2e8] sm:$0xff]  ;;  %v2949_v39 = vpack.c.bf16 %v2276_v28, %v2275_v26  ;;  %v2951_v48 = vpack.c.bf16 %v2294_v36, %v2293_v32 }
  0x89   : > { %2940 = vmatprep.subr.bf16.mxu0 %v2939_v9  ;;  %2972 = vmatprep.subr.bf16.mxu1 %v2971_v12  ;;  %v607_v34 = vrot.slane %v565_v30, 7  ;;  %v566_v42 = vld [vmem:[%s3632_s28 + $0x20] sm:$0xff]  ;;  %v567_v47 = vld [vmem:[%s3632_s28 + $0x28] sm:$0xff]  ;;  %v2983_v49 = vpack.c.bf16 %v2310_v38, %v2309_v37  ;;  %v2295_v52 = vld [vmem:[%s4684_s1 + $0x270] sm:$0xff] }
  0x8a   : > { %v664_v41 = vsel %vm602_vm0, 0.0, %v3639_v33  ;;  %v2277_v50 = vld [vmem:[%s4684_s1 + $0x1e0] sm:$0xff]  ;;  %v2278_v51 = vld [vmem:[%s4684_s1 + $0x1e8] sm:$0xff]  ;;  %v2296_v53 = vld [vmem:[%s4684_s1 + $0x278] sm:$0xff]  ;;  %v3689_v59 = vrot.slane %v566_v42, 7  ;;  %v610_v61 = vrot.slane %v567_v47, 7 }
  0x8b   : > { %v3652_v40 = vsel %vm602_vm0, %v3639_v33, %v607_v34  ;;  %v705_v43 = vrot.slane %v664_v41, 1  ;;  %v762_v45 = vrot.slane %v664_v41, 2  ;;  %v2311_v54 = vld [vmem:[%s4684_s1 + $0x2f0] sm:$0xff]  ;;  %v2312_v55 = vld [vmem:[%s4684_s1 + $0x2f8] sm:$0xff]  ;;  %v3687_v58 = vsel %vm602_vm0, %v607_v34, 0.0  ;;  %v3706_v2 = vld [vmem:[%s4684_s1 + $0x80] sm:$0xff] }
  0x8c   : > { %2942 = vmatpush3.bf16.msra.mxu0 %v2941_v17  ;;  %2974 = vmatpush3.bf16.msra.mxu1 %v2971_v12  ;;  %v706_v44 = vrot.slane %v3652_v40, 1  ;;  %v763_v46 = vrot.slane %v3652_v40, 2  ;;  %v2279_v60 = vld [vmem:[%s4684_s1 + $0x1f0] sm:$0xff]  ;;  %v3698_v63 = vld [vmem:[%s3632_s28 + $0x38] sm:$0xff]  ;;  %v2953_v0 = vpack.c.bf16 %v2278_v51, %v2277_v50  ;;  %v3711_v3 = vld [vmem:[%s4684_s1 + $0x88] sm:$0xff]  ;;  %v2955_v4 = vpack.c.bf16 %v2296_v53, %v2295_v52 }
  0x8d   : > { %2944 = vmatprep.subr.bf16.mxu0 %v2943_v18  ;;  %2976 = vmatprep.subr.bf16.mxu1 %v2975_v21  ;;  %v568_v62 = vld [vmem:[%s3632_s28 + $0x30] sm:$0xff]  ;;  %v2280_v1 = vld [vmem:[%s4684_s1 + $0x1f8] sm:$0xff]  ;;  %v765_v5 = vrot.slane %v3687_v58, 2  ;;  %v2361_v6 = vld [vmem:[%s4684_s1 + $0x380] sm:$0xff]  ;;  %v2987_v9 = vpack.c.bf16 %v2312_v55, %v2311_v54  ;;  %v3742_v13 = vsel %vm602_vm0, 0.0, %v3689_v59  ;;  %v613_v15 = vrot.slane %v3698_v63, 7 }
  0x8e   : > { %v3681_v56 = vsel %vm699_vm1, %v705_v43, %v706_v44  ;;  %v3684_v57 = vsel %vm756_vm2, %v762_v45, %v763_v46  ;;  %v2362_v7 = vld [vmem:[%s4684_s1 + $0x388] sm:$0xff]  ;;  %v3723_v8 = vld [vmem:[%s4684_s1] sm:$0xff]  ;;  %v3744_v14 = vrot.slane %v568_v62, 7  ;;  %v3749_v16 = vsel %vm602_vm0, %v3689_v59, %v610_v61  ;;  %v3757_v18 = vld [vmem:[%s4684_s1 + $0x90] sm:$0xff] }
  0x8f   : > { %990 = vmatprep.mubr.f32.mxu0 %v3681_v56  ;;  %2791 = vmatprep.mubr.f32.mxu1 %v3684_v57  ;;  %v3728_v10 = vld [vmem:[%s4684_s1 + $0x8] sm:$0xff]  ;;  %v3733_v11 = vld [vmem:[%s4684_s1 + $0x300] sm:$0xff]  ;;  %v3752_v17 = vsel %vm602_vm0, %v610_v61, 0.0  ;;  %v3762_v19 = vld [vmem:[%s4684_s1 + $0x98] sm:$0xff]  ;;  %v2957_v20 = vpack.c.bf16 %v2280_v1, %v2279_v60  ;;  %v3055_v22 = vpack.c.bf16 %v2362_v7, %v2361_v6  ;;  %v708_v23 = vrot.slane %v3687_v58, 1 }
  0x90   : > { %2946 = vmatpush3.bf16.msra.mxu0 %v2945_v27  ;;  %2978 = vmatpush3.bf16.msra.mxu1 %v2975_v21  ;;  %v3738_v12 = vld [vmem:[%s4684_s1 + $0x308] sm:$0xff]  ;;  %v2991_v21 = vpack.c.bf16 %v3711_v3, %v3706_v2  ;;  %v3770_v24 = vld [vmem:[%s4684_s1 + $0x10] sm:$0xff]  ;;  %v570_v25 = vld [vmem:[%s3632_s28 + $0x40] sm:$0xff]  ;;  %v3777_v27 = vsel %vm756_vm2, %v763_v46, %v765_v5  ;;  %v2993_v28 = vpack.c.bf16 %v3728_v10, %v3723_v8  ;;  %v767_v30 = vrot.slane %v3742_v13, 2 }
  0x91   : > { %2948 = vmatprep.subr.bf16.mxu0 %v2947_v31  ;;  %2980 = vmatprep.subr.bf16.mxu1 %v2979_v35  ;;  %v3774_v26 = vld [vmem:[%s3632_s28 + $0x48] sm:$0xff]  ;;  %4713 = vst [vmem:[#allocation13_spill] sm:$0xff] %v3777_v27  ;;  %v3057_v29 = vpack.c.bf16 %v3738_v12, %v3733_v11  ;;  %v3787_v31 = vld [vmem:[%s4684_s1 + $0x18] sm:$0xff]  ;;  %v3792_v32 = vld [vmem:[%s4684_s1 + $0xa0] sm:$0xff]  ;;  %v770_v36 = vrot.slane %v3752_v17, 2  ;;  %v3803_v37 = vsel %vm602_vm0, %v3744_v14, %v613_v15  ;;  %v3807_v38 = vsel %vm602_vm0, 0.0, %v3744_v14 }
  0x92   : > { %v3797_v34 = vld [vmem:[%s4684_s1 + $0xa8] sm:$0xff]  ;;  %v2364_v41 = vld [vmem:[%s4684_s1 + $0x398] sm:$0xff]  ;;  %v572_v42 = vld [vmem:[%s3632_s28 + $0x50] sm:$0xff]  ;;  %v710_v45 = vrot.slane %v3742_v13, 1  ;;  %v711_v46 = vrot.slane %v3749_v16, 1  ;;  %v3839_v51 = vsel %vm699_vm1, %v706_v44, %v708_v23  ;;  %v2995_v52 = vpack.c.bf16 %v3762_v19, %v3757_v18 }
  0x93   : > { %vm3819_vm3 = vmneg %vm602_vm0  ;;  %v3828_v47 = vld [vmem:[%s4684_s1 + $0x20] sm:$0xff]  ;;  %v3834_v50 = vld [vmem:[%s3632_s28 + $0x58] sm:$0xff]  ;;  %v2997_v53 = vpack.c.bf16 %v3787_v31, %v3770_v24  ;;  %v2999_v54 = vpack.c.bf16 %v3797_v34, %v3792_v32  ;;  %v772_v60 = vrot.slane %v3807_v38, 2  ;;  %v773_v61 = vrot.slane %v3803_v37, 2 }
  0x94   : > { %2950 = vmatpush3.bf16.msra.mxu0 %v2949_v39  ;;  %2982 = vmatpush3.bf16.msra.mxu1 %v2979_v35  ;;  %v768_v35 = vrot.slane %v3749_v16, 2  ;;  %v3812_v39 = vld [vmem:[%s4684_s1 + $0x390] sm:$0xff]  ;;  %v3850_v55 = vld [vmem:[%s4684_s1 + $0x28] sm:$0xff]  ;;  %v3860_v44 = vld [vmem:[%s4684_s1 + $0x318] sm:$0xff]  ;;  %v3865_v62 = vsel %vm602_vm0, %v613_v15, 0.0  ;;  %v3877_v1 = vrot.slane %v572_v42, 7  ;;  %v3893_v6 = vsel %vm699_vm1, %v710_v45, %v711_v46 }
  0x95   : > { %2952 = vmatprep.subr.bf16.mxu0 %v2951_v48  ;;  %2984 = vmatprep.subr.bf16.mxu1 %v2983_v49  ;;  %v3830_v48 = vrot.slane %v570_v25, 7  ;;  %v3855_v58 = vld [vmem:[%s4684_s1 + $0x310] sm:$0xff]  ;;  %v619_v5 = vrot.slane %v3834_v50, 7  ;;  %v3001_v7 = vpack.c.bf16 %v3850_v55, %v3828_v47  ;;  %v574_v11 = vld [vmem:[%s3632_s28 + $0x60] sm:$0xff]  ;;  %v3912_v12 = vld [vmem:[%s3632_s28 + $0x68] sm:$0xff]  ;;  %v775_v13 = vrot.slane %v3865_v62, 2 }
  0x96   : > { %v3870_v63 = vld [vmem:[%s4684_s1 + $0xb0] sm:$0xff]  ;;  %v3880_v2 = vsel %vm756_vm2, %v767_v30, %v768_v35  ;;  %v3883_v3 = vsel %vm756_vm2, %v768_v35, %v770_v36  ;;  %v3061_v15 = vpack.c.bf16 %v3860_v44, %v3855_v58  ;;  %v713_v18 = vrot.slane %v3752_v17, 1  ;;  %v2350_v58 = vld [vmem:[%s4684_s1 + $0x328] sm:$0xff]  ;;  %v4016_v31 = vld [vmem:[%s4684_s1 + $0x40] sm:$0xff] }
  0x97   : > { %4716 = vst [vmem:[#allocation14_spill] sm:$0xff] %v3880_v2  ;;  %4717 = vst [vmem:[#allocation15_spill] sm:$0xff] %v3883_v3  ;;  %v3908_v10 = vld [vmem:[%s4684_s1 + $0x30] sm:$0xff]  ;;  %v3934_v17 = vsel %vm756_vm2, %v772_v60, %v773_v61  ;;  %v3941_v25 = vsel %vm602_vm0, %v3877_v1, %v619_v5  ;;  %v3950_v30 = vrot.slane %v574_v11, 7  ;;  %v622_v35 = vrot.slane %v3912_v12, 7  ;;  %v3984_v11 = vld [vmem:[%s4684_s1 + $0xc8] sm:$0xff] }
  0x98   : > { %2954 = vmatpush3.bf16.msra.mxu0 %v2953_v0  ;;  %2986 = vmatpush3.bf16.msra.mxu1 %v2983_v49  ;;  %v616_v49 = vrot.slane %v3774_v26, 7  ;;  %v3875_v0 = vld [vmem:[%s4684_s1 + $0xb8] sm:$0xff]  ;;  %4718 = vst [vmem:[#allocation16_spill] sm:$0xff] %v3934_v17  ;;  %v3945_v26 = vsel %vm602_vm0, 0.0, %v3877_v1  ;;  %v576_v36 = vld [vmem:[%s3632_s28 + $0x70] sm:$0xff]  ;;  %v715_v42 = vrot.slane %v3807_v38, 1  ;;  %v3976_v38 = vsel %vm756_vm2, %v773_v61, %v775_v13 }
  0x99   : > { %2956 = vmatprep.subr.bf16.mxu0 %v2955_v4  ;;  %2988 = vmatprep.subr.bf16.mxu1 %v2987_v9  ;;  %v3059_v4 = vpack.c.bf16 %v2364_v41, %v3812_v39  ;;  %v3003_v19 = vpack.c.bf16 %v3875_v0, %v3870_v63  ;;  %v3955_v39 = vld [vmem:[%s3632_s28 + $0x78] sm:$0xff]  ;;  %v716_v45 = vrot.slane %v3803_v37, 1  ;;  %4719 = vst [vmem:[#allocation17_spill] sm:$0xff] %v3976_v38  ;;  %v782_v60 = vrot.slane %v3945_v26, 2  ;;  %v2367_v12 = vld [vmem:[%s4684_s1 + $0x3b0] sm:$0xff]  ;;  %v2369_v0 = vld [vmem:[%s4684_s1 + $0x3c0] sm:$0xff] }
  0x9a   : > { %v3899_v8 = vsel %vm602_vm0, %v3830_v48, %v616_v49  ;;  %v3937_v23 = vsel %vm602_vm0, %v616_v49, 0.0  ;;  %v3965_v49 = vld [vmem:[%s4684_s1 + $0xc0] sm:$0xff]  ;;  %v2368_v61 = vld [vmem:[%s4684_s1 + $0x3b8] sm:$0xff]  ;;  %v3999_v13 = vsel %vm699_vm1, %v711_v46, %v713_v18  ;;  %v625_v41 = vrot.slane %v3955_v39, 7  ;;  %v2351_v32 = vld [vmem:[%s4684_s1 + $0x330] sm:$0xff] }
  0x9b   : > { %v780_v44 = vrot.slane %v3937_v23, 2  ;;  %v4035_v34 = vsel %vm699_vm1, %v715_v42, %v716_v45  ;;  %v2352_v18 = vld [vmem:[%s4684_s1 + $0x338] sm:$0xff] }
  0x9c   : > { %2958 = vmatpush3.bf16.msra.mxu0 %v2957_v20  ;;  %2990 = vmatpush3.bf16.msra.mxu1 %v2987_v9  ;;  %v3903_v9 = vsel %vm602_vm0, 0.0, %v3830_v48  ;;  %v3924_v20 = vld [vmem:[%s4684_s1 + $0x38] sm:$0xff]  ;;  %v3069_v55 = vpack.c.bf16 %v2352_v18, %v2351_v32  ;;  %v721_v32 = vrot.slane %v3899_v8, 1  ;;  %v4116_v18 = vld [vmem:[%s3632_s28 + $0x8] sm:$0xff] }
  0x9d   : > { %3056 = vmatprep.subr.bf16.mxu0 %v3055_v22  ;;  %2992 = vmatprep.subr.bf16.mxu1 %v2991_v21  ;;  %v2365_v21 = vld [vmem:[%s4684_s1 + $0x3a0] sm:$0xff]  ;;  %v2366_v22 = vld [vmem:[%s4684_s1 + $0x3a8] sm:$0xff] }
  0x9e   : > { %v3063_v50 = vpack.c.bf16 %v2366_v22, %v2365_v21  ;;  %v4002_v21 = vsel %vm602_vm0, %v619_v5, 0.0  ;;  %v4004_v22 = vrot.slane %v576_v36, 7  ;;  %v4024_v5 = vsel %vm602_vm0, 0.0, %v3950_v30  ;;  %v4044_v36 = vld [vmem:[%s3632_s28 + $0x88] sm:$0xff] }
  0x9f   : > { %2314 = vmatmul.mubr.msk.f32.vlgmr.msra.gmra.mrb[0].mxu0 %vm3819_vm3, %v3639_v33  ;;  %2792 = vmatmul.mubr.f32.vlgmr.msra.gmra.mrb[0].mxu1 %v3777_v27 }
  0xa0   : > { %3058 = vmatpush3.bf16.msra.mxu0 %v3057_v29  ;;  %2994 = vmatpush3.bf16.msra.mxu1 %v2993_v28  ;;  %v777_v28 = vrot.slane %v3903_v9, 2  ;;  %v778_v29 = vrot.slane %v3899_v8, 2  ;;  %v4087_v47 = vsel %vm602_vm0, 0.0, %v4004_v22 }
  0xa1   : > { %995 = vmatprep.mubr.f32.mxu0 %v3839_v51  ;;  %2794 = vmatprep.mubr.f32.mxu1 %v3880_v2  ;;  %v846_v2 = vld [vmem:[%s4684_s1 + $0x108] sm:$0xff] }
  0xa2   : > { %2996 = vmatprep.subr.bf16.mxu1 %v2995_v52  ;;  %3060 = vmatprep.subr.bf16.mxu0 %v3059_v4  ;;  %v2349_v52 = vld [vmem:[%s4684_s1 + $0x320] sm:$0xff]  ;;  %v783_v4 = vrot.slane %v3941_v25, 2  ;;  %v4011_v24 = vsel %vm756_vm2, %v777_v28, %v778_v29  ;;  %v4049_v39 = vsel %vm756_vm2, %v778_v29, %v780_v44  ;;  %v4067_v29 = vld [vmem:[%s4684_s1 + $0xd8] sm:$0xff]  ;;  %v787_v44 = vrot.slane %v4024_v5, 2 }
  0xa3   : > { %996 = vmatmul.mubr.f32.gmra.mrb[2].mxu0 %v3652_v40  ;;  %2795 = vmatmul.mubr.f32.gmra.mrb[2].mxu1 %v3883_v3  ;;  %4720 = vst [vmem:[#allocation18_spill] sm:$0xff] %v4011_v24  ;;  %v3065_v46 = vpack.c.bf16 %v2350_v58, %v2349_v52  ;;  %v578_v28 = vld [vmem:[%s3632_s28 + $0x80] sm:$0xff]  ;;  %4721 = vst [vmem:[#allocation19_spill] sm:$0xff] %v4049_v39  ;;  %v718_v52 = vrot.slane %v3865_v62, 1  ;;  %v4062_v58 = vld [vmem:[%s4684_s1 + $0xd0] sm:$0xff] }
  0xa4   : > { %1000 = vmatprep.mubr.f32.mxu0 %v3893_v6  ;;  %2998 = vmatpush3.bf16.msra.mxu1 %v2997_v53  ;;  %v4020_v53 = vsel %vm602_vm0, %v3950_v30, %v622_v35  ;;  %v4052_v42 = vsel %vm756_vm2, %v782_v60, %v783_v4  ;;  %v4076_v60 = vsel %vm602_vm0, %v622_v35, 0.0  ;;  %v628_v35 = vrot.slane %v4044_v36, 7  ;;  %v2373_v3 = vld [vmem:[%s4684_s1 + $0x3e0] sm:$0xff] }
  0xa5   : > { %2797 = vmatprep.mubr.f32.mxu1 %v3934_v17  ;;  %3000 = vmatprep.subr.bf16.mxu1 %v2999_v54  ;;  %v3007_v54 = vpack.c.bf16 %v3984_v11, %v3965_v49  ;;  %4722 = vst [vmem:[#allocation20_spill] sm:$0xff] %v4052_v42  ;;  %v785_v49 = vrot.slane %v4002_v21, 2  ;;  %v788_v62 = vrot.slane %v4020_v53, 2  ;;  %v4080_v11 = vsel %vm602_vm0, %v4004_v22, %v625_v41 }
  0xa6   : > { %3062 = vmatpush3.bf16.msra.mxu0 %v3061_v15  ;;  %v3067_v15 = vpack.c.bf16 %v2368_v61, %v2367_v12  ;;  %v3011_v63 = vpack.c.bf16 %v4067_v29, %v4062_v58  ;;  %v790_v36 = vrot.slane %v4076_v60, 2  ;;  %v726_v17 = vrot.slane %v3941_v25, 1 }
  0xa7   : > { %2316 = vmatmul.mubr.msk.f32.gmra.mrb[4].mxu0 %vm3819_vm3, %v3689_v59  ;;  %3064 = vmatprep.subr.bf16.mxu0 %v3063_v50  ;;  %v822_v50 = vld [vmem:[%s4684_s1 + $0x48] sm:$0xff]  ;;  %v4105_v61 = vsel %vm756_vm2, %v783_v4, %v785_v49  ;;  %v4123_v4 = vsel %vm756_vm2, %v787_v44, %v788_v62  ;;  %v792_v49 = vrot.slane %v4087_v47, 2  ;;  %v604_v44 = vrot.slane %v4116_v18, 7  ;;  %v2371_v18 = vld [vmem:[%s4684_s1 + $0x3d0] sm:$0xff] }
  0xa8   : > { %2798 = vmatmul.mubr.f32.gmra.mrb[4].mxu1 %v3976_v38  ;;  %1005 = vmatprep.mubr.f32.mxu0 %v3999_v13  ;;  %v3009_v12 = vpack.c.bf16 %v822_v50, %v4016_v31  ;;  %4723 = vst [vmem:[#allocation21_spill] sm:$0xff] %v4105_v61  ;;  %v4110_v31 = vsel %vm699_vm1, %v716_v45, %v718_v52  ;;  %4725 = vst [vmem:[#allocation22_spill] sm:$0xff] %v4123_v4  ;;  %v824_v45 = vld [vmem:[%s4684_s1 + $0x58] sm:$0xff]  ;;  %v841_v50 = vld [vmem:[%s4684_s1 + $0xe0] sm:$0xff] }
  0xa9   : > { %3002 = vmatpush3.bf16.msra.mxu1 %v3001_v7  ;;  %2800 = vmatprep.mubr.f32.mxu1 %v4011_v24  ;;  %v4089_v7 = vrot.slane %v578_v28, 7  ;;  %v4724_v28 = vpack.c.bf16 %v3924_v20, %v3908_v10  ;;  %v793_v10 = vrot.slane %v4080_v11, 2  ;;  %v4135_v20 = vsel %vm602_vm0, %v625_v41, 0.0  ;;  %v842_v41 = vld [vmem:[%s4684_s1 + $0xe8] sm:$0xff]  ;;  %v844_v24 = vld [vmem:[%s4684_s1 + $0xf8] sm:$0xff] }
  0xaa   : > { %3004 = vmatprep.subr.bf16.mxu1 %v3003_v19  ;;  %3066 = vmatpush3.bf16.msra.mxu0 %v3065_v46  ;;  %v2370_v19 = vld [vmem:[%s4684_s1 + $0x3c8] sm:$0xff]  ;;  %v720_v46 = vrot.slane %v3903_v9, 1  ;;  %v823_v9 = vld [vmem:[%s4684_s1 + $0x50] sm:$0xff] }
  0xab   : > { %1006 = vmatmul.mubr.f32.gmra.mrb[6].mxu0 %v3749_v16  ;;  %3068 = vmatprep.subr.bf16.mxu0 %v3067_v15  ;;  %v562_v15 = vld [vmem:[%s3632_s28] sm:$0xff]  ;;  %v4142_v52 = vsel %vm602_vm0, %v4089_v7, %v628_v35  ;;  %v4146_v58 = vsel %vm602_vm0, 0.0, %v4089_v7  ;;  %v3071_v29 = vpack.c.bf16 %v2370_v19, %v2369_v0  ;;  %v2354_v0 = vld [vmem:[%s4684_s1 + $0x348] sm:$0xff]  ;;  %v3013_v19 = vpack.c.bf16 %v824_v45, %v823_v9 }
  0xac   : > { %2801 = vmatmul.mubr.f32.gmra.mrb[6].mxu1 %v4049_v39  ;;  %1010 = vmatprep.mubr.f32.mxu0 %v4035_v34  ;;  %v795_v9 = vrot.slane %v4135_v20, 2  ;;  %v870_v45 = vrot.slane %v4146_v58, 2  ;;  %v871_v39 = vrot.slane %v4142_v52, 2 }
  0xad   : > { %3006 = vmatpush3.bf16.msra.mxu1 %v4724_v28  ;;  %2803 = vmatprep.mubr.f32.mxu1 %v4052_v42  ;;  %v4166_v28 = vsel %vm699_vm1, %v720_v46, %v721_v32  ;;  %v2372_v42 = vld [vmem:[%s4684_s1 + $0x3d8] sm:$0xff]  ;;  %v826_v46 = vld [vmem:[%s4684_s1 + $0x68] sm:$0xff] }
  0xae   : > { %3008 = vmatprep.subr.bf16.mxu1 %v3007_v54  ;;  %3070 = vmatpush3.bf16.msra.mxu0 %v3069_v55  ;;  %v4154_v54 = vrot.slane %v562_v15, 7  ;;  %v2353_v55 = vld [vmem:[%s4684_s1 + $0x340] sm:$0xff]  ;;  %v723_v15 = vrot.slane %v3937_v23, 1 }
  0xaf   : > { %2318 = vmatmul.mubr.msk.f32.gmra.mrb[8].mxu0 %vm3819_vm3, %v3744_v14  ;;  %v825_v23 = vld [vmem:[%s4684_s1 + $0x60] sm:$0xff]  ;;  %3072 = vmatprep.subr.bf16.mxu0 %v3071_v29  ;;  %v3073_v38 = vpack.c.bf16 %v2354_v0, %v2353_v55  ;;  %v2355_v29 = vld [vmem:[%s4684_s1 + $0x350] sm:$0xff] }
  0xb0   : > { %2804 = vmatmul.mubr.f32.gmra.mrb[8].mxu1 %v4105_v61  ;;  %1015 = vmatprep.mubr.f32.mxu0 %v4110_v31  ;;  %v4177_v61 = vsel %vm756_vm2, %v788_v62, %v790_v36  ;;  %v3015_v62 = vpack.c.bf16 %v842_v41, %v841_v50  ;;  %v4192_v36 = vsel %vm602_vm0, %v628_v35, 0.0  ;;  %v4208_v35 = vsel %vm602_vm0, %v4154_v54, %v604_v44  ;;  %v2356_v41 = vld [vmem:[%s4684_s1 + $0x358] sm:$0xff] }
  0xb1   : > { %3010 = vmatpush3.bf16.msra.mxu1 %v3009_v12  ;;  %2806 = vmatprep.mubr.f32.mxu1 %v4123_v4  ;;  %4726 = vst [vmem:[#allocation23_spill] sm:$0xff] %v4177_v61  ;;  %v4189_v12 = vsel %vm756_vm2, %v792_v49, %v793_v10  ;;  %v843_v4 = vld [vmem:[%s4684_s1 + $0xf0] sm:$0xff]  ;;  %v4212_v49 = vsel %vm602_vm0, 0.0, %v4154_v54  ;;  %v3075_v50 = vpack.c.bf16 %v2372_v42, %v2371_v18  ;;  %v4228_v42 = vld [vmem:[%s4684_s1 + $0x78] sm:$0xff]  ;;  %v725_v18 = vrot.slane %v3945_v26, 1 }
  0xb2   : > { %3012 = vmatprep.subr.bf16.mxu1 %v3011_v63  ;;  %4727 = vst [vmem:[#allocation24_spill] sm:$0xff] %v4189_v12  ;;  %v4204_v63 = vld [vmem:[%s4684_s1 + $0x70] sm:$0xff]  ;;  %v3017_v55 = vpack.c.bf16 %v826_v46, %v825_v23  ;;  %v4223_v0 = vsel %vm699_vm1, %v721_v32, %v723_v15  ;;  %v2374_v23 = vld [vmem:[%s4684_s1 + $0x3e8] sm:$0xff]  ;;  %v4240_v32 = vsel %vm756_vm2, %v793_v10, %v795_v9  ;;  %v873_v26 = vrot.slane %v4192_v36, 2 }
  0xb3   : > { %1016 = vmatmul.mubr.f32.gmra.mrb[10].mxu0 %v3803_v37  ;;  %4728 = vst [vmem:[#allocation25_spill] sm:$0xff] %v4240_v32  ;;  %v4243_v15 = vsel %vm756_vm2, %v870_v45, %v871_v39  ;;  %v3019_v46 = vpack.c.bf16 %v844_v24, %v843_v4  ;;  %v701_v10 = vrot.slane %v4208_v35, 1  ;;  %v673_v9 = vsel %vm602_vm0, %v604_v44, 0.0 }
  0xb4   : > { %2807 = vmatmul.mubr.f32.gmra.mrb[10].mxu1 %v4177_v61  ;;  %1020 = vmatprep.mubr.f32.mxu0 %v4166_v28  ;;  %4729 = vst [vmem:[#allocation26_spill] sm:$0xff] %v4243_v15  ;;  %v845_v61 = vld [vmem:[%s4684_s1 + $0x100] sm:$0xff]  ;;  %v3077_v45 = vpack.c.bf16 %v2356_v41, %v2355_v29  ;;  %v3021_v24 = vpack.c.bf16 %v4228_v42, %v4204_v63  ;;  %v760_v4 = vrot.slane %v673_v9, 2  ;;  %v757_v44 = vrot.slane %v4212_v49, 2  ;;  %v581_v29 = vld [vmem:[%s3632_s28 + $0x98] sm:$0xff]  ;;  %v2375_v41 = vld [vmem:[%s4684_s1 + $0x3f0] sm:$0xff] }
  0xb5   : > { %3014 = vmatpush3.bf16.msra.mxu1 %v3013_v19  ;;  %2809 = vmatprep.mubr.f32.mxu1 %v4189_v12  ;;  %v700_v19 = vrot.slane %v4212_v49, 1  ;;  %v580_v12 = vld [vmem:[%s3632_s28 + $0x90] sm:$0xff]  ;;  %v3079_v27 = vpack.c.bf16 %v2374_v23, %v2373_v3  ;;  %v4272_v63 = vsel %vm699_vm1, %v725_v18, %v726_v17  ;;  %v728_v3 = vrot.slane %v4002_v21, 1  ;;  %v2376_v42 = vld [vmem:[%s4684_s1 + $0x3f8] sm:$0xff] }
  0xb6   : > { %3016 = vmatprep.subr.bf16.mxu1 %v3015_v62  ;;  %3074 = vmatpush3.bf16.msra.mxu0 %v3073_v38  ;;  %v2357_v62 = vld [vmem:[%s4684_s1 + $0x360] sm:$0xff]  ;;  %v2358_v38 = vld [vmem:[%s4684_s1 + $0x368] sm:$0xff]  ;;  %v758_v49 = vrot.slane %v4208_v35, 2  ;;  %v4284_v23 = vsel %vm756_vm2, %v871_v39, %v873_v26  ;;  %v703_v18 = vrot.slane %v673_v9, 1  ;;  %v847_v21 = vld [vmem:[%s4684_s1 + $0x110] sm:$0xff]  ;;  %v631_v26 = vrot.slane %v581_v29, 7 }
  0xb7   : > { %2320 = vmatmul.mubr.msk.f32.gmra.mrb[12].mxu0 %vm3819_vm3, %v3830_v48  ;;  %3076 = vmatprep.subr.bf16.mxu0 %v3075_v50  ;;  %v3023_v50 = vpack.c.bf16 %v846_v2, %v845_v61  ;;  %4730 = vst [vmem:[#allocation27_spill] sm:$0xff] %v4284_v23  ;;  %v730_v2 = vrot.slane %v4024_v5, 1  ;;  %v848_v61 = vld [vmem:[%s4684_s1 + $0x118] sm:$0xff]  ;;  %v3081_v39 = vpack.c.bf16 %v2358_v38, %v2357_v62  ;;  %v2359_v9 = vld [vmem:[%s4684_s1 + $0x370] sm:$0xff]  ;;  %v2377_v38 = vld [vmem:[%s4684_s1 + $0x400] sm:$0xff] }
  0xb8   : > { %2810 = vmatmul.mubr.f32.gmra.mrb[12].mxu1 %v4240_v32  ;;  %1025 = vmatprep.mubr.f32.mxu0 %v4223_v0  ;;  %v4293_v32 = vrot.slane %v580_v12, 7  ;;  %v3083_v5 = vpack.c.bf16 %v2376_v42, %v2375_v41  ;;  %v2360_v12 = vld [vmem:[%s4684_s1 + $0x378] sm:$0xff]  ;;  %v3027_v62 = vpack.c.bf16 %v848_v61, %v847_v21  ;;  %v704_v41 = vsel %vm699_vm1, %v701_v10, %v703_v18 }
  0xb9   : > { %3018 = vmatpush3.bf16.msra.mxu1 %v3017_v55  ;;  %2812 = vmatprep.mubr.f32.mxu1 %v4243_v15  ;;  %v702_v55 = vsel %vm699_vm1, %v700_v19, %v701_v10  ;;  %v731_v15 = vrot.slane %v4020_v53, 1  ;;  %v4308_v19 = vsel %vm756_vm2, %v758_v49, %v760_v4  ;;  %v2378_v4 = vld [vmem:[%s4684_s1 + $0x408] sm:$0xff]  ;;  %v849_v10 = vld [vmem:[%s4684_s1 + $0x120] sm:$0xff] }
  0xba   : > { %3020 = vmatprep.subr.bf16.mxu1 %v3019_v46  ;;  %3078 = vmatpush3.bf16.msra.mxu0 %v3077_v45  ;;  %v4305_v46 = vsel %vm756_vm2, %v757_v44, %v758_v49  ;;  %v672_v45 = vsel %vm602_vm0, 0.0, %v4293_v32  ;;  %v4325_v44 = vsel %vm602_vm0, %v4293_v32, %v631_v26  ;;  %v3085_v49 = vpack.c.bf16 %v2360_v12, %v2359_v9 }
  0xbb   : > { %1026 = vmatmul.mubr.f32.gmra.mrb[14].mxu0 %v3899_v8  ;;  %3080 = vmatprep.subr.bf16.mxu0 %v3079_v27  ;;  %v4315_v27 = vsel %vm699_vm1, %v726_v17, %v728_v3  ;;  %v1508_v29 = vrot.slane %v672_v45, 1  ;;  %v1509_v17 = vrot.slane %v4325_v44, 1  ;;  %v682_v3 = vsel %vm602_vm0, %v631_v26, 0.0  ;;  %v4744_v43 = vld [vmem:[#allocation26_spill] sm:$0xff] }
  0xbc   : > { %2813 = vmatmul.mubr.f32.gmra.mrb[14].mxu1 %v4284_v23  ;;  %1030 = vmatprep.mubr.f32.mxu0 %v4272_v63  ;;  %v1515_v42 = vrot.slane %v672_v45, 2  ;;  %v1511_v21 = vrot.slane %v682_v3, 1  ;;  %v1516_v61 = vrot.slane %v4325_v44, 2  ;;  %v1518_v23 = vrot.slane %v682_v3, 2  ;;  %v851_v45 = vld [vmem:[%s4684_s1 + $0x130] sm:$0xff] }
  0xbd   : > { %3022 = vmatpush3.bf16.msra.mxu1 %v3021_v24  ;;  %1280 = vmatprep.mubr.f32.mxu1 %v702_v55  ;;  %v850_v24 = vld [vmem:[%s4684_s1 + $0x128] sm:$0xff]  ;;  %v4340_v18 = vpack.c.bf16 %v2378_v4, %v2377_v38  ;;  %v4343_v55 = vsel %vm699_vm1, %v1508_v29, %v1509_v17  ;;  %v733_v12 = vrot.slane %v4076_v60, 1  ;;  %v855_v4 = vld [vmem:[%s4684_s1 + $0x150] sm:$0xff]  ;;  %v864_v29 = vrot.slane %v4142_v52, 1 }
  0xbe   : > { %3024 = vmatprep.subr.bf16.mxu1 %v3023_v50  ;;  %3082 = vmatpush3.bf16.msra.mxu0 %v3081_v39  ;;  %v4350_v39 = vsel %vm699_vm1, %v1509_v17, %v1511_v21  ;;  %v4353_v26 = vsel %vm756_vm2, %v1515_v42, %v1516_v61  ;;  %v4356_v9 = vsel %vm756_vm2, %v1516_v61, %v1518_v23  ;;  %v852_v23 = vld [vmem:[%s4684_s1 + $0x138] sm:$0xff]  ;;  %v858_v17 = vld [vmem:[%s4684_s1 + $0x168] sm:$0xff]  ;;  %v866_v3 = vrot.slane %v4192_v36, 1 }
  0xbf   : > { %2322 = vmatmul.mubr.msk.f32.gmra.mrb[16].mxu0 %vm3819_vm3, %v3877_v1  ;;  %3084 = vmatprep.subr.bf16.mxu0 %v3083_v5  ;;  %v4359_v5 = vsel %vm699_vm1, %v730_v2, %v731_v15  ;;  %v4374_v60 = vsel %vm699_vm1, %v731_v15, %v733_v12  ;;  %v736_v2 = vrot.slane %v4080_v11, 1  ;;  %v3035_v38 = vpack.c.bf16 %v852_v23, %v851_v45  ;;  %v860_v21 = vld [vmem:[%s4684_s1 + $0x178] sm:$0xff]  ;;  %v2382_v45 = vld [vmem:[%s4684_s1 + $0x428] sm:$0xff] }
  0xc0   : > { %2330 = vmatmul.mubr.msk.f32.vlgmr.msra.gmra.mrb[16].mxu1 %vm3819_vm3, %v4154_v54  ;;  %1035 = vmatprep.mubr.f32.mxu0 %v4315_v27  ;;  %v3031_v54 = vpack.c.bf16 %v850_v24, %v849_v10  ;;  %v738_v15 = vrot.slane %v4135_v20, 1  ;;  %v863_v20 = vrot.slane %v4146_v58, 1  ;;  %v4440_v36 = vsel %vm699_vm1, %v864_v29, %v866_v3  ;;  %v2379_v10 = vld [vmem:[%s4684_s1 + $0x410] sm:$0xff]  ;;  %v2380_v24 = vld [vmem:[%s4684_s1 + $0x418] sm:$0xff] }
  0xc1   : > { %3026 = vmatpush3.bf16.msra.mxu1 %v3023_v50  ;;  %1285 = vmatprep.mubr.f32.mxu1 %v704_v41  ;;  %v735_v50 = vrot.slane %v4087_v47, 1  ;;  %v4460_v12 = vpack.c.bf16 %v2380_v24, %v2379_v10  ;;  %v2384_v23 = vld [vmem:[%s4684_s1 + $0x438] sm:$0xff] }
  0xc2   : > { %3028 = vmatprep.subr.bf16.mxu1 %v3027_v62  ;;  %3086 = vmatpush3.bf16.msra.mxu0 %v3085_v49  ;;  %v4426_v58 = vsel %vm699_vm1, %v863_v20, %v864_v29  ;;  %v859_v49 = vld [vmem:[%s4684_s1 + $0x170] sm:$0xff] }
  0xc3   : > { %1036 = vmatmul.mubr.f32.gmra.mrb[18].mxu0 %v3941_v25  ;;  %3088 = vmatprep.subr.bf16.mxu0 %v4340_v18  ;;  %v4393_v47 = vsel %vm699_vm1, %v735_v50, %v736_v2  ;;  %v3051_v61 = vpack.c.bf16 %v860_v21, %v859_v49  ;;  %v2387_v50 = vld [vmem:[%s4684_s1 + $0x450] sm:$0xff] }
  0xc4   : > { %1286 = vmatmul.mubr.f32.gmra.mrb[18].mxu1 %v4208_v35  ;;  %1040 = vmatprep.mubr.f32.mxu0 %v4359_v5  ;;  %v853_v35 = vld [vmem:[%s4684_s1 + $0x140] sm:$0xff] }
  0xc5   : > { %1290 = vmatprep.mubr.f32.mxu1 %v3681_v56  ;;  %3030 = vmatpush3.bf16.msra.mxu1 %v3027_v62  ;;  %v854_v56 = vld [vmem:[%s4684_s1 + $0x148] sm:$0xff] }
  0xc6   : > { %3032 = vmatprep.subr.bf16.mxu1 %v3031_v54  ;;  %v3039_v62 = vpack.c.bf16 %v854_v56, %v853_v35  ;;  %v2392_v35 = vld [vmem:[%s4684_s1 + $0x478] sm:$0xff] }
  0xc7   : > { %2324 = vmatmul.mubr.msk.f32.gmra.mrb[20].mxu0 %vm3819_vm3, %v3950_v30 }
  0xc8   : > { %2332 = vmatmul.mubr.msk.f32.gmra.mrb[20].mxu1 %vm3819_vm3, %v3639_v33  ;;  %1045 = vmatprep.mubr.f32.mxu0 %v4374_v60  ;;  %v856_v33 = vld [vmem:[%s4684_s1 + $0x158] sm:$0xff] }
  0xc9   : > { %1295 = vmatprep.mubr.f32.mxu1 %v3839_v51  ;;  %3034 = vmatpush3.bf16.msra.mxu1 %v3031_v54  ;;  %v4407_v51 = vsel %vm699_vm1, %v736_v2, %v738_v15  ;;  %v3043_v41 = vpack.c.bf16 %v856_v33, %v855_v4  ;;  %v2381_v54 = vld [vmem:[%s4684_s1 + $0x420] sm:$0xff]  ;;  %v2388_v2 = vld [vmem:[%s4684_s1 + $0x458] sm:$0xff] }
  0xca   : > { %3036 = vmatprep.subr.bf16.mxu1 %v3035_v38 }
  0xcb   : > { %1046 = vmatmul.mubr.f32.gmra.mrb[22].mxu0 %v4020_v53 }
  0xcc   : > { %1296 = vmatmul.mubr.f32.gmra.mrb[22].mxu1 %v3652_v40  ;;  %1050 = vmatprep.mubr.f32.mxu0 %v4393_v47  ;;  %v857_v40 = vld [vmem:[%s4684_s1 + $0x160] sm:$0xff] }
  0xcd   : > { %1300 = vmatprep.mubr.f32.mxu1 %v3893_v6  ;;  %3038 = vmatpush3.bf16.msra.mxu1 %v3035_v38  ;;  %v3047_v42 = vpack.c.bf16 %v858_v17, %v857_v40  ;;  %v2390_v38 = vld [vmem:[%s4684_s1 + $0x468] sm:$0xff] }
  0xce   : > { %3040 = vmatprep.subr.bf16.mxu1 %v3039_v62 }
  0xcf   : > { %2326 = vmatmul.mubr.msk.f32.gmra.mrb[24].mxu0 %vm3819_vm3, %v4004_v22 }
  0xd0   : > { %2334 = vmatmul.mubr.msk.f32.gmra.mrb[24].mxu1 %vm3819_vm3, %v3689_v59  ;;  %1055 = vmatprep.mubr.f32.mxu0 %v4407_v51 }
  0xd1   : > { %1305 = vmatprep.mubr.f32.mxu1 %v3999_v13  ;;  %3042 = vmatpush3.bf16.msra.mxu1 %v3039_v62 }
  0xd2   : > { %3044 = vmatprep.subr.bf16.mxu1 %v3043_v41 }
  0xd3   : > { %1056 = vmatmul.mubr.f32.gmra.mrb[26].mxu0 %v4080_v11 }
  0xd4   : > { %1306 = vmatmul.mubr.f32.gmra.mrb[26].mxu1 %v3749_v16  ;;  %1060 = vmatprep.mubr.f32.mxu0 %v4426_v58 }
  0xd5   : > { %1310 = vmatprep.mubr.f32.mxu1 %v4035_v34  ;;  %3046 = vmatpush3.bf16.msra.mxu1 %v3043_v41 }
  0xd6   : > { %3048 = vmatprep.subr.bf16.mxu1 %v3047_v42 }
  0xd7   : > { %2328 = vmatmul.mubr.msk.f32.gmra.mrb[28].mxu0 %vm3819_vm3, %v4089_v7 }
  0xd8   : > { %2336 = vmatmul.mubr.msk.f32.gmra.mrb[28].mxu1 %vm3819_vm3, %v3744_v14  ;;  %1065 = vmatprep.mubr.f32.mxu0 %v4440_v36 }
  0xd9   : > { %1315 = vmatprep.mubr.f32.mxu1 %v4110_v31  ;;  %3050 = vmatpush3.bf16.msra.mxu1 %v3047_v42 }
  0xda   : > { %3052 = vmatprep.subr.bf16.mxu1 %v3051_v61 }
  0xdb   : > { %1066 = vmatmul.mubr.f32.gmra.mrb[30].mxu0 %v4142_v52 }
  0xdc   : > { %1316 = vmatmul.mubr.f32.gmra.mrb[30].mxu1 %v3803_v37  ;;  %1635 = vmatprep.mubr.f32.mxu0 %v3893_v6  ;;  %v2383_v6 = vld [vmem:[%s4684_s1 + $0x430] sm:$0xff] }
  0xdd   : > { %1320 = vmatprep.mubr.f32.mxu1 %v4166_v28  ;;  %3054 = vmatpush3.bf16.msra.mxu1 %v3051_v61 }
  0xde   : > { %3119 = vmatprep.subr.bf16.mxu1 %v4340_v18 }
  0xdf   : > { %2394 = vmatmul.mubr.msk.f32.vlgmr.msra.gmra.mrb[32].mxu0 %vm3819_vm3, %v3689_v59  ;;  %v4479_v59 = vpack.c.bf16 %v2382_v45, %v2381_v54 }
  0xe0   : > { %2338 = vmatmul.mubr.msk.f32.gmra.mrb[32].mxu1 %vm3819_vm3, %v3830_v48  ;;  %3090 = vmatpush3.bf16.msra.mxu0 %v4340_v18 }
  0xe1   : > { %1325 = vmatprep.mubr.f32.mxu1 %v4223_v0  ;;  %1640 = vmatprep.mubr.f32.mxu0 %v3999_v13  ;;  %v4493_v13 = vpack.c.bf16 %v2384_v23, %v2383_v6 }
  0xe2   : > { %3092 = vmatprep.subr.bf16.mxu0 %v4460_v12 }
  0xe3   : > { %1641 = vmatmul.mubr.f32.gmra.mrb[34].mxu0 %v3749_v16  ;;  %v2385_v16 = vld [vmem:[%s4684_s1 + $0x440] sm:$0xff] }
  0xe4   : > { %1326 = vmatmul.mubr.f32.gmra.mrb[34].mxu1 %v3899_v8  ;;  %1645 = vmatprep.mubr.f32.mxu0 %v4035_v34  ;;  %v2386_v34 = vld [vmem:[%s4684_s1 + $0x448] sm:$0xff] }
  0xe5   : > { %1330 = vmatprep.mubr.f32.mxu1 %v4272_v63  ;;  %3094 = vmatpush3.bf16.msra.mxu0 %v4460_v12 }
  0xe6   : > { %3096 = vmatprep.subr.bf16.mxu0 %v4479_v59 }
  0xe7   : > { %2396 = vmatmul.mubr.msk.f32.gmra.mrb[36].mxu0 %vm3819_vm3, %v3744_v14  ;;  %v4511_v14 = vpack.c.bf16 %v2386_v34, %v2385_v16 }
  0xe8   : > { %2340 = vmatmul.mubr.msk.f32.gmra.mrb[36].mxu1 %vm3819_vm3, %v3877_v1  ;;  %1650 = vmatprep.mubr.f32.mxu0 %v4110_v31  ;;  %v3107_v31 = vpack.c.bf16 %v2388_v2, %v2387_v50 }
  0xe9   : > { %1335 = vmatprep.mubr.f32.mxu1 %v4315_v27  ;;  %3098 = vmatpush3.bf16.msra.mxu0 %v4479_v59 }
  0xea   : > { %3100 = vmatprep.subr.bf16.mxu0 %v4493_v13 }
  0xeb   : > { %1651 = vmatmul.mubr.f32.gmra.mrb[38].mxu0 %v3803_v37  ;;  %v2389_v37 = vld [vmem:[%s4684_s1 + $0x460] sm:$0xff] }
  0xec   : > { %1336 = vmatmul.mubr.f32.gmra.mrb[38].mxu1 %v3941_v25  ;;  %1655 = vmatprep.mubr.f32.mxu0 %v4166_v28  ;;  %v2391_v28 = vld [vmem:[%s4684_s1 + $0x470] sm:$0xff] }
  0xed   : > { %1340 = vmatprep.mubr.f32.mxu1 %v4359_v5  ;;  %3102 = vmatpush3.bf16.msra.mxu0 %v4493_v13 }
  0xee   : > { %3104 = vmatprep.subr.bf16.mxu0 %v4511_v14 }
  0xef   : > { %2398 = vmatmul.mubr.msk.f32.gmra.mrb[40].mxu0 %vm3819_vm3, %v3830_v48  ;;  %v3111_v48 = vpack.c.bf16 %v2390_v38, %v2389_v37 }
  0xf0   : > { %2342 = vmatmul.mubr.msk.f32.gmra.mrb[40].mxu1 %vm3819_vm3, %v3950_v30  ;;  %1660 = vmatprep.mubr.f32.mxu0 %v4223_v0  ;;  %v3115_v0 = vpack.c.bf16 %v2392_v35, %v2391_v28 }
  0xf1   : > { %1345 = vmatprep.mubr.f32.mxu1 %v4374_v60  ;;  %3106 = vmatpush3.bf16.msra.mxu0 %v4511_v14 }
  0xf2   : > { %3108 = vmatprep.subr.bf16.mxu0 %v3107_v31 }
  0xf3   : > { %1661 = vmatmul.mubr.f32.gmra.mrb[42].mxu0 %v3899_v8  ;;  %v4732_v8 = vld [vmem:[#allocation14_spill] sm:$0xff] }
  0xf4   : > { %1346 = vmatmul.mubr.f32.gmra.mrb[42].mxu1 %v4020_v53  ;;  %1665 = vmatprep.mubr.f32.mxu0 %v4272_v63  ;;  %v4739_v63 = vld [vmem:[#allocation21_spill] sm:$0xff] }
  0xf5   : > { %1350 = vmatprep.mubr.f32.mxu1 %v4393_v47  ;;  %3110 = vmatpush3.bf16.msra.mxu0 %v3107_v31 }
  0xf6   : > { %3112 = vmatprep.subr.bf16.mxu0 %v3111_v48 }
  0xf7   : > { %2400 = vmatmul.mubr.msk.f32.gmra.mrb[44].mxu0 %vm3819_vm3, %v3877_v1  ;;  %v4731_v1 = vld [vmem:[#allocation13_spill] sm:$0xff] }
  0xf8   : > { %2344 = vmatmul.mubr.msk.f32.gmra.mrb[44].mxu1 %vm3819_vm3, %v4004_v22  ;;  %1670 = vmatprep.mubr.f32.mxu0 %v4315_v27 }
  0xf9   : > { %1355 = vmatprep.mubr.f32.mxu1 %v4407_v51  ;;  %3114 = vmatpush3.bf16.msra.mxu0 %v3111_v48 }
  0xfa   : > { %3116 = vmatprep.subr.bf16.mxu0 %v3115_v0 }
  0xfb   : > { %1671 = vmatmul.mubr.f32.gmra.mrb[46].mxu0 %v3941_v25  ;;  %v4733_v25 = vld [vmem:[#allocation15_spill] sm:$0xff] }
  0xfc   : > { %1356 = vmatmul.mubr.f32.gmra.mrb[46].mxu1 %v4080_v11  ;;  %1675 = vmatprep.mubr.f32.mxu0 %v4359_v5 }
  0xfd   : > { %2847 = vmatprep.mubr.f32.mxu1 %v4305_v46  ;;  %3118 = vmatpush3.bf16.msra.mxu0 %v3115_v0  ;;  %v4740_v46 = vld [vmem:[#allocation22_spill] sm:$0xff] }
  0xff   : > { %2402 = vmatmul.mubr.msk.f32.gmra.mrb[48].mxu0 %vm3819_vm3, %v3950_v30  ;;  %v4735_v30 = vld [vmem:[#allocation17_spill] sm:$0xff] }
 0x100   : > { %2848 = vmatmul.mubr.f32.vlgmr.msra.gmra.mrb[0].mxu1 %v4308_v19  ;;  %1680 = vmatprep.mubr.f32.mxu0 %v4374_v60  ;;  %v4742_v19 = vld [vmem:[#allocation24_spill] sm:$0xff] }
 0x101   : > { %3127 = vmatpush3.bf16.msra.mxu1 %v4340_v18  ;;  %2850 = vmatprep.mubr.f32.mxu1 %v3684_v57  ;;  %v4734_v57 = vld [vmem:[#allocation16_spill] sm:$0xff] }
 0x102   : > { %3120 = vmatprep.subr.bf16.mxu1 %v4460_v12 }
 0x103   : > { %1681 = vmatmul.mubr.f32.gmra.mrb[50].mxu0 %v4020_v53  ;;  %v4736_v53 = vld [vmem:[#allocation18_spill] sm:$0xff] }
 0x104   : > { %2851 = vmatmul.mubr.f32.gmra.mrb[2].mxu1 %v4731_v1  ;;  %1685 = vmatprep.mubr.f32.mxu0 %v4393_v47 }
 0x105   : > { %3128 = vmatpush3.bf16.msra.mxu1 %v4460_v12  ;;  %2853 = vmatprep.mubr.f32.mxu1 %v4732_v8 }
 0x106   : > { %3121 = vmatprep.subr.bf16.mxu1 %v4479_v59 }
 0x107   : > { %2404 = vmatmul.mubr.msk.f32.gmra.mrb[52].mxu0 %vm3819_vm3, %v4004_v22  ;;  %v4737_v22 = vld [vmem:[#allocation19_spill] sm:$0xff] }
 0x108   : > { %2854 = vmatmul.mubr.f32.gmra.mrb[4].mxu1 %v4733_v25  ;;  %1690 = vmatprep.mubr.f32.mxu0 %v4407_v51 }
 0x109   : > { %3129 = vmatpush3.bf16.msra.mxu1 %v4479_v59  ;;  %2856 = vmatprep.mubr.f32.mxu1 %v4734_v57 }
 0x10a   : > { %3122 = vmatprep.subr.bf16.mxu1 %v4493_v13 }
 0x10b   : > { %1691 = vmatmul.mubr.f32.gmra.mrb[54].mxu0 %v4080_v11  ;;  %v4738_v11 = vld [vmem:[#allocation20_spill] sm:$0xff] }
 0x10c   : > { %2857 = vmatmul.mubr.f32.gmra.mrb[6].mxu1 %v4735_v30  ;;  %1695 = vmatprep.mubr.f32.mxu0 %v4426_v58 }
 0x10d   : > { %3130 = vmatpush3.bf16.msra.mxu1 %v4493_v13  ;;  %2859 = vmatprep.mubr.f32.mxu1 %v4736_v53 }
 0x10e   : > { %3123 = vmatprep.subr.bf16.mxu1 %v4511_v14 }
 0x10f   : > { %2406 = vmatmul.mubr.msk.f32.gmra.mrb[56].mxu0 %vm3819_vm3, %v4089_v7  ;;  %v4741_v7 = vld [vmem:[#allocation23_spill] sm:$0xff] }
 0x110   : > { %2860 = vmatmul.mubr.f32.gmra.mrb[8].mxu1 %v4737_v22  ;;  %1700 = vmatprep.mubr.f32.mxu0 %v4440_v36 }
 0x111   : > { %3131 = vmatpush3.bf16.msra.mxu1 %v4511_v14  ;;  %2862 = vmatprep.mubr.f32.mxu1 %v4738_v11 }
 0x112   : > { %3124 = vmatprep.subr.bf16.mxu1 %v3107_v31 }
 0x113   : > { %1701 = vmatmul.mubr.f32.gmra.mrb[58].mxu0 %v4142_v52  ;;  %v4743_v52 = vld [vmem:[#allocation25_spill] sm:$0xff] }
 0x114   : > { %2863 = vmatmul.mubr.f32.gmra.mrb[10].mxu1 %v4739_v63  ;;  %1705 = vmatprep.mubr.f32.mxu0 %v4343_v55 }
 0x115   : > { %3132 = vmatpush3.bf16.msra.mxu1 %v3107_v31  ;;  %2865 = vmatprep.mubr.f32.mxu1 %v4740_v46 }
 0x116   : > { %3125 = vmatprep.subr.bf16.mxu1 %v3111_v48 }
 0x117   : > { %2408 = vmatmul.mubr.msk.f32.gmra.mrb[60].mxu0 %vm3819_vm3, %v4293_v32  ;;  %v4745_v32 = vld [vmem:[#allocation27_spill] sm:$0xff] }
 0x118   : > { %2866 = vmatmul.mubr.f32.gmra.mrb[12].mxu1 %v4741_v7  ;;  %1710 = vmatprep.mubr.f32.mxu0 %v4350_v39 }
 0x119   : > { %3133 = vmatpush3.bf16.msra.mxu1 %v3111_v48  ;;  %2868 = vmatprep.mubr.f32.mxu1 %v4742_v19 }
 0x11a   : > { %3126 = vmatprep.subr.bf16.mxu1 %v3115_v0 }
 0x11b   : > { %1711 = vmatmul.mubr.f32.gmra.mrb[62].mxu0 %v4325_v44 }
 0x11c   : > { %2869 = vmatmul.mubr.f32.gmra.mrb[14].mxu1 %v4743_v52  ;;  %2903 = vmatprep.mubr.f32.mxu0 %v4732_v8 }
 0x11d   : > { %3134 = vmatpush3.bf16.msra.mxu1 %v3115_v0  ;;  %2915 = vmatprep.mubr.f32.mxu1 %v4740_v46 }
 0x11f   : > { %2904 = vmatmul.mubr.f32.vlgmr.msra.gmra.mrb[64].mxu0 %v4733_v25 }
 0x120   : > { %2916 = vmatmul.mubr.f32.vlgmr.msra.gmra.mrb[8].mxu1 %v4741_v7  ;;  %2906 = vmatprep.mubr.f32.mxu0 %v4734_v57 }
 0x121   : > { %2918 = vmatprep.mubr.f32.mxu1 %v4742_v19 }
 0x123   : > { %2907 = vmatmul.mubr.f32.gmra.mrb[66].mxu0 %v4735_v30 }
 0x124   : > { %2919 = vmatmul.mubr.f32.gmra.mrb[10].mxu1 %v4743_v52  ;;  %2909 = vmatprep.mubr.f32.mxu0 %v4736_v53 }
 0x125   : > { %2921 = vmatprep.mubr.f32.mxu1 %v4744_v43 }
 0x127   : > { %2910 = vmatmul.mubr.f32.gmra.mrb[68].mxu0 %v4737_v22 }
 0x128   : > { %2922 = vmatmul.mubr.f32.gmra.mrb[12].mxu1 %v4745_v32  ;;  %2912 = vmatprep.mubr.f32.mxu0 %v4738_v11 }
 0x129   : > { %2924 = vmatprep.mubr.f32.mxu1 %v4353_v26 }
 0x12b   : > { %2913 = vmatmul.mubr.f32.gmra.mrb[70].mxu0 %v4739_v63 }
 0x12c   : > { %2925 = vmatmul.mubr.f32.gmra.mrb[14].mxu1 %v4356_v9 }
 0x172   : > { %v2455_v27 = vpop.f32.mrb[0].mxu0 }
 0x173   : > { %v2456_v44 = vpop.f32.mrb[1].mxu0 }
 0x174   : > { %v2457_v18 = vadd.f32 %v2456_v44, %v2455_v27 }
 0x176   : > { %v2458_v55 = vpop.f32.mrb[2].mxu0 }
 0x177   : > { %v2459_v39 = vpop.f32.mrb[3].mxu0 }
 0x178   : > { %v2460_v5 = vadd.f32 %v2459_v39, %v2458_v55 }
 0x17a   : > { %v2461_v60 = vpop.f32.mrb[4].mxu0 }
 0x17b   : > { %v2462_v56 = vpop.f32.mrb[5].mxu0 }
 0x17c   : > { %v2463_v47 = vadd.f32 %v2462_v56, %v2461_v60 }
 0x17e   : > { %v2464_v15 = vpop.f32.mrb[6].mxu0 }
 0x17f   : > { %v2465_v62 = vpop.f32.mrb[7].mxu0 }
 0x180   : > { %v2466_v4 = vadd.f32 %v2465_v62, %v2464_v15 }
 0x182   : > { %v2467_v33 = vpop.f32.mrb[8].mxu0 }
 0x183   : > { %v2468_v51 = vpop.f32.mrb[9].mxu0 }
 0x184   : > { %v2469_v20 = vadd.f32 %v2468_v51, %v2467_v33 }
 0x186   : > { %v2470_v26 = vpop.f32.mrb[10].mxu0 }
 0x187   : > { %v2471_v29 = vpop.f32.mrb[11].mxu0 }
 0x188   : > { %v2472_v41 = vadd.f32 %v2471_v29, %v2470_v26 }
 0x18a   : > { %v2473_v40 = vpop.f32.mrb[12].mxu0 }
 0x18b   : > { %v2474_v9 = vpop.f32.mrb[13].mxu0 }
 0x18c   : > { %v2475_v17 = vadd.f32 %v2474_v9, %v2473_v40 }
 0x18e   : > { %v2476_v58 = vpop.f32.mrb[14].mxu0 }
 0x18f   : > { %v2477_v3 = vpop.f32.mrb[15].mxu0 }
 0x190   : > { %v2478_v42 = vadd.f32 %v2477_v3, %v2476_v58 }
 0x192   : > { %v2479_v49 = vpop.f32.mrb[16].mxu0 }
 0x193   : > { %v2567_v21 = vpop.f32.mrb[16].mxu1  ;;  %v2480_v36 = vpop.f32.mrb[17].mxu0 }
 0x194   : > { %v2481_v61 = vadd.f32 %v2480_v36, %v2479_v49  ;;  %v2568_v10 = vpop.f32.mrb[17].mxu1 }
 0x195   : > { %v2569_v24 = vadd.f32 %v2568_v10, %v2567_v21 }
 0x196   : > { %v2482_v12 = vpop.f32.mrb[18].mxu0 }
 0x197   : > { %v2570_v54 = vpop.f32.mrb[18].mxu1  ;;  %v2483_v45 = vpop.f32.mrb[19].mxu0  ;;  %v4625_v59 = vadd.f32 %v2569_v24, %v2457_v18 }
 0x198   : > { %v2484_v6 = vadd.f32 %v2483_v45, %v2482_v12  ;;  %v2571_v23 = vpop.f32.mrb[19].mxu1 }
 0x199   : > { %v2572_v13 = vadd.f32 %v2571_v23, %v2570_v54 }
 0x19a   : > { %v2485_v16 = vpop.f32.mrb[20].mxu0 }
 0x19b   : > { %v2573_v34 = vpop.f32.mrb[20].mxu1  ;;  %v2486_v14 = vpop.f32.mrb[21].mxu0  ;;  %v4627_v50 = vadd.f32 %v2572_v13, %v2460_v5 }
 0x19c   : > { %v2487_v2 = vadd.f32 %v2486_v14, %v2485_v16  ;;  %v2574_v31 = vpop.f32.mrb[21].mxu1 }
 0x19d   : > { %v2575_v37 = vadd.f32 %v2574_v31, %v2573_v34 }
 0x19e   : > { %v2488_v38 = vpop.f32.mrb[22].mxu0 }
 0x19f   : > { %v2576_v48 = vpop.f32.mrb[22].mxu1  ;;  %v2489_v28 = vpop.f32.mrb[23].mxu0  ;;  %v4629_v35 = vadd.f32 %v2575_v37, %v2463_v47 }
 0x1a0   : > { %v2490_v0 = vadd.f32 %v2489_v28, %v2488_v38  ;;  %v2577_v1 = vpop.f32.mrb[23].mxu1 }
 0x1a1   : > { %v2578_v8 = vadd.f32 %v2577_v1, %v2576_v48 }
 0x1a2   : > { %v2491_v25 = vpop.f32.mrb[24].mxu0 }
 0x1a3   : > { %v2579_v57 = vpop.f32.mrb[24].mxu1  ;;  %v2492_v30 = vpop.f32.mrb[25].mxu0  ;;  %v4631_v53 = vadd.f32 %v2578_v8, %v2466_v4 }
 0x1a4   : > { %v2493_v22 = vadd.f32 %v2492_v30, %v2491_v25  ;;  %v2580_v11 = vpop.f32.mrb[25].mxu1 }
 0x1a5   : > { %v2581_v63 = vadd.f32 %v2580_v11, %v2579_v57 }
 0x1a6   : > { %v2494_v46 = vpop.f32.mrb[26].mxu0 }
 0x1a7   : > { %v2582_v7 = vpop.f32.mrb[26].mxu1  ;;  %v2495_v19 = vpop.f32.mrb[27].mxu0  ;;  %v4633_v52 = vadd.f32 %v2581_v63, %v2469_v20 }
 0x1a8   : > { %v2496_v43 = vadd.f32 %v2495_v19, %v2494_v46  ;;  %v2583_v32 = vpop.f32.mrb[27].mxu1 }
 0x1a9   : > { %v2584_v27 = vadd.f32 %v2583_v32, %v2582_v7 }
 0x1aa   : > { %v2497_v44 = vpop.f32.mrb[28].mxu0 }
 0x1ab   : > { %v2585_v18 = vpop.f32.mrb[28].mxu1  ;;  %v2498_v55 = vpop.f32.mrb[29].mxu0  ;;  %v4635_v39 = vadd.f32 %v2584_v27, %v2472_v41 }
 0x1ac   : > { %v2499_v5 = vadd.f32 %v2498_v55, %v2497_v44  ;;  %v2586_v60 = vpop.f32.mrb[29].mxu1 }
 0x1ad   : > { %v2587_v56 = vadd.f32 %v2586_v60, %v2585_v18 }
 0x1ae   : > { %v2500_v47 = vpop.f32.mrb[30].mxu0 }
 0x1af   : > { %v2588_v15 = vpop.f32.mrb[30].mxu1  ;;  %v2501_v62 = vpop.f32.mrb[31].mxu0  ;;  %v4637_v4 = vadd.f32 %v2587_v56, %v2475_v17 }
 0x1b0   : > { %v2502_v33 = vadd.f32 %v2501_v62, %v2500_v47  ;;  %v2589_v51 = vpop.f32.mrb[31].mxu1 }
 0x1b1   : > { %v2590_v20 = vadd.f32 %v2589_v51, %v2588_v15 }
 0x1b2   : > { %v2679_v26 = vpop.f32.mrb[32].mxu0 }
 0x1b3   : > { %v2591_v29 = vpop.f32.mrb[32].mxu1  ;;  %v2680_v40 = vpop.f32.mrb[33].mxu0  ;;  %v4639_v9 = vadd.f32 %v2590_v20, %v2478_v42 }
 0x1b4   : > { %v2592_v58 = vpop.f32.mrb[33].mxu1  ;;  %v4641_v3 = vadd.f32 %v2680_v40, %v2679_v26 }
 0x1b5   : > { %v2593_v41 = vadd.f32 %v2592_v58, %v2591_v29 }
 0x1b6   : > { %v2682_v49 = vpop.f32.mrb[34].mxu0 }
 0x1b7   : > { %v3170_v21 = vadd.f32 %v2593_v41, %v2481_v61  ;;  %v2594_v36 = vpop.f32.mrb[34].mxu1  ;;  %v2683_v10 = vpop.f32.mrb[35].mxu0 }
 0x1b8   : > { %v2595_v24 = vpop.f32.mrb[35].mxu1  ;;  %v2684_v12 = vadd.f32 %v2683_v10, %v2682_v49 }
 0x1b9   : > { %v2596_v17 = vadd.f32 %v2595_v24, %v2594_v36 }
 0x1ba   : > { %v2685_v54 = vpop.f32.mrb[36].mxu0 }
 0x1bb   : > { %v3167_v45 = vadd.f32 %v2596_v17, %v2484_v6  ;;  %v2597_v23 = vpop.f32.mrb[36].mxu1  ;;  %v2686_v13 = vpop.f32.mrb[37].mxu0 }
 0x1bc   : > { %v2598_v16 = vpop.f32.mrb[37].mxu1  ;;  %v2687_v34 = vadd.f32 %v2686_v13, %v2685_v54 }
 0x1bd   : > { %v2599_v14 = vadd.f32 %v2598_v16, %v2597_v23 }
 0x1be   : > { %v2688_v42 = vpop.f32.mrb[38].mxu0 }
 0x1bf   : > { %v4643_v31 = vadd.f32 %v2599_v14, %v2487_v2  ;;  %v2600_v37 = vpop.f32.mrb[38].mxu1  ;;  %v2689_v38 = vpop.f32.mrb[39].mxu0 }
 0x1c0   : > { %v2601_v48 = vpop.f32.mrb[39].mxu1  ;;  %v2690_v28 = vadd.f32 %v2689_v38, %v2688_v42 }
 0x1c1   : > { %v2602_v61 = vadd.f32 %v2601_v48, %v2600_v37 }
 0x1c2   : > { %v2691_v1 = vpop.f32.mrb[40].mxu0 }
 0x1c3   : > { %v4645_v8 = vadd.f32 %v2602_v61, %v2490_v0  ;;  %v2603_v25 = vpop.f32.mrb[40].mxu1  ;;  %v2692_v57 = vpop.f32.mrb[41].mxu0 }
 0x1c4   : > { %v2604_v30 = vpop.f32.mrb[41].mxu1  ;;  %v2693_v6 = vadd.f32 %v2692_v57, %v2691_v1 }
 0x1c5   : > { %v2605_v11 = vadd.f32 %v2604_v30, %v2603_v25 }
 0x1c6   : > { %v2694_v63 = vpop.f32.mrb[42].mxu0 }
 0x1c7   : > { %v4647_v46 = vadd.f32 %v2605_v11, %v2493_v22  ;;  %v2606_v7 = vpop.f32.mrb[42].mxu1  ;;  %v2695_v19 = vpop.f32.mrb[43].mxu0 }
 0x1c8   : > { %v2607_v2 = vpop.f32.mrb[43].mxu1  ;;  %v2696_v32 = vadd.f32 %v2695_v19, %v2694_v63 }
 0x1c9   : > { %v2608_v27 = vadd.f32 %v2607_v2, %v2606_v7 }
 0x1ca   : > { %v2697_v44 = vpop.f32.mrb[44].mxu0 }
 0x1cb   : > { %v3179_v18 = vadd.f32 %v2608_v27, %v2496_v43  ;;  %v2609_v55 = vpop.f32.mrb[44].mxu1  ;;  %v2698_v60 = vpop.f32.mrb[45].mxu0 }
 0x1cc   : > { %v2610_v56 = vpop.f32.mrb[45].mxu1  ;;  %v2699_v0 = vadd.f32 %v2698_v60, %v2697_v44 }
 0x1cd   : > { %v2611_v47 = vadd.f32 %v2610_v56, %v2609_v55 }
 0x1ce   : > { %v2700_v15 = vpop.f32.mrb[46].mxu0 }
 0x1cf   : > { %v3188_v62 = vadd.f32 %v2611_v47, %v2499_v5  ;;  %v2612_v51 = vpop.f32.mrb[46].mxu1  ;;  %v2701_v20 = vpop.f32.mrb[47].mxu0 }
 0x1d0   : > { %v2613_v26 = vpop.f32.mrb[47].mxu1  ;;  %v2702_v29 = vadd.f32 %v2701_v20, %v2700_v15 }
 0x1d1   : > { %v2614_v22 = vadd.f32 %v2613_v26, %v2612_v51 }
 0x1d2   : > { %v2703_v40 = vpop.f32.mrb[48].mxu0 }
 0x1d3   : > { %v3185_v58 = vadd.f32 %v2614_v22, %v2502_v33  ;;  %v2849_v41 = vpop.f32.mrb[0].mxu1  ;;  %v2704_v49 = vpop.f32.mrb[49].mxu0 }
 0x1d4   : > { %v3136_v36 = vadd.f32 %v4627_v50, %v2849_v41  ;;  %v1427_v10 = vpop.f32.mrb[1].mxu1  ;;  %v2705_v43 = vadd.f32 %v2704_v49, %v2703_v40 }
 0x1d5   : > { %v3140_v24 = vadd.f32 %v4625_v59, %v1427_v10 }
 0x1d6   : > { %v2706_v17 = vpop.f32.mrb[50].mxu0  ;;  %v3137_v54 = vadd.f32 %v3136_v36, %v2684_v12  ;;  %v3171_v23 = vadd.f32 %v3170_v21, %v2705_v43 }
 0x1d7   : > { %v2852_v13 = vpop.f32.mrb[2].mxu1  ;;  %v2707_v5 = vpop.f32.mrb[51].mxu0  ;;  %v3141_v16 = vadd.f32 %v3140_v24, %v4641_v3 }
 0x1d8   : > { %v3144_v14 = vadd.f32 %v4631_v53, %v2852_v13  ;;  %v1437_v42 = vpop.f32.mrb[3].mxu1  ;;  %v2708_v37 = vadd.f32 %v2707_v5, %v2706_v17 }
 0x1d9   : > { %v3148_v33 = vadd.f32 %v4629_v35, %v1437_v42 }
 0x1da   : > { %v2709_v38 = vpop.f32.mrb[52].mxu0  ;;  %v3168_v48 = vadd.f32 %v3167_v45, %v2708_v37  ;;  %v3145_v50 = vadd.f32 %v3144_v14, %v2690_v28 }
 0x1db   : > { %v2855_v61 = vpop.f32.mrb[4].mxu1  ;;  %v2710_v1 = vpop.f32.mrb[53].mxu0  ;;  %v3149_v25 = vadd.f32 %v3148_v33, %v2687_v34 }
 0x1dc   : > { %v3152_v59 = vadd.f32 %v4635_v39, %v2855_v61  ;;  %v1447_v12 = vpop.f32.mrb[5].mxu1  ;;  %v2711_v21 = vadd.f32 %v2710_v1, %v2709_v38 }
 0x1dd   : > { %v3156_v57 = vadd.f32 %v4633_v52, %v1447_v12 }
 0x1de   : > { %v2712_v30 = vpop.f32.mrb[54].mxu0  ;;  %v3177_v3 = vadd.f32 %v4643_v31, %v2711_v21  ;;  %v3153_v53 = vadd.f32 %v3152_v59, %v2696_v32 }
 0x1df   : > { %v2858_v11 = vpop.f32.mrb[6].mxu1  ;;  %v2713_v63 = vpop.f32.mrb[55].mxu0  ;;  %v3157_v7 = vadd.f32 %v3156_v57, %v2693_v6 }
 0x1e0   : > { %v3160_v35 = vadd.f32 %v4639_v9, %v2858_v11  ;;  %v1457_v45 = vpop.f32.mrb[7].mxu1  ;;  %v2714_v28 = vadd.f32 %v2713_v63, %v2712_v30 }
 0x1e1   : > { %v3164_v19 = vadd.f32 %v4637_v4, %v1457_v45 }
 0x1e2   : > { %v2715_v34 = vpop.f32.mrb[56].mxu0  ;;  %v3174_v39 = vadd.f32 %v4645_v8, %v2714_v28  ;;  %v3161_v2 = vadd.f32 %v3160_v35, %v2702_v29 }
 0x1e3   : > { %v2716_v27 = vpop.f32.mrb[57].mxu0  ;;  %v3165_v44 = vadd.f32 %v3164_v19, %v2699_v0 }
 0x1e4   : > { %v2717_v52 = vadd.f32 %v2716_v27, %v2715_v34 }
 0x1e6   : > { %v2718_v55 = vpop.f32.mrb[58].mxu0  ;;  %v3183_v31 = vadd.f32 %v4647_v46, %v2717_v52 }
 0x1e7   : > { %v2719_v32 = vpop.f32.mrb[59].mxu0 }
 0x1e8   : > { %v2720_v60 = vadd.f32 %v2719_v32, %v2718_v55 }
 0x1ea   : > { %v2721_v56 = vpop.f32.mrb[60].mxu0  ;;  %v3180_v6 = vadd.f32 %v3179_v18, %v2720_v60 }
 0x1eb   : > { %v2722_v47 = vpop.f32.mrb[61].mxu0 }
 0x1ec   : > { %v2723_v9 = vadd.f32 %v2722_v47, %v2721_v56 }
 0x1ee   : > { %v2724_v15 = vpop.f32.mrb[62].mxu0  ;;  %v3189_v51 = vadd.f32 %v3188_v62, %v2723_v9 }
 0x1ef   : > { %v2725_v20 = vpop.f32.mrb[63].mxu0 }
 0x1f0   : > { %v2726_v4 = vadd.f32 %v2725_v20, %v2724_v15 }
 0x1f2   : > { %v2905_v26 = vpop.f32.mrb[64].mxu0  ;;  %v3186_v22 = vadd.f32 %v3185_v58, %v2726_v4 }
 0x1f3   : > { %v3138_v8 = vadd.f32 %v3137_v54, %v2905_v26  ;;  %v2917_v29 = vpop.f32.mrb[8].mxu1  ;;  %v1782_v40 = vpop.f32.mrb[65].mxu0 }
 0x1f4   : > { %v3169_v0 = vadd.f32 %v3168_v48, %v2917_v29  ;;  %v3142_v41 = vadd.f32 %v3141_v16, %v1782_v40  ;;  %v1822_v49 = vpop.f32.mrb[9].mxu1 }
 0x1f5   : > { %v3172_v36 = vadd.f32 %v3171_v23, %v1822_v49 }
 0x1f6   : > { %v2908_v46 = vpop.f32.mrb[66].mxu0 }
 0x1f7   : > { %v3146_v10 = vadd.f32 %v3145_v50, %v2908_v46  ;;  %v2920_v43 = vpop.f32.mrb[10].mxu1  ;;  %v1792_v24 = vpop.f32.mrb[67].mxu0 }
 0x1f8   : > { %v3175_v18 = vadd.f32 %v3174_v39, %v2920_v43  ;;  %v3150_v17 = vadd.f32 %v3149_v25, %v1792_v24  ;;  %v1832_v13 = vpop.f32.mrb[11].mxu1  ;;  %v3316_v25 = vmov (!%p2167_p7), 0.0  }
 0x1f9   : > { %v3178_v5 = vadd.f32 %v3177_v3, %v1832_v13  ;;  %1880 = vst [vmem:[%s3374_s23] sm:$0x3] (!%p2167_p7), %v3316_v25 }
 0x1fa   : > { %v2911_v62 = vpop.f32.mrb[68].mxu0 }
 0x1fb   : > { %v3154_v14 = vadd.f32 %v3153_v53, %v2911_v62  ;;  %v2923_v42 = vpop.f32.mrb[12].mxu1  ;;  %v1802_v37 = vpop.f32.mrb[69].mxu0  ;;  %1879 = sbr.rel (%p2167_p7) target bundleno = 514 (0x202), region = 272 }
 0x1fc   : > { %v3181_v58 = vadd.f32 %v3180_v6, %v2923_v42  ;;  %v3158_v54 = vadd.f32 %v3157_v7, %v1802_v37  ;;  %v1842_v33 = vpop.f32.mrb[13].mxu1 }
 0x1fd   : > { %v3184_v38 = vadd.f32 %v3183_v31, %v1842_v33 }
 0x1fe   : > { %v2914_v48 = vpop.f32.mrb[70].mxu0 }
 0x1ff   : > { %v3162_v16 = vadd.f32 %v3161_v2, %v2914_v48  ;;  %v2926_v61 = vpop.f32.mrb[14].mxu1  ;;  %v1812_v23 = vpop.f32.mrb[71].mxu0 }
 0x200   : > { %v3187_v1 = vadd.f32 %v3186_v22, %v2926_v61  ;;  %v3166_v50 = vadd.f32 %v3165_v44, %v1812_v23  ;;  %v1852_v59 = vpop.f32.mrb[15].mxu1 }
 0x201   : > { %v3190_v12 = vadd.f32 %v3189_v51, %v1852_v59 }
 0x202 PF: > { %v1882_v21 = vadd.f32 %v3142_v41, %v3138_v8  ;;  %v1906_v57 = vmul.f32 %v3142_v41, %v3142_v41  ;;  %v1907_v30 = vmul.f32 %v3138_v8, %v3138_v8  ;;  %v1908_v53 = vmul.f32 %v3150_v17, %v3150_v17 }
 0x203   : > { %v1909_v63 = vmul.f32 %v3146_v10, %v3146_v10  ;;  %v1910_v45 = vmul.f32 %v3158_v54, %v3158_v54  ;;  %v1911_v34 = vmul.f32 %v3154_v14, %v3154_v14  ;;  %v1912_v27 = vmul.f32 %v3166_v50, %v3166_v50 }
 0x204   : > { %v1883_v3 = vadd.f32 %v3150_v17, %v1882_v21  ;;  %v1922_v7 = vadd.f32 %v1907_v30, %v1906_v57  ;;  %v1913_v55 = vmul.f32 %v3162_v16, %v3162_v16  ;;  %v1914_v60 = vmul.f32 %v3172_v36, %v3172_v36 }
 0x205   : > { %v1915_v47 = vmul.f32 %v3169_v0, %v3169_v0  ;;  %v1916_v51 = vmul.f32 %v3178_v5, %v3178_v5  ;;  %v1917_v26 = vmul.f32 %v3175_v18, %v3175_v18  ;;  %v1918_v29 = vmul.f32 %v3184_v38, %v3184_v38 }
 0x206   : > { %v1884_v11 = vadd.f32 %v3146_v10, %v1883_v3  ;;  %v1923_v28 = vadd.f32 %v1922_v7, %v1908_v53  ;;  %v1919_v49 = vmul.f32 %v3181_v58, %v3181_v58  ;;  %v1920_v43 = vmul.f32 %v3190_v12, %v3190_v12 }
 0x207   : > { %v1921_v17 = vmul.f32 %v3187_v1, %v3187_v1 }
 0x208   : > { %v1885_v35 = vadd.f32 %v3158_v54, %v1884_v11  ;;  %v1924_v39 = vadd.f32 %v1923_v28, %v1909_v63 }
 0x20a   : > { %v1886_v19 = vadd.f32 %v3154_v14, %v1885_v35  ;;  %v1925_v44 = vadd.f32 %v1924_v39, %v1910_v45 }
 0x20c   : > { %v1887_v2 = vadd.f32 %v3166_v50, %v1886_v19  ;;  %v1926_v31 = vadd.f32 %v1925_v44, %v1911_v34 }
 0x20e   : > { %v1888_v52 = vadd.f32 %v3162_v16, %v1887_v2  ;;  %v1927_v56 = vadd.f32 %v1926_v31, %v1912_v27 }
 0x210   : > { %v1889_v32 = vadd.f32 %v3172_v36, %v1888_v52  ;;  %v1928_v9 = vadd.f32 %v1927_v56, %v1913_v55 }
 0x212   : > { %v1890_v6 = vadd.f32 %v3169_v0, %v1889_v32  ;;  %v1929_v20 = vadd.f32 %v1928_v9, %v1914_v60 }
 0x214   : > { %v1891_v15 = vadd.f32 %v3178_v5, %v1890_v6  ;;  %v1930_v22 = vadd.f32 %v1929_v20, %v1915_v47 }
 0x216   : > { %v1892_v4 = vadd.f32 %v3175_v18, %v1891_v15  ;;  %v1931_v40 = vadd.f32 %v1930_v22, %v1916_v51 }
 0x218   : > { %v1893_v8 = vadd.f32 %v3184_v38, %v1892_v4  ;;  %v1932_v46 = vadd.f32 %v1931_v40, %v1917_v26  ;;  %v1881_v38 = vld [vmem:[%s3374_s23] sm:$0x1] }
 0x21a   : > { %v1894_v41 = vadd.f32 %v3181_v58, %v1893_v8  ;;  %v1933_v36 = vadd.f32 %v1932_v46, %v1918_v29 }
 0x21c   : > { %v1895_v10 = vadd.f32 %v3190_v12, %v1894_v41  ;;  %v1934_v0 = vadd.f32 %v1933_v36, %v1919_v49 }
 0x21e   : > { %v1896_v24 = vadd.f32 %v3187_v1, %v1895_v10  ;;  %v1935_v5 = vadd.f32 %v1934_v0, %v1920_v43  ;;  %v1905_v1 = vld [vmem:[%s3374_s23 + $0x1] sm:$0x1] }
 0x220   : > { %v1897_v13 = vrot.slane %v1896_v24, 4  ;;  %v1936_v18 = vadd.f32 %v1935_v5, %v1921_v17 }
 0x222   : > { %v1898_v62 = vadd.f32 %v1897_v13, %v1896_v24  ;;  %v1937_v42 = vrot.slane %v1936_v18, 4 }
 0x224   : > { %v1899_v14 = vrot.slane %v1898_v62, 2  ;;  %v1938_v54 = vadd.f32 %v1937_v42, %v1936_v18 }
 0x226   : > { %v1900_v37 = vadd.f32 %v1899_v14, %v1898_v62  ;;  %v1939_v33 = vrot.slane %v1938_v54, 2 }
 0x228   : > { %v1901_v58 = vrot.slane %v1900_v37, 1  ;;  %v1940_v16 = vadd.f32 %v1939_v33, %v1938_v54 }
 0x22a   : > { %v1902_v48 = vadd.f32 %v1901_v58, %v1900_v37  ;;  %v1941_v23 = vrot.slane %v1940_v16, 1 }
 0x22c   : > { %v1903_v61 = vadd.f32 %v1902_v48, %v1881_v38  ;;  %v1942_v50 = vadd.f32 %v1941_v23, %v1940_v16 }
 0x22e   : > { %1904 = vst [vmem:[%s3374_s23] sm:$0x1] %v1903_v61  ;;  %v1943_v59 = vadd.f32 %v1942_v50, %v1905_v1 }
 0x230   : > { %1944 = vst [vmem:[%s3374_s23 + $0x1] sm:$0x1] %v1943_v59 }
 0x231 PF: > { %s12_s13 = sadd.s32 1, %s3312_s13   ;;  %s4746_s9 = smov %s3304_s11 }
 0x232   : > { %p9_p3 = scmp.ge.s32.totalorder %s12_s13, 6   ;;  %s4747_s10 = smov %s3308_s12 }
 0x233   : > { %s4748_s11 = smov %s4751_s14  ;;  %s4749_s12 = smov %s4755_s15 }
 0x234   :  { %11 = sbr.rel (!%p9_p3) target bundleno = 3 (0x3), region = 377 }
 0x23b   :  { %1964 = vsyncmov [#allocation3] }
 0x23e   :  { %s1965_s23 = vpop.sfrf %1964 }
 0x23f   :  { %p2412_p4 = scmp.ne.s32.totalorder %s1965_s23, 0 }
 0x241   :  { %1969 = shalt.err (%p2412_p4)  }
 0x242   :  { %1971 = vsyncmov [#allocation3 + $0x1] }
 0x245   :  { %s1972_s29 = vpop.sfrf %1971 }
 0x246   :  { %p2413_p5 = scmp.ne.s32.totalorder %s1972_s29, 0 }
 0x248   :  { %1976 = shalt.err (%p2413_p5)  }
 0x249   :  { %1978 = vsyncmov [#allocation3 + $0x2] }
 0x24c   :  { %s1979_s18 = vpop.sfrf %1978 }
 0x24d   :  { %p2414_p6 = scmp.ne.s32.totalorder %s1979_s18, 0 }
 0x24f   :  { %1983 = shalt.err (%p2414_p6)  }
 0x250   :  { %1985 = vsyncmov [#allocation3 + $0x3] }
 0x253   :  { %s1986_s19 = vpop.sfrf %1985 }
 0x254   :  { %p2415_p7 = scmp.ne.s32.totalorder %s1986_s19, 0 }
 0x256   :  { %1990 = shalt.err (%p2415_p7)  }
 0x257   :  { %1992 = vsyncmov [#allocation3 + $0x4] }
 0x25a   :  { %s1993_s14 = vpop.sfrf %1992 }
 0x25b   :  { %p2416_p8 = scmp.ne.s32.totalorder %s1993_s14, 0 }
 0x25d   :  { %1997 = shalt.err (%p2416_p8)  }
 0x25e   :  { %1999 = vsyncmov [#allocation3 + $0x5] }
 0x261   :  { %s2000_s0 = vpop.sfrf %1999 }
 0x262   :  { %p2417_p9 = scmp.ne.s32.totalorder %s2000_s0, 0 }
 0x264   :  { %2004 = shalt.err (%p2417_p9)  }

</bundles_post_ra>
